<compile_context>
chip_gen: v7x
topology: tpu7x:2x2x1
jax: 0.10.0
libtpu: 0.0.40
codegen_flags: <defaults>
</compile_context>

<pallas_src>
import jax
import jax.numpy as jnp
from jax.experimental import pallas as pl
from jax.experimental.pallas import tpu as pltpu

# ----------------------------- static configuration -----------------------------
B = 2                   # batch
IN_CH = 3               # image channels
IMG = 32                # small image (Swin uses 224)
PATCH = 4               # Swin patch size
T = (IMG // PATCH) ** 2            # number of patch tokens (64)
KP = IN_CH * PATCH * PATCH         # im2col patch dim (3*4*4 = 48)
KP_PAD = 128                       # lane-dense patch dim
IN_PLANES = 1024                   # self.in_planes
NUM_CLASSES = 16
NUM_ATTR = 8
D1, D2, D3 = 384, 96, 48           # classifier_grl hidden dims
DPAD = 128                         # lane-dense pad for D2/D3 and small outputs
HEAD_N = D1 + DPAD                 # merged [GRL linear-1 | ID classifier(pad)] width
BN_EPS = 1e-5


def _gelu(x):
    # TODO(synk): PyTorch nn.GELU() default is exact (erf-based); tanh approximation
    #             is used here because erf is not guaranteed to lower in Mosaic.
    c = jnp.float32(0.7978845608028654)  # sqrt(2/pi)
    return 0.5 * x * (1.0 + jnp.tanh(c * (x + 0.044715 * x * x * x)))


def _bn_train(h, gamma, beta):
    # BatchNorm1d, training-mode semantics: biased batch statistics over axis 0.
    # Zero-padded feature columns stay exactly zero (mean=0, var=0, beta=0).
    m = jnp.mean(h, axis=0, keepdims=True)
    v = jnp.mean((h - m) ** 2, axis=0, keepdims=True)
    return (h - m) * jax.lax.rsqrt(v + jnp.float32(BN_EPS)) * gamma + beta


# ------------------------------- fused forward kernel ----------------------------
def fused_kernel(pooled_ref, w_pe_ref, b_pe_ref,
                 bn_g_ref, bn_b_ref, bng_g_ref, bng_b_ref,
                 whead_hbm_ref, head_bias_ref,
                 g1_ref, b1_ref,
                 w2_ref, g2_ref, b2_ref,
                 w3_ref, g3_ref, b3_ref, w4_ref,
                 gfeat_ref, feat_ref, attr_ref, cls_ref, attr_cls_ref,
                 whead_vmem, whead_sem):
    # Overlap the 1 MiB bf16 merged-head-weight HBM->VMEM DMA with the
    # backbone matmul + dual BN-neck compute.
    cp = pltpu.make_async_copy(whead_hbm_ref, whead_vmem, whead_sem)
    cp.start()

    # --- backbone stub: pooled-patch embed (pool commuted before the matmul) -----
    # pooled_ref: (B, KP_PAD) f32; w_pe_ref: (KP_PAD, C) bf16.
    gfeat = jnp.dot(pooled_ref[...].astype(jnp.bfloat16), w_pe_ref[...],
                    preferred_element_type=jnp.float32) + b_pe_ref[...]    # (B, C)
    gfeat_ref[...] = gfeat

    # --- dual BN neck (shared batch statistics) ----------------------------------
    # TODO(synk): eval mode should use BN running statistics; training-mode batch
    #             statistics are used for both branches here.
    m = jnp.mean(gfeat, axis=0, keepdims=True)
    v = jnp.mean((gfeat - m) ** 2, axis=0, keepdims=True)
    xhat = (gfeat - m) * jax.lax.rsqrt(v + jnp.float32(BN_EPS))
    feat_ref[...] = xhat * bn_g_ref[...] + bn_b_ref[...]        # bottleneck
    attr_ref[...] = xhat * bng_g_ref[...] + bng_b_ref[...]      # bottleneck_grl

    # --- merged ID classifier + GRL layer-1 (gamma folded into weights) ----------
    # head = xhat @ [g_grl*W1 | g_bn*Wc(pad)] + [b_grl@W1 | b_bn@Wc(pad)]
    # (exactly equal to feat@Wc and attr@W1; RevGrad is identity in the forward).
    cp.wait()
    head = jnp.dot(xhat.astype(jnp.bfloat16), whead_vmem[...],
                   preferred_element_type=jnp.float32) + head_bias_ref[...]  # (B, 512)
    h1 = head[:, :D1]                      # GRL linear-1 output (B, 384)
    cls_ref[...] = head[:, D1:]            # ID classifier scores, padded to 128 lanes

    # --- rest of the GRL attribute head -------------------------------------------
    h = _gelu(_bn_train(h1, g1_ref[...], b1_ref[...]))
    # TODO(synk): nn.Dropout2d() omitted (stochastic; identity at eval).
    h = jnp.dot(h.astype(jnp.bfloat16), w2_ref[...],
                preferred_element_type=jnp.float32)                          # (B, 128)
    h = _gelu(_bn_train(h, g2_ref[...], b2_ref[...]))
    h = jnp.dot(h.astype(jnp.bfloat16), w3_ref[...],
                preferred_element_type=jnp.float32)                          # (B, 128)
    h = _gelu(_bn_train(h, g3_ref[...], b3_ref[...]))
    attr_cls_ref[...] = jnp.dot(h.astype(jnp.bfloat16), w4_ref[...],
                                preferred_element_type=jnp.float32)          # (B, 128)


def fused_forward(pooled, p):
    C = IN_PLANES
    full = lambda shape: pl.BlockSpec(shape, lambda i: (0,) * len(shape))
    return pl.pallas_call(
        fused_kernel,
        out_shape=(
            jax.ShapeDtypeStruct((B, C), jnp.float32),      # global_feat
            jax.ShapeDtypeStruct((B, C), jnp.float32),      # feat
            jax.ShapeDtypeStruct((B, C), jnp.float32),      # attr_feat_bn
            jax.ShapeDtypeStruct((B, DPAD), jnp.float32),   # cls_score (padded)
            jax.ShapeDtypeStruct((B, DPAD), jnp.float32),   # cls_score_attr (padded)
        ),
        grid=(1,),
        in_specs=[
            full((B, KP_PAD)),                     # pooled patches
            full((KP_PAD, C)), full((1, C)),       # patch-embed weight (bf16) / bias
            full((1, C)), full((1, C)),            # bottleneck gamma/beta
            full((1, C)), full((1, C)),            # bottleneck_grl gamma/beta
            pl.BlockSpec(memory_space=pl.ANY),     # merged head weight (HBM, manual DMA)
            full((1, HEAD_N)),                     # merged head bias row
            full((1, D1)), full((1, D1)),          # BN1 gamma/beta
            full((D1, DPAD)), full((1, DPAD)), full((1, DPAD)),   # w2 (bf16) / BN2
            full((DPAD, DPAD)), full((1, DPAD)), full((1, DPAD)), # w3 (bf16) / BN3
            full((DPAD, DPAD)),                    # w4 (bf16)
        ],
        out_specs=[full((B, C)), full((B, C)), full((B, C)),
                   full((B, DPAD)), full((B, DPAD))],
        scratch_shapes=[
            pltpu.VMEM((C, HEAD_N), jnp.bfloat16),   # merged head weight landing buffer
            pltpu.SemaphoreType.DMA(()),
        ],
        compiler_params=pltpu.CompilerParams(
            dimension_semantics=("arbitrary",)),   # latency-bound; keep on one TC
    )(
        pooled,
        p["w_pe_pad"], p["b_pe"],
        p["bn_g"], p["bn_b"], p["bn_grl_g"], p["bn_grl_b"],
        p["w_head"], p["head_bias"],
        p["g_grl1"], p["b_grl1"],
        p["w_grl2_pad"], p["g_grl2_pad"], p["b_grl2_pad"],
        p["w_grl3_pad"], p["g_grl3_pad"], p["b_grl3_pad"],
        p["w_grl4_pad"],
    )


# ----------------------------- parameter construction ----------------------------
def init_params(key):
    ks = jax.random.split(key, 8)
    # raw weights at reference shapes / init distributions
    w_pe = 0.02 * jax.random.normal(ks[0], (KP, IN_PLANES), jnp.float32)
    b_pe = 0.02 * jax.random.normal(ks[1], (1, IN_PLANES), jnp.float32)
    w_cls = 0.001 * jax.random.normal(ks[2], (IN_PLANES, NUM_CLASSES), jnp.float32)
    w1 = 0.001 * jax.random.normal(ks[3], (IN_PLANES, D1), jnp.float32)
    w2 = 0.001 * jax.random.normal(ks[4], (D1, D2), jnp.float32)
    w3 = 0.001 * jax.random.normal(ks[5], (D2, D3), jnp.float32)
    w4 = 0.001 * jax.random.normal(ks[6], (D3, NUM_ATTR), jnp.float32)

    # bottleneck / bottleneck_grl: weights_init_kaiming -> gamma=1, beta=0 (frozen)
    bn_g = jnp.ones((1, IN_PLANES), jnp.float32)
    bn_b = jnp.zeros((1, IN_PLANES), jnp.float32)
    bn_grl_g = jnp.ones((1, IN_PLANES), jnp.float32)
    bn_grl_b = jnp.zeros((1, IN_PLANES), jnp.float32)

    pad_cols = lambda a, n: jnp.pad(a, ((0, 0), (0, n - a.shape[1])))
    pad_rows = lambda a, n: jnp.pad(a, ((0, n - a.shape[0]), (0, 0)))

    # Fold the BN-neck affine into the downstream weights (exact: beta@W bias row),
    # and merge [GRL-linear1 | ID-classifier(pad)] into one (1024, 512) bf16 matrix.
    w1_fold = bn_grl_g.T * w1                                  # (1024, 384)
    w_cls_fold = bn_g.T * w_cls                                # (1024, 16)
    w_head = jnp.concatenate([w1_fold, pad_cols(w_cls_fold, DPAD)], axis=1)
    head_bias = jnp.concatenate(
        [bn_grl_b @ w1, pad_cols(bn_b @ w_cls, DPAD)], axis=1)  # (1, 512), zeros here

    return {
        # backbone stub (stands in for the pretrained Swin patch embed) — bf16 weights
        "w_pe_pad": pad_rows(w_pe, KP_PAD).astype(jnp.bfloat16),   # (128, 1024)
        "b_pe": b_pe,                                              # (1, 1024) f32
        "bn_g": bn_g, "bn_b": bn_b,
        "bn_grl_g": bn_grl_g, "bn_grl_b": bn_grl_b,
        # merged ID-classifier + GRL-layer-1 weight (DMA'd in-kernel) and bias row
        "w_head": w_head.astype(jnp.bfloat16),                     # (1024, 512) bf16
        "head_bias": head_bias,                                    # (1, 512) f32
        # classifier_grl BN params default (1, 0); padded columns are zero weights /
        # gamma=1 / beta=0 so padded features stay exactly zero.
        "g_grl1": jnp.ones((1, D1), jnp.float32),
        "b_grl1": jnp.zeros((1, D1), jnp.float32),
        "w_grl2_pad": pad_cols(w2, DPAD).astype(jnp.bfloat16),     # (384, 128)
        "g_grl2_pad": jnp.ones((1, DPAD), jnp.float32),
        "b_grl2_pad": jnp.zeros((1, DPAD), jnp.float32),
        "w_grl3_pad": pad_cols(pad_rows(w3, DPAD), DPAD).astype(jnp.bfloat16),  # (128,128)
        "g_grl3_pad": jnp.ones((1, DPAD), jnp.float32),
        "b_grl3_pad": jnp.zeros((1, DPAD), jnp.float32),
        "w_grl4_pad": pad_cols(pad_rows(w4, DPAD), DPAD).astype(jnp.bfloat16),  # (128,128)
    }


def im2col(x, patch):
    # NCHW image -> (B, tokens, C*patch*patch), matching Conv2d(k=patch, stride=patch)
    Bn, Cc, H, W = x.shape
    x = x.reshape(Bn, Cc, H // patch, patch, W // patch, patch)
    x = x.transpose(0, 2, 4, 1, 3, 5)
    return x.reshape(Bn, (H // patch) * (W // patch), Cc * patch * patch)


# ----------------------------------- forward -------------------------------------
def forward(params, x, kp_x=None, training=True, neck_feat="after"):
    del kp_x  # unused in the reference forward
    # Global-average-pool commuted before the (linear) patch embed: exact because
    # mean_t(patch_t @ W + b) == mean_t(patch_t) @ W + b.
    patches = im2col(x.astype(jnp.float32), PATCH)                  # (B, T, KP)
    pooled = jnp.mean(patches, axis=1)                              # (B, KP)
    pooled = jnp.pad(pooled, ((0, 0), (0, KP_PAD - KP)))            # lane-dense K dim

    global_feat, feat, attr_feat_bn, cls_pad, attr_pad = fused_forward(pooled, params)

    cls_score = cls_pad[:, :NUM_CLASSES]
    cls_score_attr = attr_pad[:, :NUM_ATTR]

    if training:
        return ([cls_score, cls_score_attr], [global_feat, global_feat])
    elif neck_feat == "after":
        return jnp.concatenate([feat, attr_feat_bn], axis=1)
    else:
        return jnp.concatenate([global_feat], axis=1)


# ------------------------------------- main ---------------------------------------
if __name__ == "__main__":
    key = jax.random.PRNGKey(0)
    k_x, k_kp, k_p = jax.random.split(key, 3)

    x = jax.random.normal(k_x, (B, IN_CH, IMG, IMG), jnp.float32)      # NCHW image
    kp_x = jax.random.normal(k_kp, (B, IN_CH, IMG, IMG), jnp.float32)  # unused
    params = init_params(k_p)

    # one jitted program per (training, neck_feat) combination
    forward_jit = jax.jit(forward, static_argnames=("training", "neck_feat"))

    # training branch: ([cls_score, cls_score_attr], [global_feat, global_feat])
    (scores, feats) = forward_jit(params, x, kp_x, training=True)
    for t in scores + feats:
        jax.block_until_ready(t)
    assert scores[0].shape == (B, NUM_CLASSES)
    assert scores[1].shape == (B, NUM_ATTR)
    assert feats[0].shape == (B, IN_PLANES)

    # eval branch with neck_feat == 'after': cat([feat, attr_feat_bn], dim=1)
    eval_out = forward_jit(params, x, kp_x, training=False, neck_feat="after")
    jax.block_until_ready(eval_out)
    assert eval_out.shape == (B, 2 * IN_PLANES)

    print("KERNEL_OK")
</pallas_src>

<mosaic_0001>
module attributes {stable_mosaic.version = 11 : i64} {
  func.func @fused_kernel(%arg0: i32, %arg1: memref<2x128xf32, #tpu.memory_space<vmem>>, %arg2: memref<128x1024xbf16, #tpu.memory_space<vmem>>, %arg3: memref<1x1024xf32, #tpu.memory_space<vmem>>, %arg4: memref<1x1024xf32, #tpu.memory_space<vmem>>, %arg5: memref<1x1024xf32, #tpu.memory_space<vmem>>, %arg6: memref<1x1024xf32, #tpu.memory_space<vmem>>, %arg7: memref<1x1024xf32, #tpu.memory_space<vmem>>, %arg8: memref<1024x512xbf16, #tpu.memory_space<any>>, %arg9: memref<1x512xf32, #tpu.memory_space<vmem>>, %arg10: memref<1x384xf32, #tpu.memory_space<vmem>>, %arg11: memref<1x384xf32, #tpu.memory_space<vmem>>, %arg12: memref<384x128xbf16, #tpu.memory_space<vmem>>, %arg13: memref<1x128xf32, #tpu.memory_space<vmem>>, %arg14: memref<1x128xf32, #tpu.memory_space<vmem>>, %arg15: memref<128x128xbf16, #tpu.memory_space<vmem>>, %arg16: memref<1x128xf32, #tpu.memory_space<vmem>>, %arg17: memref<1x128xf32, #tpu.memory_space<vmem>>, %arg18: memref<128x128xbf16, #tpu.memory_space<vmem>>, %arg19: memref<2x1024xf32, #tpu.memory_space<vmem>>, %arg20: memref<2x1024xf32, #tpu.memory_space<vmem>>, %arg21: memref<2x1024xf32, #tpu.memory_space<vmem>>, %arg22: memref<2x128xf32, #tpu.memory_space<vmem>>, %arg23: memref<2x128xf32, #tpu.memory_space<vmem>>, %arg24: memref<1024x512xbf16, #tpu.memory_space<vmem>>, %arg25: memref<!tpu.dma_semaphore, #tpu.memory_space<semaphore_mem>>) attributes {dimension_semantics = [#tpu.dimension_semantics<arbitrary>], iteration_bounds = array<i64: 1>, scalar_prefetch = 0 : i64, scratch_operands = 2 : i64, tpu.core_type = #tpu.core_type<tc>, window_params = [{pipeline_mode = #tpu.pipeline_mode<synchronous>, transform_indices = @transform_0, window_bounds = array<i64: 2, 128>}, {pipeline_mode = #tpu.pipeline_mode<synchronous>, transform_indices = @transform_1, window_bounds = array<i64: 128, 1024>}, {pipeline_mode = #tpu.pipeline_mode<synchronous>, transform_indices = @transform_2, window_bounds = array<i64: 1, 1024>}, {pipeline_mode = #tpu.pipeline_mode<synchronous>, transform_indices = @transform_3, window_bounds = array<i64: 1, 1024>}, {pipeline_mode = #tpu.pipeline_mode<synchronous>, transform_indices = @transform_4, window_bounds = array<i64: 1, 1024>}, {pipeline_mode = #tpu.pipeline_mode<synchronous>, transform_indices = @transform_5, window_bounds = array<i64: 1, 1024>}, {pipeline_mode = #tpu.pipeline_mode<synchronous>, transform_indices = @transform_6, window_bounds = array<i64: 1, 1024>}, {}, {pipeline_mode = #tpu.pipeline_mode<synchronous>, transform_indices = @transform_8, window_bounds = array<i64: 1, 512>}, {pipeline_mode = #tpu.pipeline_mode<synchronous>, transform_indices = @transform_9, window_bounds = array<i64: 1, 384>}, {pipeline_mode = #tpu.pipeline_mode<synchronous>, transform_indices = @transform_10, window_bounds = array<i64: 1, 384>}, {pipeline_mode = #tpu.pipeline_mode<synchronous>, transform_indices = @transform_11, window_bounds = array<i64: 384, 128>}, {pipeline_mode = #tpu.pipeline_mode<synchronous>, transform_indices = @transform_12, window_bounds = array<i64: 1, 128>}, {pipeline_mode = #tpu.pipeline_mode<synchronous>, transform_indices = @transform_13, window_bounds = array<i64: 1, 128>}, {pipeline_mode = #tpu.pipeline_mode<synchronous>, transform_indices = @transform_14, window_bounds = array<i64: 128, 128>}, {pipeline_mode = #tpu.pipeline_mode<synchronous>, transform_indices = @transform_15, window_bounds = array<i64: 1, 128>}, {pipeline_mode = #tpu.pipeline_mode<synchronous>, transform_indices = @transform_16, window_bounds = array<i64: 1, 128>}, {pipeline_mode = #tpu.pipeline_mode<synchronous>, transform_indices = @transform_17, window_bounds = array<i64: 128, 128>}, {pipeline_mode = #tpu.pipeline_mode<synchronous>, transform_indices = @transform_18, window_bounds = array<i64: 2, 1024>}, {pipeline_mode = #tpu.pipeline_mode<synchronous>, transform_indices = @transform_19, window_bounds = array<i64: 2, 1024>}, {pipeline_mode = #tpu.pipeline_mode<synchronous>, transform_indices = @transform_20, window_bounds = array<i64: 2, 1024>}, {pipeline_mode = #tpu.pipeline_mode<synchronous>, transform_indices = @transform_21, window_bounds = array<i64: 2, 128>}, {pipeline_mode = #tpu.pipeline_mode<synchronous>, transform_indices = @transform_22, window_bounds = array<i64: 2, 128>}]} {
    tpu.enqueue_dma source(%arg8 : memref<1024x512xbf16, #tpu.memory_space<any>>) target(%arg24 : memref<1024x512xbf16, #tpu.memory_space<vmem>>) target_semaphore(%arg25 : memref<!tpu.dma_semaphore, #tpu.memory_space<semaphore_mem>>)
    %c0 = arith.constant 0 : index
    %c0_0 = arith.constant 0 : index
    %0 = vector.load %arg1[%c0, %c0_0] : memref<2x128xf32, #tpu.memory_space<vmem>>, vector<2x128xf32>
    %1 = arith.truncf %0 : vector<2x128xf32> to vector<2x128xbf16>
    %c0_1 = arith.constant 0 : index
    %c0_2 = arith.constant 0 : index
    %2 = vector.load %arg2[%c0_1, %c0_2] : memref<128x1024xbf16, #tpu.memory_space<vmem>>, vector<128x1024xbf16>
    %cst = arith.constant dense<0.000000e+00> : vector<2x1024xf32>
    %3 = tpu.matmul %1, %2, %cst {dimension_numbers = #tpu.dot_dimension_numbers<[1], [0], [0], [1], [0, 0, 1, 1], [], []>} : vector<2x128xbf16>, vector<128x1024xbf16>, vector<2x1024xf32> -> vector<2x1024xf32>
    %c0_3 = arith.constant 0 : index
    %c0_4 = arith.constant 0 : index
    %4 = vector.load %arg3[%c0_3, %c0_4] : memref<1x1024xf32, #tpu.memory_space<vmem>>, vector<1x1024xf32>
    %5 = vector.broadcast %4 : vector<1x1024xf32> to vector<2x1024xf32>
    %6 = arith.addf %3, %5 : vector<2x1024xf32>
    %c0_5 = arith.constant 0 : index
    %c0_6 = arith.constant 0 : index
    %7 = vector.load %arg19[%c0_5, %c0_6] : memref<2x1024xf32, #tpu.memory_space<vmem>>, vector<2x1024xf32>
    tpu.vector_store %arg19[%c0_5, %c0_6], %6 {strides = array<i32>} : memref<2x1024xf32, #tpu.memory_space<vmem>>, vector<2x1024xf32>,
    %cst_7 = arith.constant dense<0.000000e+00> : vector<1024xf32>
    %8 = vector.multi_reduction <add>, %6, %cst_7 [0] : vector<2x1024xf32> to vector<1024xf32>
    %9 = vector.shape_cast %8 : vector<1024xf32> to vector<1x1024xf32>
    %cst_8 = arith.constant 2.000000e+00 : f32
    %10 = vector.broadcast %cst_8 : f32 to vector<1x1024xf32>
    %11 = arith.divf %9, %10 : vector<1x1024xf32>
    %12 = vector.broadcast %11 : vector<1x1024xf32> to vector<2x1024xf32>
    %13 = arith.subf %6, %12 : vector<2x1024xf32>
    %14 = arith.mulf %13, %13 : vector<2x1024xf32>
    %cst_9 = arith.constant dense<0.000000e+00> : vector<1024xf32>
    %15 = vector.multi_reduction <add>, %14, %cst_9 [0] : vector<2x1024xf32> to vector<1024xf32>
    %16 = vector.shape_cast %15 : vector<1024xf32> to vector<1x1024xf32>
    %cst_10 = arith.constant 2.000000e+00 : f32
    %17 = vector.broadcast %cst_10 : f32 to vector<1x1024xf32>
    %18 = arith.divf %16, %17 : vector<1x1024xf32>
    %19 = vector.broadcast %11 : vector<1x1024xf32> to vector<2x1024xf32>
    %20 = arith.subf %6, %19 : vector<2x1024xf32>
    %cst_11 = arith.constant 9.99999974E-6 : f32
    %21 = vector.broadcast %cst_11 : f32 to vector<1x1024xf32>
    %22 = arith.addf %18, %21 : vector<1x1024xf32>
    %23 = math.rsqrt %22 : vector<1x1024xf32>
    %24 = vector.broadcast %23 : vector<1x1024xf32> to vector<2x1024xf32>
    %25 = arith.mulf %20, %24 : vector<2x1024xf32>
    %c0_12 = arith.constant 0 : index
    %c0_13 = arith.constant 0 : index
    %26 = vector.load %arg4[%c0_12, %c0_13] : memref<1x1024xf32, #tpu.memory_space<vmem>>, vector<1x1024xf32>
    %27 = vector.broadcast %26 : vector<1x1024xf32> to vector<2x1024xf32>
    %28 = arith.mulf %25, %27 : vector<2x1024xf32>
    %c0_14 = arith.constant 0 : index
    %c0_15 = arith.constant 0 : index
    %29 = vector.load %arg5[%c0_14, %c0_15] : memref<1x1024xf32, #tpu.memory_space<vmem>>, vector<1x1024xf32>
    %30 = vector.broadcast %29 : vector<1x1024xf32> to vector<2x1024xf32>
    %31 = arith.addf %28, %30 : vector<2x1024xf32>
    %c0_16 = arith.constant 0 : index
    %c0_17 = arith.constant 0 : index
    %32 = vector.load %arg20[%c0_16, %c0_17] : memref<2x1024xf32, #tpu.memory_space<vmem>>, vector<2x1024xf32>
    tpu.vector_store %arg20[%c0_16, %c0_17], %31 {strides = array<i32>} : memref<2x1024xf32, #tpu.memory_space<vmem>>, vector<2x1024xf32>,
    %c0_18 = arith.constant 0 : index
    %c0_19 = arith.constant 0 : index
    %33 = vector.load %arg6[%c0_18, %c0_19] : memref<1x1024xf32, #tpu.memory_space<vmem>>, vector<1x1024xf32>
    %34 = vector.broadcast %33 : vector<1x1024xf32> to vector<2x1024xf32>
    %35 = arith.mulf %25, %34 : vector<2x1024xf32>
    %c0_20 = arith.constant 0 : index
    %c0_21 = arith.constant 0 : index
    %36 = vector.load %arg7[%c0_20, %c0_21] : memref<1x1024xf32, #tpu.memory_space<vmem>>, vector<1x1024xf32>
    %37 = vector.broadcast %36 : vector<1x1024xf32> to vector<2x1024xf32>
    %38 = arith.addf %35, %37 : vector<2x1024xf32>
    %c0_22 = arith.constant 0 : index
    %c0_23 = arith.constant 0 : index
    %39 = vector.load %arg21[%c0_22, %c0_23] : memref<2x1024xf32, #tpu.memory_space<vmem>>, vector<2x1024xf32>
    tpu.vector_store %arg21[%c0_22, %c0_23], %38 {strides = array<i32>} : memref<2x1024xf32, #tpu.memory_space<vmem>>, vector<2x1024xf32>,
    tpu.wait_dma2 semaphore(%arg25 : memref<!tpu.dma_semaphore, #tpu.memory_space<semaphore_mem>>) src(%arg8 : memref<1024x512xbf16, #tpu.memory_space<any>>) dst(%arg24 : memref<1024x512xbf16, #tpu.memory_space<vmem>>)
    %40 = arith.truncf %25 : vector<2x1024xf32> to vector<2x1024xbf16>
    %c0_24 = arith.constant 0 : index
    %c0_25 = arith.constant 0 : index
    %41 = vector.load %arg24[%c0_24, %c0_25] : memref<1024x512xbf16, #tpu.memory_space<vmem>>, vector<1024x512xbf16>
    %cst_26 = arith.constant dense<0.000000e+00> : vector<2x512xf32>
    %42 = tpu.matmul %40, %41, %cst_26 {dimension_numbers = #tpu.dot_dimension_numbers<[1], [0], [0], [1], [0, 0, 1, 1], [], []>} : vector<2x1024xbf16>, vector<1024x512xbf16>, vector<2x512xf32> -> vector<2x512xf32>
    %c0_27 = arith.constant 0 : index
    %c0_28 = arith.constant 0 : index
    %43 = vector.load %arg9[%c0_27, %c0_28] : memref<1x512xf32, #tpu.memory_space<vmem>>, vector<1x512xf32>
    %44 = vector.broadcast %43 : vector<1x512xf32> to vector<2x512xf32>
    %45 = arith.addf %42, %44 : vector<2x512xf32>
    %46 = vector.extract_strided_slice %45 {offsets = [0, 0], sizes = [2, 384], strides = [1, 1]} : vector<2x512xf32> to vector<2x384xf32>
    %47 = vector.extract_strided_slice %45 {offsets = [0, 384], sizes = [2, 128], strides = [1, 1]} : vector<2x512xf32> to vector<2x128xf32>
    %c0_29 = arith.constant 0 : index
    %c0_30 = arith.constant 0 : index
    %48 = vector.load %arg22[%c0_29, %c0_30] : memref<2x128xf32, #tpu.memory_space<vmem>>, vector<2x128xf32>
    tpu.vector_store %arg22[%c0_29, %c0_30], %47 {strides = array<i32>} : memref<2x128xf32, #tpu.memory_space<vmem>>, vector<2x128xf32>,
    %c0_31 = arith.constant 0 : index
    %c0_32 = arith.constant 0 : index
    %49 = vector.load %arg10[%c0_31, %c0_32] : memref<1x384xf32, #tpu.memory_space<vmem>>, vector<1x384xf32>
    %c0_33 = arith.constant 0 : index
    %c0_34 = arith.constant 0 : index
    %50 = vector.load %arg11[%c0_33, %c0_34] : memref<1x384xf32, #tpu.memory_space<vmem>>, vector<1x384xf32>
    %cst_35 = arith.constant dense<0.000000e+00> : vector<384xf32>
    %51 = vector.multi_reduction <add>, %46, %cst_35 [0] : vector<2x384xf32> to vector<384xf32>
    %52 = vector.shape_cast %51 : vector<384xf32> to vector<1x384xf32>
    %cst_36 = arith.constant 2.000000e+00 : f32
    %53 = vector.broadcast %cst_36 : f32 to vector<1x384xf32>
    %54 = arith.divf %52, %53 : vector<1x384xf32>
    %55 = vector.broadcast %54 : vector<1x384xf32> to vector<2x384xf32>
    %56 = arith.subf %46, %55 : vector<2x384xf32>
    %57 = arith.mulf %56, %56 : vector<2x384xf32>
    %cst_37 = arith.constant dense<0.000000e+00> : vector<384xf32>
    %58 = vector.multi_reduction <add>, %57, %cst_37 [0] : vector<2x384xf32> to vector<384xf32>
    %59 = vector.shape_cast %58 : vector<384xf32> to vector<1x384xf32>
    %cst_38 = arith.constant 2.000000e+00 : f32
    %60 = vector.broadcast %cst_38 : f32 to vector<1x384xf32>
    %61 = arith.divf %59, %60 : vector<1x384xf32>
    %62 = vector.broadcast %54 : vector<1x384xf32> to vector<2x384xf32>
    %63 = arith.subf %46, %62 : vector<2x384xf32>
    %cst_39 = arith.constant 9.99999974E-6 : f32
    %64 = vector.broadcast %cst_39 : f32 to vector<1x384xf32>
    %65 = arith.addf %61, %64 : vector<1x384xf32>
    %66 = math.rsqrt %65 : vector<1x384xf32>
    %67 = vector.broadcast %66 : vector<1x384xf32> to vector<2x384xf32>
    %68 = arith.mulf %63, %67 : vector<2x384xf32>
    %69 = vector.broadcast %49 : vector<1x384xf32> to vector<2x384xf32>
    %70 = arith.mulf %68, %69 : vector<2x384xf32>
    %71 = vector.broadcast %50 : vector<1x384xf32> to vector<2x384xf32>
    %72 = arith.addf %70, %71 : vector<2x384xf32>
    %cst_40 = arith.constant 5.000000e-01 : f32
    %73 = vector.broadcast %cst_40 : f32 to vector<2x384xf32>
    %74 = arith.mulf %73, %72 : vector<2x384xf32>
    %cst_41 = arith.constant 4.471500e-02 : f32
    %75 = vector.broadcast %cst_41 : f32 to vector<2x384xf32>
    %76 = arith.mulf %75, %72 : vector<2x384xf32>
    %77 = arith.mulf %76, %72 : vector<2x384xf32>
    %78 = arith.mulf %77, %72 : vector<2x384xf32>
    %79 = arith.addf %72, %78 : vector<2x384xf32>
    %cst_42 = arith.constant 0.797884583 : f32
    %80 = vector.broadcast %cst_42 : f32 to vector<2x384xf32>
    %81 = arith.mulf %80, %79 : vector<2x384xf32>
    %82 = math.tanh %81 : vector<2x384xf32>
    %cst_43 = arith.constant 1.000000e+00 : f32
    %83 = vector.broadcast %cst_43 : f32 to vector<2x384xf32>
    %84 = arith.addf %83, %82 : vector<2x384xf32>
    %85 = arith.mulf %74, %84 : vector<2x384xf32>
    %86 = arith.truncf %85 : vector<2x384xf32> to vector<2x384xbf16>
    %c0_44 = arith.constant 0 : index
    %c0_45 = arith.constant 0 : index
    %87 = vector.load %arg12[%c0_44, %c0_45] : memref<384x128xbf16, #tpu.memory_space<vmem>>, vector<384x128xbf16>
    %cst_46 = arith.constant dense<0.000000e+00> : vector<2x128xf32>
    %88 = tpu.matmul %86, %87, %cst_46 {dimension_numbers = #tpu.dot_dimension_numbers<[1], [0], [0], [1], [0, 0, 1, 1], [], []>} : vector<2x384xbf16>, vector<384x128xbf16>, vector<2x128xf32> -> vector<2x128xf32>
    %c0_47 = arith.constant 0 : index
    %c0_48 = arith.constant 0 : index
    %89 = vector.load %arg13[%c0_47, %c0_48] : memref<1x128xf32, #tpu.memory_space<vmem>>, vector<1x128xf32>
    %c0_49 = arith.constant 0 : index
    %c0_50 = arith.constant 0 : index
    %90 = vector.load %arg14[%c0_49, %c0_50] : memref<1x128xf32, #tpu.memory_space<vmem>>, vector<1x128xf32>
    %cst_51 = arith.constant dense<0.000000e+00> : vector<128xf32>
    %91 = vector.multi_reduction <add>, %88, %cst_51 [0] : vector<2x128xf32> to vector<128xf32>
    %92 = vector.shape_cast %91 : vector<128xf32> to vector<1x128xf32>
    %cst_52 = arith.constant 2.000000e+00 : f32
    %93 = vector.broadcast %cst_52 : f32 to vector<1x128xf32>
    %94 = arith.divf %92, %93 : vector<1x128xf32>
    %95 = vector.broadcast %94 : vector<1x128xf32> to vector<2x128xf32>
    %96 = arith.subf %88, %95 : vector<2x128xf32>
    %97 = arith.mulf %96, %96 : vector<2x128xf32>
    %cst_53 = arith.constant dense<0.000000e+00> : vector<128xf32>
    %98 = vector.multi_reduction <add>, %97, %cst_53 [0] : vector<2x128xf32> to vector<128xf32>
    %99 = vector.shape_cast %98 : vector<128xf32> to vector<1x128xf32>
    %cst_54 = arith.constant 2.000000e+00 : f32
    %100 = vector.broadcast %cst_54 : f32 to vector<1x128xf32>
    %101 = arith.divf %99, %100 : vector<1x128xf32>
    %102 = vector.broadcast %94 : vector<1x128xf32> to vector<2x128xf32>
    %103 = arith.subf %88, %102 : vector<2x128xf32>
    %cst_55 = arith.constant 9.99999974E-6 : f32
    %104 = vector.broadcast %cst_55 : f32 to vector<1x128xf32>
    %105 = arith.addf %101, %104 : vector<1x128xf32>
    %106 = math.rsqrt %105 : vector<1x128xf32>
    %107 = vector.broadcast %106 : vector<1x128xf32> to vector<2x128xf32>
    %108 = arith.mulf %103, %107 : vector<2x128xf32>
    %109 = vector.broadcast %89 : vector<1x128xf32> to vector<2x128xf32>
    %110 = arith.mulf %108, %109 : vector<2x128xf32>
    %111 = vector.broadcast %90 : vector<1x128xf32> to vector<2x128xf32>
    %112 = arith.addf %110, %111 : vector<2x128xf32>
    %cst_56 = arith.constant 5.000000e-01 : f32
    %113 = vector.broadcast %cst_56 : f32 to vector<2x128xf32>
    %114 = arith.mulf %113, %112 : vector<2x128xf32>
    %cst_57 = arith.constant 4.471500e-02 : f32
    %115 = vector.broadcast %cst_57 : f32 to vector<2x128xf32>
    %116 = arith.mulf %115, %112 : vector<2x128xf32>
    %117 = arith.mulf %116, %112 : vector<2x128xf32>
    %118 = arith.mulf %117, %112 : vector<2x128xf32>
    %119 = arith.addf %112, %118 : vector<2x128xf32>
    %cst_58 = arith.constant 0.797884583 : f32
    %120 = vector.broadcast %cst_58 : f32 to vector<2x128xf32>
    %121 = arith.mulf %120, %119 : vector<2x128xf32>
    %122 = math.tanh %121 : vector<2x128xf32>
    %cst_59 = arith.constant 1.000000e+00 : f32
    %123 = vector.broadcast %cst_59 : f32 to vector<2x128xf32>
    %124 = arith.addf %123, %122 : vector<2x128xf32>
    %125 = arith.mulf %114, %124 : vector<2x128xf32>
    %126 = arith.truncf %125 : vector<2x128xf32> to vector<2x128xbf16>
    %c0_60 = arith.constant 0 : index
    %c0_61 = arith.constant 0 : index
    %127 = vector.load %arg15[%c0_60, %c0_61] : memref<128x128xbf16, #tpu.memory_space<vmem>>, vector<128x128xbf16>
    %cst_62 = arith.constant dense<0.000000e+00> : vector<2x128xf32>
    %128 = tpu.matmul %126, %127, %cst_62 {dimension_numbers = #tpu.dot_dimension_numbers<[1], [0], [0], [1], [0, 0, 1, 1], [], []>} : vector<2x128xbf16>, vector<128x128xbf16>, vector<2x128xf32> -> vector<2x128xf32>
    %c0_63 = arith.constant 0 : index
    %c0_64 = arith.constant 0 : index
    %129 = vector.load %arg16[%c0_63, %c0_64] : memref<1x128xf32, #tpu.memory_space<vmem>>, vector<1x128xf32>
    %c0_65 = arith.constant 0 : index
    %c0_66 = arith.constant 0 : index
    %130 = vector.load %arg17[%c0_65, %c0_66] : memref<1x128xf32, #tpu.memory_space<vmem>>, vector<1x128xf32>
    %cst_67 = arith.constant dense<0.000000e+00> : vector<128xf32>
    %131 = vector.multi_reduction <add>, %128, %cst_67 [0] : vector<2x128xf32> to vector<128xf32>
    %132 = vector.shape_cast %131 : vector<128xf32> to vector<1x128xf32>
    %cst_68 = arith.constant 2.000000e+00 : f32
    %133 = vector.broadcast %cst_68 : f32 to vector<1x128xf32>
    %134 = arith.divf %132, %133 : vector<1x128xf32>
    %135 = vector.broadcast %134 : vector<1x128xf32> to vector<2x128xf32>
    %136 = arith.subf %128, %135 : vector<2x128xf32>
    %137 = arith.mulf %136, %136 : vector<2x128xf32>
    %cst_69 = arith.constant dense<0.000000e+00> : vector<128xf32>
    %138 = vector.multi_reduction <add>, %137, %cst_69 [0] : vector<2x128xf32> to vector<128xf32>
    %139 = vector.shape_cast %138 : vector<128xf32> to vector<1x128xf32>
    %cst_70 = arith.constant 2.000000e+00 : f32
    %140 = vector.broadcast %cst_70 : f32 to vector<1x128xf32>
    %141 = arith.divf %139, %140 : vector<1x128xf32>
    %142 = vector.broadcast %134 : vector<1x128xf32> to vector<2x128xf32>
    %143 = arith.subf %128, %142 : vector<2x128xf32>
    %cst_71 = arith.constant 9.99999974E-6 : f32
    %144 = vector.broadcast %cst_71 : f32 to vector<1x128xf32>
    %145 = arith.addf %141, %144 : vector<1x128xf32>
    %146 = math.rsqrt %145 : vector<1x128xf32>
    %147 = vector.broadcast %146 : vector<1x128xf32> to vector<2x128xf32>
    %148 = arith.mulf %143, %147 : vector<2x128xf32>
    %149 = vector.broadcast %129 : vector<1x128xf32> to vector<2x128xf32>
    %150 = arith.mulf %148, %149 : vector<2x128xf32>
    %151 = vector.broadcast %130 : vector<1x128xf32> to vector<2x128xf32>
    %152 = arith.addf %150, %151 : vector<2x128xf32>
    %cst_72 = arith.constant 5.000000e-01 : f32
    %153 = vector.broadcast %cst_72 : f32 to vector<2x128xf32>
    %154 = arith.mulf %153, %152 : vector<2x128xf32>
    %cst_73 = arith.constant 4.471500e-02 : f32
    %155 = vector.broadcast %cst_73 : f32 to vector<2x128xf32>
    %156 = arith.mulf %155, %152 : vector<2x128xf32>
    %157 = arith.mulf %156, %152 : vector<2x128xf32>
    %158 = arith.mulf %157, %152 : vector<2x128xf32>
    %159 = arith.addf %152, %158 : vector<2x128xf32>
    %cst_74 = arith.constant 0.797884583 : f32
    %160 = vector.broadcast %cst_74 : f32 to vector<2x128xf32>
    %161 = arith.mulf %160, %159 : vector<2x128xf32>
    %162 = math.tanh %161 : vector<2x128xf32>
    %cst_75 = arith.constant 1.000000e+00 : f32
    %163 = vector.broadcast %cst_75 : f32 to vector<2x128xf32>
    %164 = arith.addf %163, %162 : vector<2x128xf32>
    %165 = arith.mulf %154, %164 : vector<2x128xf32>
    %166 = arith.truncf %165 : vector<2x128xf32> to vector<2x128xbf16>
    %c0_76 = arith.constant 0 : index
    %c0_77 = arith.constant 0 : index
    %167 = vector.load %arg18[%c0_76, %c0_77] : memref<128x128xbf16, #tpu.memory_space<vmem>>, vector<128x128xbf16>
    %cst_78 = arith.constant dense<0.000000e+00> : vector<2x128xf32>
    %168 = tpu.matmul %166, %167, %cst_78 {dimension_numbers = #tpu.dot_dimension_numbers<[1], [0], [0], [1], [0, 0, 1, 1], [], []>} : vector<2x128xbf16>, vector<128x128xbf16>, vector<2x128xf32> -> vector<2x128xf32>
    %c0_79 = arith.constant 0 : index
    %c0_80 = arith.constant 0 : index
    %169 = vector.load %arg23[%c0_79, %c0_80] : memref<2x128xf32, #tpu.memory_space<vmem>>, vector<2x128xf32>
    tpu.vector_store %arg23[%c0_79, %c0_80], %168 {strides = array<i32>} : memref<2x128xf32, #tpu.memory_space<vmem>>, vector<2x128xf32>,
    return
  }
  func.func @transform_0(%arg0: i32) -> (i32, i32) {
    %c0_i32 = arith.constant 0 : i32
    %c0_i32_0 = arith.constant 0 : i32
    %c0_i32_1 = arith.constant 0 : i32
    return %c0_i32, %c0_i32_0 : i32, i32
  }
  func.func @transform_1(%arg0: i32) -> (i32, i32) {
    %c0_i32 = arith.constant 0 : i32
    %c0_i32_0 = arith.constant 0 : i32
    %c0_i32_1 = arith.constant 0 : i32
    return %c0_i32, %c0_i32_0 : i32, i32
  }
  func.func @transform_2(%arg0: i32) -> (i32, i32) {
    %c0_i32 = arith.constant 0 : i32
    %c0_i32_0 = arith.constant 0 : i32
    %c0_i32_1 = arith.constant 0 : i32
    return %c0_i32, %c0_i32_0 : i32, i32
  }
  func.func @transform_3(%arg0: i32) -> (i32, i32) {
    %c0_i32 = arith.constant 0 : i32
    %c0_i32_0 = arith.constant 0 : i32
    %c0_i32_1 = arith.constant 0 : i32
    return %c0_i32, %c0_i32_0 : i32, i32
  }
  func.func @transform_4(%arg0: i32) -> (i32, i32) {
    %c0_i32 = arith.constant 0 : i32
    %c0_i32_0 = arith.constant 0 : i32
    %c0_i32_1 = arith.constant 0 : i32
    return %c0_i32, %c0_i32_0 : i32, i32
  }
  func.func @transform_5(%arg0: i32) -> (i32, i32) {
    %c0_i32 = arith.constant 0 : i32
    %c0_i32_0 = arith.constant 0 : i32
    %c0_i32_1 = arith.constant 0 : i32
    return %c0_i32, %c0_i32_0 : i32, i32
  }
  func.func @transform_6(%arg0: i32) -> (i32, i32) {
    %c0_i32 = arith.constant 0 : i32
    %c0_i32_0 = arith.constant 0 : i32
    %c0_i32_1 = arith.constant 0 : i32
    return %c0_i32, %c0_i32_0 : i32, i32
  }
  func.func @transform_8(%arg0: i32) -> (i32, i32) {
    %c0_i32 = arith.constant 0 : i32
    %c0_i32_0 = arith.constant 0 : i32
    %c0_i32_1 = arith.constant 0 : i32
    return %c0_i32, %c0_i32_0 : i32, i32
  }
  func.func @transform_9(%arg0: i32) -> (i32, i32) {
    %c0_i32 = arith.constant 0 : i32
    %c0_i32_0 = arith.constant 0 : i32
    %c0_i32_1 = arith.constant 0 : i32
    return %c0_i32, %c0_i32_0 : i32, i32
  }
  func.func @transform_10(%arg0: i32) -> (i32, i32) {
    %c0_i32 = arith.constant 0 : i32
    %c0_i32_0 = arith.constant 0 : i32
    %c0_i32_1 = arith.constant 0 : i32
    return %c0_i32, %c0_i32_0 : i32, i32
  }
  func.func @transform_11(%arg0: i32) -> (i32, i32) {
    %c0_i32 = arith.constant 0 : i32
    %c0_i32_0 = arith.constant 0 : i32
    %c0_i32_1 = arith.constant 0 : i32
    return %c0_i32, %c0_i32_0 : i32, i32
  }
  func.func @transform_12(%arg0: i32) -> (i32, i32) {
    %c0_i32 = arith.constant 0 : i32
    %c0_i32_0 = arith.constant 0 : i32
    %c0_i32_1 = arith.constant 0 : i32
    return %c0_i32, %c0_i32_0 : i32, i32
  }
  func.func @transform_13(%arg0: i32) -> (i32, i32) {
    %c0_i32 = arith.constant 0 : i32
    %c0_i32_0 = arith.constant 0 : i32
    %c0_i32_1 = arith.constant 0 : i32
    return %c0_i32, %c0_i32_0 : i32, i32
  }
  func.func @transform_14(%arg0: i32) -> (i32, i32) {
    %c0_i32 = arith.constant 0 : i32
    %c0_i32_0 = arith.constant 0 : i32
    %c0_i32_1 = arith.constant 0 : i32
    return %c0_i32, %c0_i32_0 : i32, i32
  }
  func.func @transform_15(%arg0: i32) -> (i32, i32) {
    %c0_i32 = arith.constant 0 : i32
    %c0_i32_0 = arith.constant 0 : i32
    %c0_i32_1 = arith.constant 0 : i32
    return %c0_i32, %c0_i32_0 : i32, i32
  }
  func.func @transform_16(%arg0: i32) -> (i32, i32) {
    %c0_i32 = arith.constant 0 : i32
    %c0_i32_0 = arith.constant 0 : i32
    %c0_i32_1 = arith.constant 0 : i32
    return %c0_i32, %c0_i32_0 : i32, i32
  }
  func.func @transform_17(%arg0: i32) -> (i32, i32) {
    %c0_i32 = arith.constant 0 : i32
    %c0_i32_0 = arith.constant 0 : i32
    %c0_i32_1 = arith.constant 0 : i32
    return %c0_i32, %c0_i32_0 : i32, i32
  }
  func.func @transform_18(%arg0: i32) -> (i32, i32) {
    %c0_i32 = arith.constant 0 : i32
    %c0_i32_0 = arith.constant 0 : i32
    %c0_i32_1 = arith.constant 0 : i32
    return %c0_i32, %c0_i32_0 : i32, i32
  }
  func.func @transform_19(%arg0: i32) -> (i32, i32) {
    %c0_i32 = arith.constant 0 : i32
    %c0_i32_0 = arith.constant 0 : i32
    %c0_i32_1 = arith.constant 0 : i32
    return %c0_i32, %c0_i32_0 : i32, i32
  }
  func.func @transform_20(%arg0: i32) -> (i32, i32) {
    %c0_i32 = arith.constant 0 : i32
    %c0_i32_0 = arith.constant 0 : i32
    %c0_i32_1 = arith.constant 0 : i32
    return %c0_i32, %c0_i32_0 : i32, i32
  }
  func.func @transform_21(%arg0: i32) -> (i32, i32) {
    %c0_i32 = arith.constant 0 : i32
    %c0_i32_0 = arith.constant 0 : i32
    %c0_i32_1 = arith.constant 0 : i32
    return %c0_i32, %c0_i32_0 : i32, i32
  }
  func.func @transform_22(%arg0: i32) -> (i32, i32) {
    %c0_i32 = arith.constant 0 : i32
    %c0_i32_0 = arith.constant 0 : i32
    %c0_i32_1 = arith.constant 0 : i32
    return %c0_i32, %c0_i32_0 : i32, i32
  }
}

</mosaic_0001>

<bundles_post_ra>
// kernel: forward.1
= control target key start
LH: loop header
LB: loop body
LE: loop exit
PB: predicated region body
PF: predicated region fallthrough
CT: control target
= control target key end

     0   :  { %s9401_s0 = inlined_call_operand.vmem [shape: f32[2,128], index: 0, kind: input, shape index: {}]   ;;  %s9402_s1 = inlined_call_operand.vmem [shape: bf16[128,1024], index: 1, kind: input, shape index: {}]   ;;  %s9403_s2 = inlined_call_operand.vmem [shape: f32[1,1024], index: 2, kind: input, shape index: {}]   ;;  %s9404_s3 = inlined_call_operand.vmem [shape: f32[1,1024], index: 3, kind: input, shape index: {}]   ;;  %s9405_s4 = inlined_call_operand.vmem [shape: f32[1,1024], index: 4, kind: input, shape index: {}]   ;;  %s9406_s5 = inlined_call_operand.vmem [shape: f32[1,1024], index: 5, kind: input, shape index: {}]   ;;  %s9407_s6 = inlined_call_operand.vmem [shape: f32[1,1024], index: 6, kind: input, shape index: {}]   ;;  %s9408_s7 = inlined_call_operand.vmem [shape: bf16[1024,512], index: 7, kind: input, shape index: {}]   ;;  %s9409_s8 = inlined_call_operand.vmem [shape: f32[1,512], index: 8, kind: input, shape index: {}]   ;;  %s9410_s9 = inlined_call_operand.vmem [shape: f32[1,384], index: 9, kind: input, shape index: {}]   ;;  %s9411_s10 = inlined_call_operand.vmem [shape: f32[1,384], index: 10, kind: input, shape index: {}]   ;;  %s9412_s11 = inlined_call_operand.vmem [shape: bf16[384,128], index: 11, kind: input, shape index: {}]   ;;  %s9413_s12 = inlined_call_operand.vmem [shape: f32[1,128], index: 12, kind: input, shape index: {}]   ;;  %s9414_s13 = inlined_call_operand.vmem [shape: f32[1,128], index: 13, kind: input, shape index: {}]   ;;  %s9415_s14 = inlined_call_operand.vmem [shape: bf16[128,128], index: 14, kind: input, shape index: {}]   ;;  %s9416_s15 = inlined_call_operand.vmem [shape: f32[1,128], index: 15, kind: input, shape index: {}]   ;;  %s9417_s16 = inlined_call_operand.vmem [shape: f32[1,128], index: 16, kind: input, shape index: {}]   ;;  %s9418_s17 = inlined_call_operand.vmem [shape: bf16[128,128], index: 17, kind: input, shape index: {}]   ;;  %s9419_s18 = inlined_call_operand.vmem [shape: f32[2,1024], index: 18, kind: output, shape index: {0}]   ;;  %s9420_s19 = inlined_call_operand.hbm [shape: f32[2,1024], index: 19, kind: output, shape index: {1}]   ;;  %s9421_s20 = inlined_call_operand.hbm [shape: f32[2,1024], index: 20, kind: output, shape index: {2}]   ;;  %s9422_s21 = inlined_call_operand.hbm [shape: f32[2,128], index: 21, kind: output, shape index: {3}]   ;;  %s9423_s22 = inlined_call_operand.hbm [shape: f32[2,128], index: 22, kind: output, shape index: {4}]  }
   0x1   :  { %9425 = sst [smem:[#allocation16_spill]] %s9401_s0 }
   0x2   :  { %9426 = sst [smem:[#allocation17_spill]] %s9402_s1 }
   0x3   :  { %9427 = sst [smem:[#allocation18_spill]] %s9403_s2 }
   0x4   :  { %9428 = sst [smem:[#allocation19_spill]] %s9404_s3 }
   0x5   :  { %9429 = sst [smem:[#allocation20_spill]] %s9405_s4 }
   0x6   :  { %9430 = sst [smem:[#allocation21_spill]] %s9406_s5 }
   0x7   :  { %9431 = sst [smem:[#allocation22_spill]] %s9407_s6 }
   0x8   :  { %28 = vsyncpa [#allocation5], 0 }
   0x9   :  { %29 = vsyncpa [#allocation7], 0 }
   0xa   :  { %30 = vsyncpa [#allocation10], 0  ;;  %v83_v0 = vld [vmem:[%s9408_s7] sm:$0xf]  ;;  %v85_v1 = vld [vmem:[%s9408_s7 + $0x10] sm:$0xf] }
   0xb   :  { %84 = vst [vmem:[#allocation2] sm:$0xf] %v83_v0  ;;  %86 = vst [vmem:[#allocation2 + $0x4] sm:$0xf] %v85_v1  ;;  %v87_v2 = vld [vmem:[%s9408_s7 + $0x4] sm:$0xf] }
   0xc   :  { %v89_v3 = vld [vmem:[%s9408_s7 + $0x14] sm:$0xf]  ;;  %v91_v4 = vld [vmem:[%s9408_s7 + $0x8] sm:$0xf]  ;;  %88 = vst [vmem:[#allocation2 + $0x8] sm:$0xf] %v87_v2 }
   0xd   :  { %90 = vst [vmem:[#allocation2 + $0xc] sm:$0xf] %v89_v3  ;;  %92 = vst [vmem:[#allocation2 + $0x10] sm:$0xf] %v91_v4  ;;  %v93_v5 = vld [vmem:[%s9408_s7 + $0x18] sm:$0xf] }
   0xe   :  { %v95_v6 = vld [vmem:[%s9408_s7 + $0xc] sm:$0xf]  ;;  %v97_v7 = vld [vmem:[%s9408_s7 + $0x1c] sm:$0xff]   ;;  %94 = vst [vmem:[#allocation2 + $0x14] sm:$0xf] %v93_v5 }
   0xf   :  { %96 = vst [vmem:[#allocation2 + $0x18] sm:$0xf] %v95_v6  ;;  %98 = vst [vmem:[#allocation2 + $0x1c] sm:$0xff] %v97_v7   ;;  %v101_v8 = vld [vmem:[%s9408_s7 + $0x30] sm:$0xf]  ;;  %v113_v14 = vld [vmem:[%s9408_s7 + $0x3c] sm:$0xff]  }
  0x10   :  { %v103_v9 = vld [vmem:[%s9408_s7 + $0x24] sm:$0xf]  ;;  %v105_v10 = vld [vmem:[%s9408_s7 + $0x34] sm:$0xf]  ;;  %102 = vst [vmem:[#allocation2 + $0x24] sm:$0xf] %v101_v8 }
  0x11   :  { %104 = vst [vmem:[#allocation2 + $0x28] sm:$0xf] %v103_v9  ;;  %106 = vst [vmem:[#allocation2 + $0x2c] sm:$0xf] %v105_v10  ;;  %v107_v11 = vld [vmem:[%s9408_s7 + $0x28] sm:$0xf] }
  0x12   :  { %v109_v12 = vld [vmem:[%s9408_s7 + $0x38] sm:$0xf]  ;;  %v111_v13 = vld [vmem:[%s9408_s7 + $0x2c] sm:$0xf]  ;;  %108 = vst [vmem:[#allocation2 + $0x30] sm:$0xf] %v107_v11 }
  0x13   :  { %110 = vst [vmem:[#allocation2 + $0x34] sm:$0xf] %v109_v12  ;;  %112 = vst [vmem:[#allocation2 + $0x38] sm:$0xf] %v111_v13  ;;  %v117_v15 = vld [vmem:[%s9408_s7 + $0x50] sm:$0xf] }
  0x14   :  { %v119_v16 = vld [vmem:[%s9408_s7 + $0x44] sm:$0xf]  ;;  %114 = vst [vmem:[#allocation2 + $0x3c] sm:$0xff] %v113_v14   ;;  %118 = vst [vmem:[#allocation2 + $0x44] sm:$0xf] %v117_v15  ;;  %v129_v21 = vld [vmem:[%s9408_s7 + $0x5c] sm:$0xff]  }
  0x15   :  { %120 = vst [vmem:[#allocation2 + $0x48] sm:$0xf] %v119_v16  ;;  %v121_v17 = vld [vmem:[%s9408_s7 + $0x54] sm:$0xf]  ;;  %v123_v18 = vld [vmem:[%s9408_s7 + $0x48] sm:$0xf] }
  0x16   :  { %v125_v19 = vld [vmem:[%s9408_s7 + $0x58] sm:$0xf]  ;;  %122 = vst [vmem:[#allocation2 + $0x4c] sm:$0xf] %v121_v17  ;;  %124 = vst [vmem:[#allocation2 + $0x50] sm:$0xf] %v123_v18 }
  0x17   :  { %126 = vst [vmem:[#allocation2 + $0x54] sm:$0xf] %v125_v19  ;;  %v127_v20 = vld [vmem:[%s9408_s7 + $0x4c] sm:$0xf]  ;;  %v133_v22 = vld [vmem:[%s9408_s7 + $0x70] sm:$0xf] }
  0x18   :  { %128 = vst [vmem:[#allocation2 + $0x58] sm:$0xf] %v127_v20  ;;  %130 = vst [vmem:[#allocation2 + $0x5c] sm:$0xff] %v129_v21   ;;  %v135_v23 = vld [vmem:[%s9408_s7 + $0x64] sm:$0xf]  ;;  %v145_v28 = vld [vmem:[%s9408_s7 + $0x7c] sm:$0xff]  }
  0x19   :  { %134 = vst [vmem:[#allocation2 + $0x64] sm:$0xf] %v133_v22  ;;  %v137_v24 = vld [vmem:[%s9408_s7 + $0x74] sm:$0xf]  ;;  %v139_v25 = vld [vmem:[%s9408_s7 + $0x68] sm:$0xf] }
  0x1a   :  { %136 = vst [vmem:[#allocation2 + $0x68] sm:$0xf] %v135_v23  ;;  %138 = vst [vmem:[#allocation2 + $0x6c] sm:$0xf] %v137_v24  ;;  %v141_v26 = vld [vmem:[%s9408_s7 + $0x78] sm:$0xf] }
  0x1b   :  { %140 = vst [vmem:[#allocation2 + $0x70] sm:$0xf] %v139_v25  ;;  %v143_v27 = vld [vmem:[%s9408_s7 + $0x6c] sm:$0xf]  ;;  %142 = vst [vmem:[#allocation2 + $0x74] sm:$0xf] %v141_v26 }
  0x1c   :  { %144 = vst [vmem:[#allocation2 + $0x78] sm:$0xf] %v143_v27  ;;  %146 = vst [vmem:[#allocation2 + $0x7c] sm:$0xff] %v145_v28   ;;  %v149_v29 = vld [vmem:[%s9408_s7 + $0x90] sm:$0xf]  ;;  %v161_v35 = vld [vmem:[%s9408_s7 + $0x9c] sm:$0xff]  }
  0x1d   :  { %v151_v30 = vld [vmem:[%s9408_s7 + $0x84] sm:$0xf]  ;;  %v153_v31 = vld [vmem:[%s9408_s7 + $0x94] sm:$0xf]  ;;  %150 = vst [vmem:[#allocation2 + $0x84] sm:$0xf] %v149_v29 }
  0x1e   :  { %152 = vst [vmem:[#allocation2 + $0x88] sm:$0xf] %v151_v30  ;;  %154 = vst [vmem:[#allocation2 + $0x8c] sm:$0xf] %v153_v31  ;;  %v155_v32 = vld [vmem:[%s9408_s7 + $0x88] sm:$0xf] }
  0x1f   :  { %v157_v33 = vld [vmem:[%s9408_s7 + $0x98] sm:$0xf]  ;;  %v159_v34 = vld [vmem:[%s9408_s7 + $0x8c] sm:$0xf]  ;;  %156 = vst [vmem:[#allocation2 + $0x90] sm:$0xf] %v155_v32 }
  0x20   :  { %158 = vst [vmem:[#allocation2 + $0x94] sm:$0xf] %v157_v33  ;;  %160 = vst [vmem:[#allocation2 + $0x98] sm:$0xf] %v159_v34  ;;  %v165_v36 = vld [vmem:[%s9408_s7 + $0xb0] sm:$0xf] }
  0x21   :  { %v167_v37 = vld [vmem:[%s9408_s7 + $0xa4] sm:$0xf]  ;;  %162 = vst [vmem:[#allocation2 + $0x9c] sm:$0xff] %v161_v35   ;;  %166 = vst [vmem:[#allocation2 + $0xa4] sm:$0xf] %v165_v36  ;;  %v177_v42 = vld [vmem:[%s9408_s7 + $0xbc] sm:$0xff]  }
  0x22   :  { %168 = vst [vmem:[#allocation2 + $0xa8] sm:$0xf] %v167_v37  ;;  %v169_v38 = vld [vmem:[%s9408_s7 + $0xb4] sm:$0xf]  ;;  %v171_v39 = vld [vmem:[%s9408_s7 + $0xa8] sm:$0xf] }
  0x23   :  { %v173_v40 = vld [vmem:[%s9408_s7 + $0xb8] sm:$0xf]  ;;  %170 = vst [vmem:[#allocation2 + $0xac] sm:$0xf] %v169_v38  ;;  %172 = vst [vmem:[#allocation2 + $0xb0] sm:$0xf] %v171_v39 }
  0x24   :  { %174 = vst [vmem:[#allocation2 + $0xb4] sm:$0xf] %v173_v40  ;;  %v175_v41 = vld [vmem:[%s9408_s7 + $0xac] sm:$0xf]  ;;  %v181_v43 = vld [vmem:[%s9408_s7 + $0xd0] sm:$0xf] }
  0x25   :  { %176 = vst [vmem:[#allocation2 + $0xb8] sm:$0xf] %v175_v41  ;;  %178 = vst [vmem:[#allocation2 + $0xbc] sm:$0xff] %v177_v42   ;;  %v183_v44 = vld [vmem:[%s9408_s7 + $0xc4] sm:$0xf]  ;;  %v193_v49 = vld [vmem:[%s9408_s7 + $0xdc] sm:$0xff]  }
  0x26   :  { %182 = vst [vmem:[#allocation2 + $0xc4] sm:$0xf] %v181_v43  ;;  %v185_v45 = vld [vmem:[%s9408_s7 + $0xd4] sm:$0xf]  ;;  %v187_v46 = vld [vmem:[%s9408_s7 + $0xc8] sm:$0xf] }
  0x27   :  { %184 = vst [vmem:[#allocation2 + $0xc8] sm:$0xf] %v183_v44  ;;  %186 = vst [vmem:[#allocation2 + $0xcc] sm:$0xf] %v185_v45  ;;  %v189_v47 = vld [vmem:[%s9408_s7 + $0xd8] sm:$0xf] }
  0x28   :  { %188 = vst [vmem:[#allocation2 + $0xd0] sm:$0xf] %v187_v46  ;;  %v191_v48 = vld [vmem:[%s9408_s7 + $0xcc] sm:$0xf]  ;;  %190 = vst [vmem:[#allocation2 + $0xd4] sm:$0xf] %v189_v47 }
  0x29   :  { %192 = vst [vmem:[#allocation2 + $0xd8] sm:$0xf] %v191_v48  ;;  %194 = vst [vmem:[#allocation2 + $0xdc] sm:$0xff] %v193_v49   ;;  %v197_v50 = vld [vmem:[%s9408_s7 + $0xf0] sm:$0xf]  ;;  %v209_v56 = vld [vmem:[%s9408_s7 + $0xfc] sm:$0xff]  }
  0x2a   :  { %v199_v51 = vld [vmem:[%s9408_s7 + $0xe4] sm:$0xf]  ;;  %v201_v52 = vld [vmem:[%s9408_s7 + $0xf4] sm:$0xf]  ;;  %198 = vst [vmem:[#allocation2 + $0xe4] sm:$0xf] %v197_v50 }
  0x2b   :  { %200 = vst [vmem:[#allocation2 + $0xe8] sm:$0xf] %v199_v51  ;;  %202 = vst [vmem:[#allocation2 + $0xec] sm:$0xf] %v201_v52  ;;  %v203_v53 = vld [vmem:[%s9408_s7 + $0xe8] sm:$0xf] }
  0x2c   :  { %v205_v54 = vld [vmem:[%s9408_s7 + $0xf8] sm:$0xf]  ;;  %v207_v55 = vld [vmem:[%s9408_s7 + $0xec] sm:$0xf]  ;;  %204 = vst [vmem:[#allocation2 + $0xf0] sm:$0xf] %v203_v53 }
  0x2d   :  { %206 = vst [vmem:[#allocation2 + $0xf4] sm:$0xf] %v205_v54  ;;  %208 = vst [vmem:[#allocation2 + $0xf8] sm:$0xf] %v207_v55  ;;  %v213_v57 = vld [vmem:[%s9408_s7 + $0x110] sm:$0xf] }
  0x2e   :  { %v215_v58 = vld [vmem:[%s9408_s7 + $0x104] sm:$0xf]  ;;  %210 = vst [vmem:[#allocation2 + $0xfc] sm:$0xff] %v209_v56   ;;  %214 = vst [vmem:[#allocation2 + $0x104] sm:$0xf] %v213_v57  ;;  %v225_v63 = vld [vmem:[%s9408_s7 + $0x11c] sm:$0xff]  }
  0x2f   :  { %216 = vst [vmem:[#allocation2 + $0x108] sm:$0xf] %v215_v58  ;;  %v217_v59 = vld [vmem:[%s9408_s7 + $0x114] sm:$0xf]  ;;  %v219_v60 = vld [vmem:[%s9408_s7 + $0x108] sm:$0xf] }
  0x30   :  { %v221_v61 = vld [vmem:[%s9408_s7 + $0x118] sm:$0xf]  ;;  %218 = vst [vmem:[#allocation2 + $0x10c] sm:$0xf] %v217_v59  ;;  %220 = vst [vmem:[#allocation2 + $0x110] sm:$0xf] %v219_v60 }
  0x31   :  { %222 = vst [vmem:[#allocation2 + $0x114] sm:$0xf] %v221_v61  ;;  %v223_v62 = vld [vmem:[%s9408_s7 + $0x10c] sm:$0xf]  ;;  %v229_v0 = vld [vmem:[%s9408_s7 + $0x130] sm:$0xf] }
  0x32   :  { %224 = vst [vmem:[#allocation2 + $0x118] sm:$0xf] %v223_v62  ;;  %226 = vst [vmem:[#allocation2 + $0x11c] sm:$0xff] %v225_v63   ;;  %v231_v1 = vld [vmem:[%s9408_s7 + $0x124] sm:$0xf]  ;;  %v241_v6 = vld [vmem:[%s9408_s7 + $0x13c] sm:$0xff]  }
  0x33   :  { %230 = vst [vmem:[#allocation2 + $0x124] sm:$0xf] %v229_v0  ;;  %v233_v2 = vld [vmem:[%s9408_s7 + $0x134] sm:$0xf]  ;;  %v235_v3 = vld [vmem:[%s9408_s7 + $0x128] sm:$0xf] }
  0x34   :  { %232 = vst [vmem:[#allocation2 + $0x128] sm:$0xf] %v231_v1  ;;  %234 = vst [vmem:[#allocation2 + $0x12c] sm:$0xf] %v233_v2  ;;  %v237_v4 = vld [vmem:[%s9408_s7 + $0x138] sm:$0xf] }
  0x35   :  { %236 = vst [vmem:[#allocation2 + $0x130] sm:$0xf] %v235_v3  ;;  %v239_v5 = vld [vmem:[%s9408_s7 + $0x12c] sm:$0xf]  ;;  %238 = vst [vmem:[#allocation2 + $0x134] sm:$0xf] %v237_v4 }
  0x36   :  { %240 = vst [vmem:[#allocation2 + $0x138] sm:$0xf] %v239_v5  ;;  %242 = vst [vmem:[#allocation2 + $0x13c] sm:$0xff] %v241_v6   ;;  %v245_v7 = vld [vmem:[%s9408_s7 + $0x150] sm:$0xf]  ;;  %v257_v13 = vld [vmem:[%s9408_s7 + $0x15c] sm:$0xff]  }
  0x37   :  { %v247_v8 = vld [vmem:[%s9408_s7 + $0x144] sm:$0xf]  ;;  %v249_v9 = vld [vmem:[%s9408_s7 + $0x154] sm:$0xf]  ;;  %246 = vst [vmem:[#allocation2 + $0x144] sm:$0xf] %v245_v7 }
  0x38   :  { %248 = vst [vmem:[#allocation2 + $0x148] sm:$0xf] %v247_v8  ;;  %250 = vst [vmem:[#allocation2 + $0x14c] sm:$0xf] %v249_v9  ;;  %v251_v10 = vld [vmem:[%s9408_s7 + $0x148] sm:$0xf] }
  0x39   :  { %v253_v11 = vld [vmem:[%s9408_s7 + $0x158] sm:$0xf]  ;;  %v255_v12 = vld [vmem:[%s9408_s7 + $0x14c] sm:$0xf]  ;;  %252 = vst [vmem:[#allocation2 + $0x150] sm:$0xf] %v251_v10 }
  0x3a   :  { %254 = vst [vmem:[#allocation2 + $0x154] sm:$0xf] %v253_v11  ;;  %256 = vst [vmem:[#allocation2 + $0x158] sm:$0xf] %v255_v12  ;;  %v261_v14 = vld [vmem:[%s9408_s7 + $0x170] sm:$0xf] }
  0x3b   :  { %v263_v15 = vld [vmem:[%s9408_s7 + $0x164] sm:$0xf]  ;;  %258 = vst [vmem:[#allocation2 + $0x15c] sm:$0xff] %v257_v13   ;;  %262 = vst [vmem:[#allocation2 + $0x164] sm:$0xf] %v261_v14  ;;  %v273_v20 = vld [vmem:[%s9408_s7 + $0x17c] sm:$0xff]  }
  0x3c   :  { %264 = vst [vmem:[#allocation2 + $0x168] sm:$0xf] %v263_v15  ;;  %v265_v16 = vld [vmem:[%s9408_s7 + $0x174] sm:$0xf]  ;;  %v267_v17 = vld [vmem:[%s9408_s7 + $0x168] sm:$0xf] }
  0x3d   :  { %v269_v18 = vld [vmem:[%s9408_s7 + $0x178] sm:$0xf]  ;;  %266 = vst [vmem:[#allocation2 + $0x16c] sm:$0xf] %v265_v16  ;;  %268 = vst [vmem:[#allocation2 + $0x170] sm:$0xf] %v267_v17 }
  0x3e   :  { %270 = vst [vmem:[#allocation2 + $0x174] sm:$0xf] %v269_v18  ;;  %v271_v19 = vld [vmem:[%s9408_s7 + $0x16c] sm:$0xf]  ;;  %v277_v21 = vld [vmem:[%s9408_s7 + $0x190] sm:$0xf] }
  0x3f   :  { %272 = vst [vmem:[#allocation2 + $0x178] sm:$0xf] %v271_v19  ;;  %274 = vst [vmem:[#allocation2 + $0x17c] sm:$0xff] %v273_v20   ;;  %v279_v22 = vld [vmem:[%s9408_s7 + $0x184] sm:$0xf]  ;;  %v289_v27 = vld [vmem:[%s9408_s7 + $0x19c] sm:$0xff]  }
  0x40   :  { %278 = vst [vmem:[#allocation2 + $0x184] sm:$0xf] %v277_v21  ;;  %v281_v23 = vld [vmem:[%s9408_s7 + $0x194] sm:$0xf]  ;;  %v283_v24 = vld [vmem:[%s9408_s7 + $0x188] sm:$0xf] }
  0x41   :  { %280 = vst [vmem:[#allocation2 + $0x188] sm:$0xf] %v279_v22  ;;  %282 = vst [vmem:[#allocation2 + $0x18c] sm:$0xf] %v281_v23  ;;  %v285_v25 = vld [vmem:[%s9408_s7 + $0x198] sm:$0xf] }
  0x42   :  { %284 = vst [vmem:[#allocation2 + $0x190] sm:$0xf] %v283_v24  ;;  %v287_v26 = vld [vmem:[%s9408_s7 + $0x18c] sm:$0xf]  ;;  %286 = vst [vmem:[#allocation2 + $0x194] sm:$0xf] %v285_v25 }
  0x43   :  { %288 = vst [vmem:[#allocation2 + $0x198] sm:$0xf] %v287_v26  ;;  %290 = vst [vmem:[#allocation2 + $0x19c] sm:$0xff] %v289_v27   ;;  %v293_v28 = vld [vmem:[%s9408_s7 + $0x1b0] sm:$0xf]  ;;  %v305_v34 = vld [vmem:[%s9408_s7 + $0x1bc] sm:$0xff]  }
  0x44   :  { %v295_v29 = vld [vmem:[%s9408_s7 + $0x1a4] sm:$0xf]  ;;  %v297_v30 = vld [vmem:[%s9408_s7 + $0x1b4] sm:$0xf]  ;;  %294 = vst [vmem:[#allocation2 + $0x1a4] sm:$0xf] %v293_v28 }
  0x45   :  { %296 = vst [vmem:[#allocation2 + $0x1a8] sm:$0xf] %v295_v29  ;;  %298 = vst [vmem:[#allocation2 + $0x1ac] sm:$0xf] %v297_v30  ;;  %v299_v31 = vld [vmem:[%s9408_s7 + $0x1a8] sm:$0xf] }
  0x46   :  { %v301_v32 = vld [vmem:[%s9408_s7 + $0x1b8] sm:$0xf]  ;;  %v303_v33 = vld [vmem:[%s9408_s7 + $0x1ac] sm:$0xf]  ;;  %300 = vst [vmem:[#allocation2 + $0x1b0] sm:$0xf] %v299_v31 }
  0x47   :  { %302 = vst [vmem:[#allocation2 + $0x1b4] sm:$0xf] %v301_v32  ;;  %304 = vst [vmem:[#allocation2 + $0x1b8] sm:$0xf] %v303_v33  ;;  %v309_v35 = vld [vmem:[%s9408_s7 + $0x1d0] sm:$0xf] }
  0x48   :  { %v311_v36 = vld [vmem:[%s9408_s7 + $0x1c4] sm:$0xf]  ;;  %306 = vst [vmem:[#allocation2 + $0x1bc] sm:$0xff] %v305_v34   ;;  %310 = vst [vmem:[#allocation2 + $0x1c4] sm:$0xf] %v309_v35  ;;  %v321_v41 = vld [vmem:[%s9408_s7 + $0x1dc] sm:$0xff]  }
  0x49   :  { %312 = vst [vmem:[#allocation2 + $0x1c8] sm:$0xf] %v311_v36  ;;  %v313_v37 = vld [vmem:[%s9408_s7 + $0x1d4] sm:$0xf]  ;;  %v315_v38 = vld [vmem:[%s9408_s7 + $0x1c8] sm:$0xf] }
  0x4a   :  { %v317_v39 = vld [vmem:[%s9408_s7 + $0x1d8] sm:$0xf]  ;;  %314 = vst [vmem:[#allocation2 + $0x1cc] sm:$0xf] %v313_v37  ;;  %316 = vst [vmem:[#allocation2 + $0x1d0] sm:$0xf] %v315_v38 }
  0x4b   :  { %318 = vst [vmem:[#allocation2 + $0x1d4] sm:$0xf] %v317_v39  ;;  %v319_v40 = vld [vmem:[%s9408_s7 + $0x1cc] sm:$0xf]  ;;  %v325_v42 = vld [vmem:[%s9408_s7 + $0x1f0] sm:$0xf] }
  0x4c   :  { %320 = vst [vmem:[#allocation2 + $0x1d8] sm:$0xf] %v319_v40  ;;  %322 = vst [vmem:[#allocation2 + $0x1dc] sm:$0xff] %v321_v41   ;;  %v327_v43 = vld [vmem:[%s9408_s7 + $0x1e4] sm:$0xf]  ;;  %v337_v48 = vld [vmem:[%s9408_s7 + $0x1fc] sm:$0xff]  }
  0x4d   :  { %326 = vst [vmem:[#allocation2 + $0x1e4] sm:$0xf] %v325_v42  ;;  %v329_v44 = vld [vmem:[%s9408_s7 + $0x1f4] sm:$0xf]  ;;  %v331_v45 = vld [vmem:[%s9408_s7 + $0x1e8] sm:$0xf] }
  0x4e   :  { %328 = vst [vmem:[#allocation2 + $0x1e8] sm:$0xf] %v327_v43  ;;  %330 = vst [vmem:[#allocation2 + $0x1ec] sm:$0xf] %v329_v44  ;;  %v333_v46 = vld [vmem:[%s9408_s7 + $0x1f8] sm:$0xf] }
  0x4f   :  { %332 = vst [vmem:[#allocation2 + $0x1f0] sm:$0xf] %v331_v45  ;;  %v335_v47 = vld [vmem:[%s9408_s7 + $0x1ec] sm:$0xf]  ;;  %334 = vst [vmem:[#allocation2 + $0x1f4] sm:$0xf] %v333_v46 }
  0x50   :  { %336 = vst [vmem:[#allocation2 + $0x1f8] sm:$0xf] %v335_v47  ;;  %338 = vst [vmem:[#allocation2 + $0x1fc] sm:$0xff] %v337_v48   ;;  %v341_v49 = vld [vmem:[%s9408_s7 + $0x210] sm:$0xf]  ;;  %v353_v55 = vld [vmem:[%s9408_s7 + $0x21c] sm:$0xff]  }
  0x51   :  { %v343_v50 = vld [vmem:[%s9408_s7 + $0x204] sm:$0xf]  ;;  %v345_v51 = vld [vmem:[%s9408_s7 + $0x214] sm:$0xf]  ;;  %342 = vst [vmem:[#allocation2 + $0x204] sm:$0xf] %v341_v49 }
  0x52   :  { %344 = vst [vmem:[#allocation2 + $0x208] sm:$0xf] %v343_v50  ;;  %346 = vst [vmem:[#allocation2 + $0x20c] sm:$0xf] %v345_v51  ;;  %v347_v52 = vld [vmem:[%s9408_s7 + $0x208] sm:$0xf] }
  0x53   :  { %v349_v53 = vld [vmem:[%s9408_s7 + $0x218] sm:$0xf]  ;;  %v351_v54 = vld [vmem:[%s9408_s7 + $0x20c] sm:$0xf]  ;;  %348 = vst [vmem:[#allocation2 + $0x210] sm:$0xf] %v347_v52 }
  0x54   :  { %350 = vst [vmem:[#allocation2 + $0x214] sm:$0xf] %v349_v53  ;;  %352 = vst [vmem:[#allocation2 + $0x218] sm:$0xf] %v351_v54  ;;  %v357_v56 = vld [vmem:[%s9408_s7 + $0x230] sm:$0xf] }
  0x55   :  { %v359_v57 = vld [vmem:[%s9408_s7 + $0x224] sm:$0xf]  ;;  %354 = vst [vmem:[#allocation2 + $0x21c] sm:$0xff] %v353_v55   ;;  %358 = vst [vmem:[#allocation2 + $0x224] sm:$0xf] %v357_v56  ;;  %v369_v62 = vld [vmem:[%s9408_s7 + $0x23c] sm:$0xff]  }
  0x56   :  { %360 = vst [vmem:[#allocation2 + $0x228] sm:$0xf] %v359_v57  ;;  %v361_v58 = vld [vmem:[%s9408_s7 + $0x234] sm:$0xf]  ;;  %v363_v59 = vld [vmem:[%s9408_s7 + $0x228] sm:$0xf] }
  0x57   :  { %v365_v60 = vld [vmem:[%s9408_s7 + $0x238] sm:$0xf]  ;;  %362 = vst [vmem:[#allocation2 + $0x22c] sm:$0xf] %v361_v58  ;;  %364 = vst [vmem:[#allocation2 + $0x230] sm:$0xf] %v363_v59 }
  0x58   :  { %366 = vst [vmem:[#allocation2 + $0x234] sm:$0xf] %v365_v60  ;;  %v367_v61 = vld [vmem:[%s9408_s7 + $0x22c] sm:$0xf]  ;;  %v373_v63 = vld [vmem:[%s9408_s7 + $0x250] sm:$0xf] }
  0x59   :  { %368 = vst [vmem:[#allocation2 + $0x238] sm:$0xf] %v367_v61  ;;  %370 = vst [vmem:[#allocation2 + $0x23c] sm:$0xff] %v369_v62   ;;  %v375_v0 = vld [vmem:[%s9408_s7 + $0x244] sm:$0xf]  ;;  %v385_v5 = vld [vmem:[%s9408_s7 + $0x25c] sm:$0xff]  }
  0x5a   :  { %374 = vst [vmem:[#allocation2 + $0x244] sm:$0xf] %v373_v63  ;;  %v377_v1 = vld [vmem:[%s9408_s7 + $0x254] sm:$0xf]  ;;  %v379_v2 = vld [vmem:[%s9408_s7 + $0x248] sm:$0xf] }
  0x5b   :  { %376 = vst [vmem:[#allocation2 + $0x248] sm:$0xf] %v375_v0  ;;  %378 = vst [vmem:[#allocation2 + $0x24c] sm:$0xf] %v377_v1  ;;  %v381_v3 = vld [vmem:[%s9408_s7 + $0x258] sm:$0xf] }
  0x5c   :  { %380 = vst [vmem:[#allocation2 + $0x250] sm:$0xf] %v379_v2  ;;  %v383_v4 = vld [vmem:[%s9408_s7 + $0x24c] sm:$0xf]  ;;  %382 = vst [vmem:[#allocation2 + $0x254] sm:$0xf] %v381_v3 }
  0x5d   :  { %384 = vst [vmem:[#allocation2 + $0x258] sm:$0xf] %v383_v4  ;;  %386 = vst [vmem:[#allocation2 + $0x25c] sm:$0xff] %v385_v5   ;;  %v389_v6 = vld [vmem:[%s9408_s7 + $0x270] sm:$0xf]  ;;  %v401_v12 = vld [vmem:[%s9408_s7 + $0x27c] sm:$0xff]  }
  0x5e   :  { %v391_v7 = vld [vmem:[%s9408_s7 + $0x264] sm:$0xf]  ;;  %v393_v8 = vld [vmem:[%s9408_s7 + $0x274] sm:$0xf]  ;;  %390 = vst [vmem:[#allocation2 + $0x264] sm:$0xf] %v389_v6 }
  0x5f   :  { %392 = vst [vmem:[#allocation2 + $0x268] sm:$0xf] %v391_v7  ;;  %394 = vst [vmem:[#allocation2 + $0x26c] sm:$0xf] %v393_v8  ;;  %v395_v9 = vld [vmem:[%s9408_s7 + $0x268] sm:$0xf] }
  0x60   :  { %v397_v10 = vld [vmem:[%s9408_s7 + $0x278] sm:$0xf]  ;;  %v399_v11 = vld [vmem:[%s9408_s7 + $0x26c] sm:$0xf]  ;;  %396 = vst [vmem:[#allocation2 + $0x270] sm:$0xf] %v395_v9 }
  0x61   :  { %398 = vst [vmem:[#allocation2 + $0x274] sm:$0xf] %v397_v10  ;;  %400 = vst [vmem:[#allocation2 + $0x278] sm:$0xf] %v399_v11  ;;  %v405_v13 = vld [vmem:[%s9408_s7 + $0x290] sm:$0xf] }
  0x62   :  { %v407_v14 = vld [vmem:[%s9408_s7 + $0x284] sm:$0xf]  ;;  %402 = vst [vmem:[#allocation2 + $0x27c] sm:$0xff] %v401_v12   ;;  %406 = vst [vmem:[#allocation2 + $0x284] sm:$0xf] %v405_v13  ;;  %v417_v19 = vld [vmem:[%s9408_s7 + $0x29c] sm:$0xff]  }
  0x63   :  { %408 = vst [vmem:[#allocation2 + $0x288] sm:$0xf] %v407_v14  ;;  %v409_v15 = vld [vmem:[%s9408_s7 + $0x294] sm:$0xf]  ;;  %v411_v16 = vld [vmem:[%s9408_s7 + $0x288] sm:$0xf] }
  0x64   :  { %v413_v17 = vld [vmem:[%s9408_s7 + $0x298] sm:$0xf]  ;;  %410 = vst [vmem:[#allocation2 + $0x28c] sm:$0xf] %v409_v15  ;;  %412 = vst [vmem:[#allocation2 + $0x290] sm:$0xf] %v411_v16 }
  0x65   :  { %414 = vst [vmem:[#allocation2 + $0x294] sm:$0xf] %v413_v17  ;;  %v415_v18 = vld [vmem:[%s9408_s7 + $0x28c] sm:$0xf]  ;;  %v421_v20 = vld [vmem:[%s9408_s7 + $0x2b0] sm:$0xf] }
  0x66   :  { %416 = vst [vmem:[#allocation2 + $0x298] sm:$0xf] %v415_v18  ;;  %418 = vst [vmem:[#allocation2 + $0x29c] sm:$0xff] %v417_v19   ;;  %v423_v21 = vld [vmem:[%s9408_s7 + $0x2a4] sm:$0xf]  ;;  %v433_v26 = vld [vmem:[%s9408_s7 + $0x2bc] sm:$0xff]  }
  0x67   :  { %422 = vst [vmem:[#allocation2 + $0x2a4] sm:$0xf] %v421_v20  ;;  %v425_v22 = vld [vmem:[%s9408_s7 + $0x2b4] sm:$0xf]  ;;  %v427_v23 = vld [vmem:[%s9408_s7 + $0x2a8] sm:$0xf] }
  0x68   :  { %424 = vst [vmem:[#allocation2 + $0x2a8] sm:$0xf] %v423_v21  ;;  %426 = vst [vmem:[#allocation2 + $0x2ac] sm:$0xf] %v425_v22  ;;  %v429_v24 = vld [vmem:[%s9408_s7 + $0x2b8] sm:$0xf] }
  0x69   :  { %428 = vst [vmem:[#allocation2 + $0x2b0] sm:$0xf] %v427_v23  ;;  %v431_v25 = vld [vmem:[%s9408_s7 + $0x2ac] sm:$0xf]  ;;  %430 = vst [vmem:[#allocation2 + $0x2b4] sm:$0xf] %v429_v24 }
  0x6a   :  { %432 = vst [vmem:[#allocation2 + $0x2b8] sm:$0xf] %v431_v25  ;;  %434 = vst [vmem:[#allocation2 + $0x2bc] sm:$0xff] %v433_v26   ;;  %v437_v27 = vld [vmem:[%s9408_s7 + $0x2d0] sm:$0xf]  ;;  %v449_v33 = vld [vmem:[%s9408_s7 + $0x2dc] sm:$0xff]  }
  0x6b   :  { %v439_v28 = vld [vmem:[%s9408_s7 + $0x2c4] sm:$0xf]  ;;  %v441_v29 = vld [vmem:[%s9408_s7 + $0x2d4] sm:$0xf]  ;;  %438 = vst [vmem:[#allocation2 + $0x2c4] sm:$0xf] %v437_v27 }
  0x6c   :  { %440 = vst [vmem:[#allocation2 + $0x2c8] sm:$0xf] %v439_v28  ;;  %442 = vst [vmem:[#allocation2 + $0x2cc] sm:$0xf] %v441_v29  ;;  %v443_v30 = vld [vmem:[%s9408_s7 + $0x2c8] sm:$0xf] }
  0x6d   :  { %v445_v31 = vld [vmem:[%s9408_s7 + $0x2d8] sm:$0xf]  ;;  %v447_v32 = vld [vmem:[%s9408_s7 + $0x2cc] sm:$0xf]  ;;  %444 = vst [vmem:[#allocation2 + $0x2d0] sm:$0xf] %v443_v30 }
  0x6e   :  { %446 = vst [vmem:[#allocation2 + $0x2d4] sm:$0xf] %v445_v31  ;;  %448 = vst [vmem:[#allocation2 + $0x2d8] sm:$0xf] %v447_v32  ;;  %v453_v34 = vld [vmem:[%s9408_s7 + $0x2f0] sm:$0xf] }
  0x6f   :  { %v455_v35 = vld [vmem:[%s9408_s7 + $0x2e4] sm:$0xf]  ;;  %450 = vst [vmem:[#allocation2 + $0x2dc] sm:$0xff] %v449_v33   ;;  %454 = vst [vmem:[#allocation2 + $0x2e4] sm:$0xf] %v453_v34  ;;  %v465_v40 = vld [vmem:[%s9408_s7 + $0x2fc] sm:$0xff]  }
  0x70   :  { %456 = vst [vmem:[#allocation2 + $0x2e8] sm:$0xf] %v455_v35  ;;  %v457_v36 = vld [vmem:[%s9408_s7 + $0x2f4] sm:$0xf]  ;;  %v459_v37 = vld [vmem:[%s9408_s7 + $0x2e8] sm:$0xf] }
  0x71   :  { %v461_v38 = vld [vmem:[%s9408_s7 + $0x2f8] sm:$0xf]  ;;  %458 = vst [vmem:[#allocation2 + $0x2ec] sm:$0xf] %v457_v36  ;;  %460 = vst [vmem:[#allocation2 + $0x2f0] sm:$0xf] %v459_v37 }
  0x72   :  { %462 = vst [vmem:[#allocation2 + $0x2f4] sm:$0xf] %v461_v38  ;;  %v463_v39 = vld [vmem:[%s9408_s7 + $0x2ec] sm:$0xf]  ;;  %v469_v41 = vld [vmem:[%s9408_s7 + $0x310] sm:$0xf] }
  0x73   :  { %464 = vst [vmem:[#allocation2 + $0x2f8] sm:$0xf] %v463_v39  ;;  %466 = vst [vmem:[#allocation2 + $0x2fc] sm:$0xff] %v465_v40   ;;  %v471_v42 = vld [vmem:[%s9408_s7 + $0x304] sm:$0xf]  ;;  %v481_v47 = vld [vmem:[%s9408_s7 + $0x31c] sm:$0xff]  }
  0x74   :  { %470 = vst [vmem:[#allocation2 + $0x304] sm:$0xf] %v469_v41  ;;  %v473_v43 = vld [vmem:[%s9408_s7 + $0x314] sm:$0xf]  ;;  %v475_v44 = vld [vmem:[%s9408_s7 + $0x308] sm:$0xf] }
  0x75   :  { %472 = vst [vmem:[#allocation2 + $0x308] sm:$0xf] %v471_v42  ;;  %474 = vst [vmem:[#allocation2 + $0x30c] sm:$0xf] %v473_v43  ;;  %v477_v45 = vld [vmem:[%s9408_s7 + $0x318] sm:$0xf] }
  0x76   :  { %476 = vst [vmem:[#allocation2 + $0x310] sm:$0xf] %v475_v44  ;;  %v479_v46 = vld [vmem:[%s9408_s7 + $0x30c] sm:$0xf]  ;;  %478 = vst [vmem:[#allocation2 + $0x314] sm:$0xf] %v477_v45 }
  0x77   :  { %480 = vst [vmem:[#allocation2 + $0x318] sm:$0xf] %v479_v46  ;;  %482 = vst [vmem:[#allocation2 + $0x31c] sm:$0xff] %v481_v47   ;;  %v485_v48 = vld [vmem:[%s9408_s7 + $0x330] sm:$0xf]  ;;  %v497_v54 = vld [vmem:[%s9408_s7 + $0x33c] sm:$0xff]  }
  0x78   :  { %v487_v49 = vld [vmem:[%s9408_s7 + $0x324] sm:$0xf]  ;;  %v489_v50 = vld [vmem:[%s9408_s7 + $0x334] sm:$0xf]  ;;  %486 = vst [vmem:[#allocation2 + $0x324] sm:$0xf] %v485_v48 }
  0x79   :  { %488 = vst [vmem:[#allocation2 + $0x328] sm:$0xf] %v487_v49  ;;  %490 = vst [vmem:[#allocation2 + $0x32c] sm:$0xf] %v489_v50  ;;  %v491_v51 = vld [vmem:[%s9408_s7 + $0x328] sm:$0xf] }
  0x7a   :  { %v493_v52 = vld [vmem:[%s9408_s7 + $0x338] sm:$0xf]  ;;  %v495_v53 = vld [vmem:[%s9408_s7 + $0x32c] sm:$0xf]  ;;  %492 = vst [vmem:[#allocation2 + $0x330] sm:$0xf] %v491_v51 }
  0x7b   :  { %494 = vst [vmem:[#allocation2 + $0x334] sm:$0xf] %v493_v52  ;;  %496 = vst [vmem:[#allocation2 + $0x338] sm:$0xf] %v495_v53  ;;  %v501_v55 = vld [vmem:[%s9408_s7 + $0x350] sm:$0xf] }
  0x7c   :  { %v503_v56 = vld [vmem:[%s9408_s7 + $0x344] sm:$0xf]  ;;  %498 = vst [vmem:[#allocation2 + $0x33c] sm:$0xff] %v497_v54   ;;  %502 = vst [vmem:[#allocation2 + $0x344] sm:$0xf] %v501_v55  ;;  %v513_v61 = vld [vmem:[%s9408_s7 + $0x35c] sm:$0xff]  }
  0x7d   :  { %504 = vst [vmem:[#allocation2 + $0x348] sm:$0xf] %v503_v56  ;;  %v505_v57 = vld [vmem:[%s9408_s7 + $0x354] sm:$0xf]  ;;  %v507_v58 = vld [vmem:[%s9408_s7 + $0x348] sm:$0xf] }
  0x7e   :  { %v509_v59 = vld [vmem:[%s9408_s7 + $0x358] sm:$0xf]  ;;  %506 = vst [vmem:[#allocation2 + $0x34c] sm:$0xf] %v505_v57  ;;  %508 = vst [vmem:[#allocation2 + $0x350] sm:$0xf] %v507_v58 }
  0x7f   :  { %510 = vst [vmem:[#allocation2 + $0x354] sm:$0xf] %v509_v59  ;;  %v511_v60 = vld [vmem:[%s9408_s7 + $0x34c] sm:$0xf]  ;;  %v517_v62 = vld [vmem:[%s9408_s7 + $0x370] sm:$0xf] }
  0x80   :  { %512 = vst [vmem:[#allocation2 + $0x358] sm:$0xf] %v511_v60  ;;  %514 = vst [vmem:[#allocation2 + $0x35c] sm:$0xff] %v513_v61   ;;  %v519_v63 = vld [vmem:[%s9408_s7 + $0x364] sm:$0xf]  ;;  %v529_v4 = vld [vmem:[%s9408_s7 + $0x37c] sm:$0xff]  }
  0x81   :  { %518 = vst [vmem:[#allocation2 + $0x364] sm:$0xf] %v517_v62  ;;  %v521_v0 = vld [vmem:[%s9408_s7 + $0x374] sm:$0xf]  ;;  %v523_v1 = vld [vmem:[%s9408_s7 + $0x368] sm:$0xf] }
  0x82   :  { %520 = vst [vmem:[#allocation2 + $0x368] sm:$0xf] %v519_v63  ;;  %522 = vst [vmem:[#allocation2 + $0x36c] sm:$0xf] %v521_v0  ;;  %v525_v2 = vld [vmem:[%s9408_s7 + $0x378] sm:$0xf] }
  0x83   :  { %524 = vst [vmem:[#allocation2 + $0x370] sm:$0xf] %v523_v1  ;;  %v527_v3 = vld [vmem:[%s9408_s7 + $0x36c] sm:$0xf]  ;;  %526 = vst [vmem:[#allocation2 + $0x374] sm:$0xf] %v525_v2 }
  0x84   :  { %528 = vst [vmem:[#allocation2 + $0x378] sm:$0xf] %v527_v3  ;;  %530 = vst [vmem:[#allocation2 + $0x37c] sm:$0xff] %v529_v4   ;;  %v533_v5 = vld [vmem:[%s9408_s7 + $0x390] sm:$0xf]  ;;  %v545_v11 = vld [vmem:[%s9408_s7 + $0x39c] sm:$0xff]  }
  0x85   :  { %v535_v6 = vld [vmem:[%s9408_s7 + $0x384] sm:$0xf]  ;;  %v537_v7 = vld [vmem:[%s9408_s7 + $0x394] sm:$0xf]  ;;  %534 = vst [vmem:[#allocation2 + $0x384] sm:$0xf] %v533_v5 }
  0x86   :  { %536 = vst [vmem:[#allocation2 + $0x388] sm:$0xf] %v535_v6  ;;  %538 = vst [vmem:[#allocation2 + $0x38c] sm:$0xf] %v537_v7  ;;  %v539_v8 = vld [vmem:[%s9408_s7 + $0x388] sm:$0xf] }
  0x87   :  { %v541_v9 = vld [vmem:[%s9408_s7 + $0x398] sm:$0xf]  ;;  %v543_v10 = vld [vmem:[%s9408_s7 + $0x38c] sm:$0xf]  ;;  %540 = vst [vmem:[#allocation2 + $0x390] sm:$0xf] %v539_v8 }
  0x88   :  { %542 = vst [vmem:[#allocation2 + $0x394] sm:$0xf] %v541_v9  ;;  %544 = vst [vmem:[#allocation2 + $0x398] sm:$0xf] %v543_v10  ;;  %v549_v12 = vld [vmem:[%s9408_s7 + $0x3b0] sm:$0xf] }
  0x89   :  { %v551_v13 = vld [vmem:[%s9408_s7 + $0x3a4] sm:$0xf]  ;;  %546 = vst [vmem:[#allocation2 + $0x39c] sm:$0xff] %v545_v11   ;;  %550 = vst [vmem:[#allocation2 + $0x3a4] sm:$0xf] %v549_v12  ;;  %v561_v18 = vld [vmem:[%s9408_s7 + $0x3bc] sm:$0xff]  }
  0x8a   :  { %552 = vst [vmem:[#allocation2 + $0x3a8] sm:$0xf] %v551_v13  ;;  %v553_v14 = vld [vmem:[%s9408_s7 + $0x3b4] sm:$0xf]  ;;  %v555_v15 = vld [vmem:[%s9408_s7 + $0x3a8] sm:$0xf] }
  0x8b   :  { %v557_v16 = vld [vmem:[%s9408_s7 + $0x3b8] sm:$0xf]  ;;  %554 = vst [vmem:[#allocation2 + $0x3ac] sm:$0xf] %v553_v14  ;;  %556 = vst [vmem:[#allocation2 + $0x3b0] sm:$0xf] %v555_v15 }
  0x8c   :  { %558 = vst [vmem:[#allocation2 + $0x3b4] sm:$0xf] %v557_v16  ;;  %v559_v17 = vld [vmem:[%s9408_s7 + $0x3ac] sm:$0xf]  ;;  %v565_v19 = vld [vmem:[%s9408_s7 + $0x3d0] sm:$0xf] }
  0x8d   :  { %560 = vst [vmem:[#allocation2 + $0x3b8] sm:$0xf] %v559_v17  ;;  %562 = vst [vmem:[#allocation2 + $0x3bc] sm:$0xff] %v561_v18   ;;  %v567_v20 = vld [vmem:[%s9408_s7 + $0x3c4] sm:$0xf]  ;;  %v577_v25 = vld [vmem:[%s9408_s7 + $0x3dc] sm:$0xff]  }
  0x8e   :  { %566 = vst [vmem:[#allocation2 + $0x3c4] sm:$0xf] %v565_v19  ;;  %v569_v21 = vld [vmem:[%s9408_s7 + $0x3d4] sm:$0xf]  ;;  %v571_v22 = vld [vmem:[%s9408_s7 + $0x3c8] sm:$0xf] }
  0x8f   :  { %568 = vst [vmem:[#allocation2 + $0x3c8] sm:$0xf] %v567_v20  ;;  %570 = vst [vmem:[#allocation2 + $0x3cc] sm:$0xf] %v569_v21  ;;  %v573_v23 = vld [vmem:[%s9408_s7 + $0x3d8] sm:$0xf] }
  0x90   :  { %572 = vst [vmem:[#allocation2 + $0x3d0] sm:$0xf] %v571_v22  ;;  %v575_v24 = vld [vmem:[%s9408_s7 + $0x3cc] sm:$0xf]  ;;  %574 = vst [vmem:[#allocation2 + $0x3d4] sm:$0xf] %v573_v23 }
  0x91   :  { %576 = vst [vmem:[#allocation2 + $0x3d8] sm:$0xf] %v575_v24  ;;  %578 = vst [vmem:[#allocation2 + $0x3dc] sm:$0xff] %v577_v25   ;;  %v581_v26 = vld [vmem:[%s9408_s7 + $0x3f0] sm:$0xf]  ;;  %v593_v32 = vld [vmem:[%s9408_s7 + $0x3fc] sm:$0xff]  }
  0x92   :  { %v583_v27 = vld [vmem:[%s9408_s7 + $0x3e4] sm:$0xf]  ;;  %v585_v28 = vld [vmem:[%s9408_s7 + $0x3f4] sm:$0xf]  ;;  %582 = vst [vmem:[#allocation2 + $0x3e4] sm:$0xf] %v581_v26 }
  0x93   :  { %584 = vst [vmem:[#allocation2 + $0x3e8] sm:$0xf] %v583_v27  ;;  %586 = vst [vmem:[#allocation2 + $0x3ec] sm:$0xf] %v585_v28  ;;  %v587_v29 = vld [vmem:[%s9408_s7 + $0x3e8] sm:$0xf] }
  0x94   :  { %v589_v30 = vld [vmem:[%s9408_s7 + $0x3f8] sm:$0xf]  ;;  %v591_v31 = vld [vmem:[%s9408_s7 + $0x3ec] sm:$0xf]  ;;  %588 = vst [vmem:[#allocation2 + $0x3f0] sm:$0xf] %v587_v29 }
  0x95   :  { %590 = vst [vmem:[#allocation2 + $0x3f4] sm:$0xf] %v589_v30  ;;  %592 = vst [vmem:[#allocation2 + $0x3f8] sm:$0xf] %v591_v31  ;;  %v597_v33 = vld [vmem:[%s9408_s7 + $0x410] sm:$0xf] }
  0x96   :  { %v599_v34 = vld [vmem:[%s9408_s7 + $0x404] sm:$0xf]  ;;  %594 = vst [vmem:[#allocation2 + $0x3fc] sm:$0xff] %v593_v32   ;;  %598 = vst [vmem:[#allocation2 + $0x404] sm:$0xf] %v597_v33  ;;  %v609_v39 = vld [vmem:[%s9408_s7 + $0x41c] sm:$0xff]  }
  0x97   :  { %600 = vst [vmem:[#allocation2 + $0x408] sm:$0xf] %v599_v34  ;;  %v601_v35 = vld [vmem:[%s9408_s7 + $0x414] sm:$0xf]  ;;  %v603_v36 = vld [vmem:[%s9408_s7 + $0x408] sm:$0xf] }
  0x98   :  { %v605_v37 = vld [vmem:[%s9408_s7 + $0x418] sm:$0xf]  ;;  %602 = vst [vmem:[#allocation2 + $0x40c] sm:$0xf] %v601_v35  ;;  %604 = vst [vmem:[#allocation2 + $0x410] sm:$0xf] %v603_v36 }
  0x99   :  { %606 = vst [vmem:[#allocation2 + $0x414] sm:$0xf] %v605_v37  ;;  %v607_v38 = vld [vmem:[%s9408_s7 + $0x40c] sm:$0xf]  ;;  %v613_v40 = vld [vmem:[%s9408_s7 + $0x430] sm:$0xf] }
  0x9a   :  { %608 = vst [vmem:[#allocation2 + $0x418] sm:$0xf] %v607_v38  ;;  %610 = vst [vmem:[#allocation2 + $0x41c] sm:$0xff] %v609_v39   ;;  %v615_v41 = vld [vmem:[%s9408_s7 + $0x424] sm:$0xf]  ;;  %v625_v46 = vld [vmem:[%s9408_s7 + $0x43c] sm:$0xff]  }
  0x9b   :  { %614 = vst [vmem:[#allocation2 + $0x424] sm:$0xf] %v613_v40  ;;  %v617_v42 = vld [vmem:[%s9408_s7 + $0x434] sm:$0xf]  ;;  %v619_v43 = vld [vmem:[%s9408_s7 + $0x428] sm:$0xf] }
  0x9c   :  { %616 = vst [vmem:[#allocation2 + $0x428] sm:$0xf] %v615_v41  ;;  %618 = vst [vmem:[#allocation2 + $0x42c] sm:$0xf] %v617_v42  ;;  %v621_v44 = vld [vmem:[%s9408_s7 + $0x438] sm:$0xf] }
  0x9d   :  { %620 = vst [vmem:[#allocation2 + $0x430] sm:$0xf] %v619_v43  ;;  %v623_v45 = vld [vmem:[%s9408_s7 + $0x42c] sm:$0xf]  ;;  %622 = vst [vmem:[#allocation2 + $0x434] sm:$0xf] %v621_v44 }
  0x9e   :  { %624 = vst [vmem:[#allocation2 + $0x438] sm:$0xf] %v623_v45  ;;  %626 = vst [vmem:[#allocation2 + $0x43c] sm:$0xff] %v625_v46   ;;  %v629_v47 = vld [vmem:[%s9408_s7 + $0x450] sm:$0xf]  ;;  %v641_v53 = vld [vmem:[%s9408_s7 + $0x45c] sm:$0xff]  }
  0x9f   :  { %v631_v48 = vld [vmem:[%s9408_s7 + $0x444] sm:$0xf]  ;;  %v633_v49 = vld [vmem:[%s9408_s7 + $0x454] sm:$0xf]  ;;  %630 = vst [vmem:[#allocation2 + $0x444] sm:$0xf] %v629_v47 }
  0xa0   :  { %632 = vst [vmem:[#allocation2 + $0x448] sm:$0xf] %v631_v48  ;;  %634 = vst [vmem:[#allocation2 + $0x44c] sm:$0xf] %v633_v49  ;;  %v635_v50 = vld [vmem:[%s9408_s7 + $0x448] sm:$0xf] }
  0xa1   :  { %v637_v51 = vld [vmem:[%s9408_s7 + $0x458] sm:$0xf]  ;;  %v639_v52 = vld [vmem:[%s9408_s7 + $0x44c] sm:$0xf]  ;;  %636 = vst [vmem:[#allocation2 + $0x450] sm:$0xf] %v635_v50 }
  0xa2   :  { %638 = vst [vmem:[#allocation2 + $0x454] sm:$0xf] %v637_v51  ;;  %640 = vst [vmem:[#allocation2 + $0x458] sm:$0xf] %v639_v52  ;;  %v645_v54 = vld [vmem:[%s9408_s7 + $0x470] sm:$0xf] }
  0xa3   :  { %v647_v55 = vld [vmem:[%s9408_s7 + $0x464] sm:$0xf]  ;;  %642 = vst [vmem:[#allocation2 + $0x45c] sm:$0xff] %v641_v53   ;;  %646 = vst [vmem:[#allocation2 + $0x464] sm:$0xf] %v645_v54  ;;  %v657_v60 = vld [vmem:[%s9408_s7 + $0x47c] sm:$0xff]  }
  0xa4   :  { %648 = vst [vmem:[#allocation2 + $0x468] sm:$0xf] %v647_v55  ;;  %v649_v56 = vld [vmem:[%s9408_s7 + $0x474] sm:$0xf]  ;;  %v651_v57 = vld [vmem:[%s9408_s7 + $0x468] sm:$0xf] }
  0xa5   :  { %v653_v58 = vld [vmem:[%s9408_s7 + $0x478] sm:$0xf]  ;;  %650 = vst [vmem:[#allocation2 + $0x46c] sm:$0xf] %v649_v56  ;;  %652 = vst [vmem:[#allocation2 + $0x470] sm:$0xf] %v651_v57 }
  0xa6   :  { %654 = vst [vmem:[#allocation2 + $0x474] sm:$0xf] %v653_v58  ;;  %v655_v59 = vld [vmem:[%s9408_s7 + $0x46c] sm:$0xf]  ;;  %v661_v61 = vld [vmem:[%s9408_s7 + $0x490] sm:$0xf] }
  0xa7   :  { %656 = vst [vmem:[#allocation2 + $0x478] sm:$0xf] %v655_v59  ;;  %658 = vst [vmem:[#allocation2 + $0x47c] sm:$0xff] %v657_v60   ;;  %v663_v62 = vld [vmem:[%s9408_s7 + $0x484] sm:$0xf]  ;;  %v673_v3 = vld [vmem:[%s9408_s7 + $0x49c] sm:$0xff]  }
  0xa8   :  { %662 = vst [vmem:[#allocation2 + $0x484] sm:$0xf] %v661_v61  ;;  %v665_v63 = vld [vmem:[%s9408_s7 + $0x494] sm:$0xf]  ;;  %v667_v0 = vld [vmem:[%s9408_s7 + $0x488] sm:$0xf] }
  0xa9   :  { %664 = vst [vmem:[#allocation2 + $0x488] sm:$0xf] %v663_v62  ;;  %666 = vst [vmem:[#allocation2 + $0x48c] sm:$0xf] %v665_v63  ;;  %v669_v1 = vld [vmem:[%s9408_s7 + $0x498] sm:$0xf] }
  0xaa   :  { %668 = vst [vmem:[#allocation2 + $0x490] sm:$0xf] %v667_v0  ;;  %v671_v2 = vld [vmem:[%s9408_s7 + $0x48c] sm:$0xf]  ;;  %670 = vst [vmem:[#allocation2 + $0x494] sm:$0xf] %v669_v1 }
  0xab   :  { %672 = vst [vmem:[#allocation2 + $0x498] sm:$0xf] %v671_v2  ;;  %674 = vst [vmem:[#allocation2 + $0x49c] sm:$0xff] %v673_v3   ;;  %v677_v4 = vld [vmem:[%s9408_s7 + $0x4b0] sm:$0xf]  ;;  %v689_v10 = vld [vmem:[%s9408_s7 + $0x4bc] sm:$0xff]  }
  0xac   :  { %v679_v5 = vld [vmem:[%s9408_s7 + $0x4a4] sm:$0xf]  ;;  %v681_v6 = vld [vmem:[%s9408_s7 + $0x4b4] sm:$0xf]  ;;  %678 = vst [vmem:[#allocation2 + $0x4a4] sm:$0xf] %v677_v4 }
  0xad   :  { %680 = vst [vmem:[#allocation2 + $0x4a8] sm:$0xf] %v679_v5  ;;  %682 = vst [vmem:[#allocation2 + $0x4ac] sm:$0xf] %v681_v6  ;;  %v683_v7 = vld [vmem:[%s9408_s7 + $0x4a8] sm:$0xf] }
  0xae   :  { %v685_v8 = vld [vmem:[%s9408_s7 + $0x4b8] sm:$0xf]  ;;  %v687_v9 = vld [vmem:[%s9408_s7 + $0x4ac] sm:$0xf]  ;;  %684 = vst [vmem:[#allocation2 + $0x4b0] sm:$0xf] %v683_v7 }
  0xaf   :  { %686 = vst [vmem:[#allocation2 + $0x4b4] sm:$0xf] %v685_v8  ;;  %688 = vst [vmem:[#allocation2 + $0x4b8] sm:$0xf] %v687_v9  ;;  %v693_v11 = vld [vmem:[%s9408_s7 + $0x4d0] sm:$0xf] }
  0xb0   :  { %v695_v12 = vld [vmem:[%s9408_s7 + $0x4c4] sm:$0xf]  ;;  %690 = vst [vmem:[#allocation2 + $0x4bc] sm:$0xff] %v689_v10   ;;  %694 = vst [vmem:[#allocation2 + $0x4c4] sm:$0xf] %v693_v11  ;;  %v705_v17 = vld [vmem:[%s9408_s7 + $0x4dc] sm:$0xff]  }
  0xb1   :  { %696 = vst [vmem:[#allocation2 + $0x4c8] sm:$0xf] %v695_v12  ;;  %v697_v13 = vld [vmem:[%s9408_s7 + $0x4d4] sm:$0xf]  ;;  %v699_v14 = vld [vmem:[%s9408_s7 + $0x4c8] sm:$0xf] }
  0xb2   :  { %v701_v15 = vld [vmem:[%s9408_s7 + $0x4d8] sm:$0xf]  ;;  %698 = vst [vmem:[#allocation2 + $0x4cc] sm:$0xf] %v697_v13  ;;  %700 = vst [vmem:[#allocation2 + $0x4d0] sm:$0xf] %v699_v14 }
  0xb3   :  { %702 = vst [vmem:[#allocation2 + $0x4d4] sm:$0xf] %v701_v15  ;;  %v703_v16 = vld [vmem:[%s9408_s7 + $0x4cc] sm:$0xf]  ;;  %v709_v18 = vld [vmem:[%s9408_s7 + $0x4f0] sm:$0xf] }
  0xb4   :  { %704 = vst [vmem:[#allocation2 + $0x4d8] sm:$0xf] %v703_v16  ;;  %706 = vst [vmem:[#allocation2 + $0x4dc] sm:$0xff] %v705_v17   ;;  %v711_v19 = vld [vmem:[%s9408_s7 + $0x4e4] sm:$0xf]  ;;  %v721_v24 = vld [vmem:[%s9408_s7 + $0x4fc] sm:$0xff]  }
  0xb5   :  { %710 = vst [vmem:[#allocation2 + $0x4e4] sm:$0xf] %v709_v18  ;;  %v713_v20 = vld [vmem:[%s9408_s7 + $0x4f4] sm:$0xf]  ;;  %v715_v21 = vld [vmem:[%s9408_s7 + $0x4e8] sm:$0xf] }
  0xb6   :  { %712 = vst [vmem:[#allocation2 + $0x4e8] sm:$0xf] %v711_v19  ;;  %714 = vst [vmem:[#allocation2 + $0x4ec] sm:$0xf] %v713_v20  ;;  %v717_v22 = vld [vmem:[%s9408_s7 + $0x4f8] sm:$0xf] }
  0xb7   :  { %716 = vst [vmem:[#allocation2 + $0x4f0] sm:$0xf] %v715_v21  ;;  %v719_v23 = vld [vmem:[%s9408_s7 + $0x4ec] sm:$0xf]  ;;  %718 = vst [vmem:[#allocation2 + $0x4f4] sm:$0xf] %v717_v22 }
  0xb8   :  { %720 = vst [vmem:[#allocation2 + $0x4f8] sm:$0xf] %v719_v23  ;;  %722 = vst [vmem:[#allocation2 + $0x4fc] sm:$0xff] %v721_v24   ;;  %v725_v25 = vld [vmem:[%s9408_s7 + $0x510] sm:$0xf]  ;;  %v737_v31 = vld [vmem:[%s9408_s7 + $0x51c] sm:$0xff]  }
  0xb9   :  { %v727_v26 = vld [vmem:[%s9408_s7 + $0x504] sm:$0xf]  ;;  %v729_v27 = vld [vmem:[%s9408_s7 + $0x514] sm:$0xf]  ;;  %726 = vst [vmem:[#allocation2 + $0x504] sm:$0xf] %v725_v25 }
  0xba   :  { %728 = vst [vmem:[#allocation2 + $0x508] sm:$0xf] %v727_v26  ;;  %730 = vst [vmem:[#allocation2 + $0x50c] sm:$0xf] %v729_v27  ;;  %v731_v28 = vld [vmem:[%s9408_s7 + $0x508] sm:$0xf] }
  0xbb   :  { %v733_v29 = vld [vmem:[%s9408_s7 + $0x518] sm:$0xf]  ;;  %v735_v30 = vld [vmem:[%s9408_s7 + $0x50c] sm:$0xf]  ;;  %732 = vst [vmem:[#allocation2 + $0x510] sm:$0xf] %v731_v28 }
  0xbc   :  { %734 = vst [vmem:[#allocation2 + $0x514] sm:$0xf] %v733_v29  ;;  %736 = vst [vmem:[#allocation2 + $0x518] sm:$0xf] %v735_v30  ;;  %v741_v32 = vld [vmem:[%s9408_s7 + $0x530] sm:$0xf] }
  0xbd   :  { %v743_v33 = vld [vmem:[%s9408_s7 + $0x524] sm:$0xf]  ;;  %738 = vst [vmem:[#allocation2 + $0x51c] sm:$0xff] %v737_v31   ;;  %742 = vst [vmem:[#allocation2 + $0x524] sm:$0xf] %v741_v32  ;;  %v753_v38 = vld [vmem:[%s9408_s7 + $0x53c] sm:$0xff]  }
  0xbe   :  { %744 = vst [vmem:[#allocation2 + $0x528] sm:$0xf] %v743_v33  ;;  %v745_v34 = vld [vmem:[%s9408_s7 + $0x534] sm:$0xf]  ;;  %v747_v35 = vld [vmem:[%s9408_s7 + $0x528] sm:$0xf] }
  0xbf   :  { %v749_v36 = vld [vmem:[%s9408_s7 + $0x538] sm:$0xf]  ;;  %746 = vst [vmem:[#allocation2 + $0x52c] sm:$0xf] %v745_v34  ;;  %748 = vst [vmem:[#allocation2 + $0x530] sm:$0xf] %v747_v35 }
  0xc0   :  { %750 = vst [vmem:[#allocation2 + $0x534] sm:$0xf] %v749_v36  ;;  %v751_v37 = vld [vmem:[%s9408_s7 + $0x52c] sm:$0xf]  ;;  %v757_v39 = vld [vmem:[%s9408_s7 + $0x550] sm:$0xf] }
  0xc1   :  { %752 = vst [vmem:[#allocation2 + $0x538] sm:$0xf] %v751_v37  ;;  %754 = vst [vmem:[#allocation2 + $0x53c] sm:$0xff] %v753_v38   ;;  %v759_v40 = vld [vmem:[%s9408_s7 + $0x544] sm:$0xf]  ;;  %v769_v45 = vld [vmem:[%s9408_s7 + $0x55c] sm:$0xff]  }
  0xc2   :  { %758 = vst [vmem:[#allocation2 + $0x544] sm:$0xf] %v757_v39  ;;  %v761_v41 = vld [vmem:[%s9408_s7 + $0x554] sm:$0xf]  ;;  %v763_v42 = vld [vmem:[%s9408_s7 + $0x548] sm:$0xf] }
  0xc3   :  { %760 = vst [vmem:[#allocation2 + $0x548] sm:$0xf] %v759_v40  ;;  %762 = vst [vmem:[#allocation2 + $0x54c] sm:$0xf] %v761_v41  ;;  %v765_v43 = vld [vmem:[%s9408_s7 + $0x558] sm:$0xf] }
  0xc4   :  { %764 = vst [vmem:[#allocation2 + $0x550] sm:$0xf] %v763_v42  ;;  %v767_v44 = vld [vmem:[%s9408_s7 + $0x54c] sm:$0xf]  ;;  %766 = vst [vmem:[#allocation2 + $0x554] sm:$0xf] %v765_v43 }
  0xc5   :  { %768 = vst [vmem:[#allocation2 + $0x558] sm:$0xf] %v767_v44  ;;  %770 = vst [vmem:[#allocation2 + $0x55c] sm:$0xff] %v769_v45   ;;  %v773_v46 = vld [vmem:[%s9408_s7 + $0x570] sm:$0xf]  ;;  %v785_v52 = vld [vmem:[%s9408_s7 + $0x57c] sm:$0xff]  }
  0xc6   :  { %v775_v47 = vld [vmem:[%s9408_s7 + $0x564] sm:$0xf]  ;;  %v777_v48 = vld [vmem:[%s9408_s7 + $0x574] sm:$0xf]  ;;  %774 = vst [vmem:[#allocation2 + $0x564] sm:$0xf] %v773_v46 }
  0xc7   :  { %776 = vst [vmem:[#allocation2 + $0x568] sm:$0xf] %v775_v47  ;;  %778 = vst [vmem:[#allocation2 + $0x56c] sm:$0xf] %v777_v48  ;;  %v779_v49 = vld [vmem:[%s9408_s7 + $0x568] sm:$0xf] }
  0xc8   :  { %v781_v50 = vld [vmem:[%s9408_s7 + $0x578] sm:$0xf]  ;;  %v783_v51 = vld [vmem:[%s9408_s7 + $0x56c] sm:$0xf]  ;;  %780 = vst [vmem:[#allocation2 + $0x570] sm:$0xf] %v779_v49 }
  0xc9   :  { %782 = vst [vmem:[#allocation2 + $0x574] sm:$0xf] %v781_v50  ;;  %784 = vst [vmem:[#allocation2 + $0x578] sm:$0xf] %v783_v51  ;;  %v789_v53 = vld [vmem:[%s9408_s7 + $0x590] sm:$0xf] }
  0xca   :  { %v791_v54 = vld [vmem:[%s9408_s7 + $0x584] sm:$0xf]  ;;  %786 = vst [vmem:[#allocation2 + $0x57c] sm:$0xff] %v785_v52   ;;  %790 = vst [vmem:[#allocation2 + $0x584] sm:$0xf] %v789_v53  ;;  %v801_v59 = vld [vmem:[%s9408_s7 + $0x59c] sm:$0xff]  }
  0xcb   :  { %792 = vst [vmem:[#allocation2 + $0x588] sm:$0xf] %v791_v54  ;;  %v793_v55 = vld [vmem:[%s9408_s7 + $0x594] sm:$0xf]  ;;  %v795_v56 = vld [vmem:[%s9408_s7 + $0x588] sm:$0xf] }
  0xcc   :  { %v797_v57 = vld [vmem:[%s9408_s7 + $0x598] sm:$0xf]  ;;  %794 = vst [vmem:[#allocation2 + $0x58c] sm:$0xf] %v793_v55  ;;  %796 = vst [vmem:[#allocation2 + $0x590] sm:$0xf] %v795_v56 }
  0xcd   :  { %798 = vst [vmem:[#allocation2 + $0x594] sm:$0xf] %v797_v57  ;;  %v799_v58 = vld [vmem:[%s9408_s7 + $0x58c] sm:$0xf]  ;;  %v805_v60 = vld [vmem:[%s9408_s7 + $0x5b0] sm:$0xf] }
  0xce   :  { %800 = vst [vmem:[#allocation2 + $0x598] sm:$0xf] %v799_v58  ;;  %802 = vst [vmem:[#allocation2 + $0x59c] sm:$0xff] %v801_v59   ;;  %v807_v61 = vld [vmem:[%s9408_s7 + $0x5a4] sm:$0xf]  ;;  %v817_v2 = vld [vmem:[%s9408_s7 + $0x5bc] sm:$0xff]  }
  0xcf   :  { %806 = vst [vmem:[#allocation2 + $0x5a4] sm:$0xf] %v805_v60  ;;  %v809_v62 = vld [vmem:[%s9408_s7 + $0x5b4] sm:$0xf]  ;;  %v811_v63 = vld [vmem:[%s9408_s7 + $0x5a8] sm:$0xf] }
  0xd0   :  { %808 = vst [vmem:[#allocation2 + $0x5a8] sm:$0xf] %v807_v61  ;;  %810 = vst [vmem:[#allocation2 + $0x5ac] sm:$0xf] %v809_v62  ;;  %v813_v0 = vld [vmem:[%s9408_s7 + $0x5b8] sm:$0xf] }
  0xd1   :  { %812 = vst [vmem:[#allocation2 + $0x5b0] sm:$0xf] %v811_v63  ;;  %v815_v1 = vld [vmem:[%s9408_s7 + $0x5ac] sm:$0xf]  ;;  %814 = vst [vmem:[#allocation2 + $0x5b4] sm:$0xf] %v813_v0 }
  0xd2   :  { %816 = vst [vmem:[#allocation2 + $0x5b8] sm:$0xf] %v815_v1  ;;  %818 = vst [vmem:[#allocation2 + $0x5bc] sm:$0xff] %v817_v2   ;;  %v821_v3 = vld [vmem:[%s9408_s7 + $0x5d0] sm:$0xf]  ;;  %v833_v9 = vld [vmem:[%s9408_s7 + $0x5dc] sm:$0xff]  }
  0xd3   :  { %v823_v4 = vld [vmem:[%s9408_s7 + $0x5c4] sm:$0xf]  ;;  %v825_v5 = vld [vmem:[%s9408_s7 + $0x5d4] sm:$0xf]  ;;  %822 = vst [vmem:[#allocation2 + $0x5c4] sm:$0xf] %v821_v3 }
  0xd4   :  { %824 = vst [vmem:[#allocation2 + $0x5c8] sm:$0xf] %v823_v4  ;;  %826 = vst [vmem:[#allocation2 + $0x5cc] sm:$0xf] %v825_v5  ;;  %v827_v6 = vld [vmem:[%s9408_s7 + $0x5c8] sm:$0xf] }
  0xd5   :  { %v829_v7 = vld [vmem:[%s9408_s7 + $0x5d8] sm:$0xf]  ;;  %v831_v8 = vld [vmem:[%s9408_s7 + $0x5cc] sm:$0xf]  ;;  %828 = vst [vmem:[#allocation2 + $0x5d0] sm:$0xf] %v827_v6 }
  0xd6   :  { %830 = vst [vmem:[#allocation2 + $0x5d4] sm:$0xf] %v829_v7  ;;  %832 = vst [vmem:[#allocation2 + $0x5d8] sm:$0xf] %v831_v8  ;;  %v837_v10 = vld [vmem:[%s9408_s7 + $0x5f0] sm:$0xf] }
  0xd7   :  { %v839_v11 = vld [vmem:[%s9408_s7 + $0x5e4] sm:$0xf]  ;;  %834 = vst [vmem:[#allocation2 + $0x5dc] sm:$0xff] %v833_v9   ;;  %838 = vst [vmem:[#allocation2 + $0x5e4] sm:$0xf] %v837_v10  ;;  %v849_v16 = vld [vmem:[%s9408_s7 + $0x5fc] sm:$0xff]  }
  0xd8   :  { %840 = vst [vmem:[#allocation2 + $0x5e8] sm:$0xf] %v839_v11  ;;  %v841_v12 = vld [vmem:[%s9408_s7 + $0x5f4] sm:$0xf]  ;;  %v843_v13 = vld [vmem:[%s9408_s7 + $0x5e8] sm:$0xf] }
  0xd9   :  { %v845_v14 = vld [vmem:[%s9408_s7 + $0x5f8] sm:$0xf]  ;;  %842 = vst [vmem:[#allocation2 + $0x5ec] sm:$0xf] %v841_v12  ;;  %844 = vst [vmem:[#allocation2 + $0x5f0] sm:$0xf] %v843_v13 }
  0xda   :  { %846 = vst [vmem:[#allocation2 + $0x5f4] sm:$0xf] %v845_v14  ;;  %v847_v15 = vld [vmem:[%s9408_s7 + $0x5ec] sm:$0xf]  ;;  %v853_v17 = vld [vmem:[%s9408_s7 + $0x610] sm:$0xf] }
  0xdb   :  { %848 = vst [vmem:[#allocation2 + $0x5f8] sm:$0xf] %v847_v15  ;;  %850 = vst [vmem:[#allocation2 + $0x5fc] sm:$0xff] %v849_v16   ;;  %v855_v18 = vld [vmem:[%s9408_s7 + $0x604] sm:$0xf]  ;;  %v865_v23 = vld [vmem:[%s9408_s7 + $0x61c] sm:$0xff]  }
  0xdc   :  { %854 = vst [vmem:[#allocation2 + $0x604] sm:$0xf] %v853_v17  ;;  %v857_v19 = vld [vmem:[%s9408_s7 + $0x614] sm:$0xf]  ;;  %v859_v20 = vld [vmem:[%s9408_s7 + $0x608] sm:$0xf] }
  0xdd   :  { %856 = vst [vmem:[#allocation2 + $0x608] sm:$0xf] %v855_v18  ;;  %858 = vst [vmem:[#allocation2 + $0x60c] sm:$0xf] %v857_v19  ;;  %v861_v21 = vld [vmem:[%s9408_s7 + $0x618] sm:$0xf] }
  0xde   :  { %860 = vst [vmem:[#allocation2 + $0x610] sm:$0xf] %v859_v20  ;;  %v863_v22 = vld [vmem:[%s9408_s7 + $0x60c] sm:$0xf]  ;;  %862 = vst [vmem:[#allocation2 + $0x614] sm:$0xf] %v861_v21 }
  0xdf   :  { %864 = vst [vmem:[#allocation2 + $0x618] sm:$0xf] %v863_v22  ;;  %866 = vst [vmem:[#allocation2 + $0x61c] sm:$0xff] %v865_v23   ;;  %v869_v24 = vld [vmem:[%s9408_s7 + $0x630] sm:$0xf]  ;;  %v881_v30 = vld [vmem:[%s9408_s7 + $0x63c] sm:$0xff]  }
  0xe0   :  { %v871_v25 = vld [vmem:[%s9408_s7 + $0x624] sm:$0xf]  ;;  %v873_v26 = vld [vmem:[%s9408_s7 + $0x634] sm:$0xf]  ;;  %870 = vst [vmem:[#allocation2 + $0x624] sm:$0xf] %v869_v24 }
  0xe1   :  { %872 = vst [vmem:[#allocation2 + $0x628] sm:$0xf] %v871_v25  ;;  %874 = vst [vmem:[#allocation2 + $0x62c] sm:$0xf] %v873_v26  ;;  %v875_v27 = vld [vmem:[%s9408_s7 + $0x628] sm:$0xf] }
  0xe2   :  { %v877_v28 = vld [vmem:[%s9408_s7 + $0x638] sm:$0xf]  ;;  %v879_v29 = vld [vmem:[%s9408_s7 + $0x62c] sm:$0xf]  ;;  %876 = vst [vmem:[#allocation2 + $0x630] sm:$0xf] %v875_v27 }
  0xe3   :  { %878 = vst [vmem:[#allocation2 + $0x634] sm:$0xf] %v877_v28  ;;  %880 = vst [vmem:[#allocation2 + $0x638] sm:$0xf] %v879_v29  ;;  %v885_v31 = vld [vmem:[%s9408_s7 + $0x650] sm:$0xf] }
  0xe4   :  { %v887_v32 = vld [vmem:[%s9408_s7 + $0x644] sm:$0xf]  ;;  %882 = vst [vmem:[#allocation2 + $0x63c] sm:$0xff] %v881_v30   ;;  %886 = vst [vmem:[#allocation2 + $0x644] sm:$0xf] %v885_v31  ;;  %v897_v37 = vld [vmem:[%s9408_s7 + $0x65c] sm:$0xff]  }
  0xe5   :  { %888 = vst [vmem:[#allocation2 + $0x648] sm:$0xf] %v887_v32  ;;  %v889_v33 = vld [vmem:[%s9408_s7 + $0x654] sm:$0xf]  ;;  %v891_v34 = vld [vmem:[%s9408_s7 + $0x648] sm:$0xf] }
  0xe6   :  { %v893_v35 = vld [vmem:[%s9408_s7 + $0x658] sm:$0xf]  ;;  %890 = vst [vmem:[#allocation2 + $0x64c] sm:$0xf] %v889_v33  ;;  %892 = vst [vmem:[#allocation2 + $0x650] sm:$0xf] %v891_v34 }
  0xe7   :  { %894 = vst [vmem:[#allocation2 + $0x654] sm:$0xf] %v893_v35  ;;  %v895_v36 = vld [vmem:[%s9408_s7 + $0x64c] sm:$0xf]  ;;  %v901_v38 = vld [vmem:[%s9408_s7 + $0x670] sm:$0xf] }
  0xe8   :  { %896 = vst [vmem:[#allocation2 + $0x658] sm:$0xf] %v895_v36  ;;  %898 = vst [vmem:[#allocation2 + $0x65c] sm:$0xff] %v897_v37   ;;  %v903_v39 = vld [vmem:[%s9408_s7 + $0x664] sm:$0xf]  ;;  %v913_v44 = vld [vmem:[%s9408_s7 + $0x67c] sm:$0xff]  }
  0xe9   :  { %902 = vst [vmem:[#allocation2 + $0x664] sm:$0xf] %v901_v38  ;;  %v905_v40 = vld [vmem:[%s9408_s7 + $0x674] sm:$0xf]  ;;  %v907_v41 = vld [vmem:[%s9408_s7 + $0x668] sm:$0xf] }
  0xea   :  { %904 = vst [vmem:[#allocation2 + $0x668] sm:$0xf] %v903_v39  ;;  %906 = vst [vmem:[#allocation2 + $0x66c] sm:$0xf] %v905_v40  ;;  %v909_v42 = vld [vmem:[%s9408_s7 + $0x678] sm:$0xf] }
  0xeb   :  { %908 = vst [vmem:[#allocation2 + $0x670] sm:$0xf] %v907_v41  ;;  %v911_v43 = vld [vmem:[%s9408_s7 + $0x66c] sm:$0xf]  ;;  %910 = vst [vmem:[#allocation2 + $0x674] sm:$0xf] %v909_v42 }
  0xec   :  { %912 = vst [vmem:[#allocation2 + $0x678] sm:$0xf] %v911_v43  ;;  %914 = vst [vmem:[#allocation2 + $0x67c] sm:$0xff] %v913_v44   ;;  %v917_v45 = vld [vmem:[%s9408_s7 + $0x690] sm:$0xf]  ;;  %v929_v51 = vld [vmem:[%s9408_s7 + $0x69c] sm:$0xff]  }
  0xed   :  { %v919_v46 = vld [vmem:[%s9408_s7 + $0x684] sm:$0xf]  ;;  %v921_v47 = vld [vmem:[%s9408_s7 + $0x694] sm:$0xf]  ;;  %918 = vst [vmem:[#allocation2 + $0x684] sm:$0xf] %v917_v45 }
  0xee   :  { %920 = vst [vmem:[#allocation2 + $0x688] sm:$0xf] %v919_v46  ;;  %922 = vst [vmem:[#allocation2 + $0x68c] sm:$0xf] %v921_v47  ;;  %v923_v48 = vld [vmem:[%s9408_s7 + $0x688] sm:$0xf] }
  0xef   :  { %v925_v49 = vld [vmem:[%s9408_s7 + $0x698] sm:$0xf]  ;;  %v927_v50 = vld [vmem:[%s9408_s7 + $0x68c] sm:$0xf]  ;;  %924 = vst [vmem:[#allocation2 + $0x690] sm:$0xf] %v923_v48 }
  0xf0   :  { %926 = vst [vmem:[#allocation2 + $0x694] sm:$0xf] %v925_v49  ;;  %928 = vst [vmem:[#allocation2 + $0x698] sm:$0xf] %v927_v50  ;;  %v933_v52 = vld [vmem:[%s9408_s7 + $0x6b0] sm:$0xf] }
  0xf1   :  { %v935_v53 = vld [vmem:[%s9408_s7 + $0x6a4] sm:$0xf]  ;;  %930 = vst [vmem:[#allocation2 + $0x69c] sm:$0xff] %v929_v51   ;;  %934 = vst [vmem:[#allocation2 + $0x6a4] sm:$0xf] %v933_v52  ;;  %v945_v58 = vld [vmem:[%s9408_s7 + $0x6bc] sm:$0xff]  }
  0xf2   :  { %936 = vst [vmem:[#allocation2 + $0x6a8] sm:$0xf] %v935_v53  ;;  %v937_v54 = vld [vmem:[%s9408_s7 + $0x6b4] sm:$0xf]  ;;  %v939_v55 = vld [vmem:[%s9408_s7 + $0x6a8] sm:$0xf] }
  0xf3   :  { %v941_v56 = vld [vmem:[%s9408_s7 + $0x6b8] sm:$0xf]  ;;  %938 = vst [vmem:[#allocation2 + $0x6ac] sm:$0xf] %v937_v54  ;;  %940 = vst [vmem:[#allocation2 + $0x6b0] sm:$0xf] %v939_v55 }
  0xf4   :  { %942 = vst [vmem:[#allocation2 + $0x6b4] sm:$0xf] %v941_v56  ;;  %v943_v57 = vld [vmem:[%s9408_s7 + $0x6ac] sm:$0xf]  ;;  %v949_v59 = vld [vmem:[%s9408_s7 + $0x6d0] sm:$0xf] }
  0xf5   :  { %944 = vst [vmem:[#allocation2 + $0x6b8] sm:$0xf] %v943_v57  ;;  %946 = vst [vmem:[#allocation2 + $0x6bc] sm:$0xff] %v945_v58   ;;  %v951_v60 = vld [vmem:[%s9408_s7 + $0x6c4] sm:$0xf]  ;;  %v961_v1 = vld [vmem:[%s9408_s7 + $0x6dc] sm:$0xff]  }
  0xf6   :  { %950 = vst [vmem:[#allocation2 + $0x6c4] sm:$0xf] %v949_v59  ;;  %v953_v61 = vld [vmem:[%s9408_s7 + $0x6d4] sm:$0xf]  ;;  %v955_v62 = vld [vmem:[%s9408_s7 + $0x6c8] sm:$0xf] }
  0xf7   :  { %952 = vst [vmem:[#allocation2 + $0x6c8] sm:$0xf] %v951_v60  ;;  %954 = vst [vmem:[#allocation2 + $0x6cc] sm:$0xf] %v953_v61  ;;  %v957_v63 = vld [vmem:[%s9408_s7 + $0x6d8] sm:$0xf] }
  0xf8   :  { %956 = vst [vmem:[#allocation2 + $0x6d0] sm:$0xf] %v955_v62  ;;  %v959_v0 = vld [vmem:[%s9408_s7 + $0x6cc] sm:$0xf]  ;;  %958 = vst [vmem:[#allocation2 + $0x6d4] sm:$0xf] %v957_v63 }
  0xf9   :  { %960 = vst [vmem:[#allocation2 + $0x6d8] sm:$0xf] %v959_v0  ;;  %962 = vst [vmem:[#allocation2 + $0x6dc] sm:$0xff] %v961_v1   ;;  %v965_v2 = vld [vmem:[%s9408_s7 + $0x6f0] sm:$0xf]  ;;  %v977_v8 = vld [vmem:[%s9408_s7 + $0x6fc] sm:$0xff]  }
  0xfa   :  { %v967_v3 = vld [vmem:[%s9408_s7 + $0x6e4] sm:$0xf]  ;;  %v969_v4 = vld [vmem:[%s9408_s7 + $0x6f4] sm:$0xf]  ;;  %966 = vst [vmem:[#allocation2 + $0x6e4] sm:$0xf] %v965_v2 }
  0xfb   :  { %968 = vst [vmem:[#allocation2 + $0x6e8] sm:$0xf] %v967_v3  ;;  %970 = vst [vmem:[#allocation2 + $0x6ec] sm:$0xf] %v969_v4  ;;  %v971_v5 = vld [vmem:[%s9408_s7 + $0x6e8] sm:$0xf] }
  0xfc   :  { %v973_v6 = vld [vmem:[%s9408_s7 + $0x6f8] sm:$0xf]  ;;  %v975_v7 = vld [vmem:[%s9408_s7 + $0x6ec] sm:$0xf]  ;;  %972 = vst [vmem:[#allocation2 + $0x6f0] sm:$0xf] %v971_v5 }
  0xfd   :  { %974 = vst [vmem:[#allocation2 + $0x6f4] sm:$0xf] %v973_v6  ;;  %976 = vst [vmem:[#allocation2 + $0x6f8] sm:$0xf] %v975_v7  ;;  %v981_v9 = vld [vmem:[%s9408_s7 + $0x710] sm:$0xf] }
  0xfe   :  { %v983_v10 = vld [vmem:[%s9408_s7 + $0x704] sm:$0xf]  ;;  %978 = vst [vmem:[#allocation2 + $0x6fc] sm:$0xff] %v977_v8   ;;  %982 = vst [vmem:[#allocation2 + $0x704] sm:$0xf] %v981_v9  ;;  %v993_v15 = vld [vmem:[%s9408_s7 + $0x71c] sm:$0xff]  }
  0xff   :  { %984 = vst [vmem:[#allocation2 + $0x708] sm:$0xf] %v983_v10  ;;  %v985_v11 = vld [vmem:[%s9408_s7 + $0x714] sm:$0xf]  ;;  %v987_v12 = vld [vmem:[%s9408_s7 + $0x708] sm:$0xf] }
 0x100   :  { %v989_v13 = vld [vmem:[%s9408_s7 + $0x718] sm:$0xf]  ;;  %986 = vst [vmem:[#allocation2 + $0x70c] sm:$0xf] %v985_v11  ;;  %988 = vst [vmem:[#allocation2 + $0x710] sm:$0xf] %v987_v12 }
 0x101   :  { %990 = vst [vmem:[#allocation2 + $0x714] sm:$0xf] %v989_v13  ;;  %v991_v14 = vld [vmem:[%s9408_s7 + $0x70c] sm:$0xf]  ;;  %v997_v16 = vld [vmem:[%s9408_s7 + $0x730] sm:$0xf] }
 0x102   :  { %992 = vst [vmem:[#allocation2 + $0x718] sm:$0xf] %v991_v14  ;;  %994 = vst [vmem:[#allocation2 + $0x71c] sm:$0xff] %v993_v15   ;;  %v999_v17 = vld [vmem:[%s9408_s7 + $0x724] sm:$0xf]  ;;  %v1009_v22 = vld [vmem:[%s9408_s7 + $0x73c] sm:$0xff]  }
 0x103   :  { %998 = vst [vmem:[#allocation2 + $0x724] sm:$0xf] %v997_v16  ;;  %v1001_v18 = vld [vmem:[%s9408_s7 + $0x734] sm:$0xf]  ;;  %v1003_v19 = vld [vmem:[%s9408_s7 + $0x728] sm:$0xf] }
 0x104   :  { %1000 = vst [vmem:[#allocation2 + $0x728] sm:$0xf] %v999_v17  ;;  %1002 = vst [vmem:[#allocation2 + $0x72c] sm:$0xf] %v1001_v18  ;;  %v1005_v20 = vld [vmem:[%s9408_s7 + $0x738] sm:$0xf] }
 0x105   :  { %1004 = vst [vmem:[#allocation2 + $0x730] sm:$0xf] %v1003_v19  ;;  %v1007_v21 = vld [vmem:[%s9408_s7 + $0x72c] sm:$0xf]  ;;  %1006 = vst [vmem:[#allocation2 + $0x734] sm:$0xf] %v1005_v20 }
 0x106   :  { %1008 = vst [vmem:[#allocation2 + $0x738] sm:$0xf] %v1007_v21  ;;  %1010 = vst [vmem:[#allocation2 + $0x73c] sm:$0xff] %v1009_v22   ;;  %v1013_v23 = vld [vmem:[%s9408_s7 + $0x750] sm:$0xf]  ;;  %v1025_v29 = vld [vmem:[%s9408_s7 + $0x75c] sm:$0xff]  }
 0x107   :  { %v1015_v24 = vld [vmem:[%s9408_s7 + $0x744] sm:$0xf]  ;;  %v1017_v25 = vld [vmem:[%s9408_s7 + $0x754] sm:$0xf]  ;;  %1014 = vst [vmem:[#allocation2 + $0x744] sm:$0xf] %v1013_v23 }
 0x108   :  { %1016 = vst [vmem:[#allocation2 + $0x748] sm:$0xf] %v1015_v24  ;;  %1018 = vst [vmem:[#allocation2 + $0x74c] sm:$0xf] %v1017_v25  ;;  %v1019_v26 = vld [vmem:[%s9408_s7 + $0x748] sm:$0xf] }
 0x109   :  { %v1021_v27 = vld [vmem:[%s9408_s7 + $0x758] sm:$0xf]  ;;  %v1023_v28 = vld [vmem:[%s9408_s7 + $0x74c] sm:$0xf]  ;;  %1020 = vst [vmem:[#allocation2 + $0x750] sm:$0xf] %v1019_v26 }
 0x10a   :  { %1022 = vst [vmem:[#allocation2 + $0x754] sm:$0xf] %v1021_v27  ;;  %1024 = vst [vmem:[#allocation2 + $0x758] sm:$0xf] %v1023_v28  ;;  %v1029_v30 = vld [vmem:[%s9408_s7 + $0x770] sm:$0xf] }
 0x10b   :  { %v1031_v31 = vld [vmem:[%s9408_s7 + $0x764] sm:$0xf]  ;;  %1026 = vst [vmem:[#allocation2 + $0x75c] sm:$0xff] %v1025_v29   ;;  %1030 = vst [vmem:[#allocation2 + $0x764] sm:$0xf] %v1029_v30  ;;  %v1041_v36 = vld [vmem:[%s9408_s7 + $0x77c] sm:$0xff]  }
 0x10c   :  { %1032 = vst [vmem:[#allocation2 + $0x768] sm:$0xf] %v1031_v31  ;;  %v1033_v32 = vld [vmem:[%s9408_s7 + $0x774] sm:$0xf]  ;;  %v1035_v33 = vld [vmem:[%s9408_s7 + $0x768] sm:$0xf] }
 0x10d   :  { %v1037_v34 = vld [vmem:[%s9408_s7 + $0x778] sm:$0xf]  ;;  %1034 = vst [vmem:[#allocation2 + $0x76c] sm:$0xf] %v1033_v32  ;;  %1036 = vst [vmem:[#allocation2 + $0x770] sm:$0xf] %v1035_v33 }
 0x10e   :  { %1038 = vst [vmem:[#allocation2 + $0x774] sm:$0xf] %v1037_v34  ;;  %v1039_v35 = vld [vmem:[%s9408_s7 + $0x76c] sm:$0xf]  ;;  %v1045_v37 = vld [vmem:[%s9408_s7 + $0x790] sm:$0xf] }
 0x10f   :  { %1040 = vst [vmem:[#allocation2 + $0x778] sm:$0xf] %v1039_v35  ;;  %1042 = vst [vmem:[#allocation2 + $0x77c] sm:$0xff] %v1041_v36   ;;  %v1047_v38 = vld [vmem:[%s9408_s7 + $0x784] sm:$0xf]  ;;  %v1057_v43 = vld [vmem:[%s9408_s7 + $0x79c] sm:$0xff]  }
 0x110   :  { %1046 = vst [vmem:[#allocation2 + $0x784] sm:$0xf] %v1045_v37  ;;  %v1049_v39 = vld [vmem:[%s9408_s7 + $0x794] sm:$0xf]  ;;  %v1051_v40 = vld [vmem:[%s9408_s7 + $0x788] sm:$0xf] }
 0x111   :  { %1048 = vst [vmem:[#allocation2 + $0x788] sm:$0xf] %v1047_v38  ;;  %1050 = vst [vmem:[#allocation2 + $0x78c] sm:$0xf] %v1049_v39  ;;  %v1053_v41 = vld [vmem:[%s9408_s7 + $0x798] sm:$0xf] }
 0x112   :  { %1052 = vst [vmem:[#allocation2 + $0x790] sm:$0xf] %v1051_v40  ;;  %v1055_v42 = vld [vmem:[%s9408_s7 + $0x78c] sm:$0xf]  ;;  %1054 = vst [vmem:[#allocation2 + $0x794] sm:$0xf] %v1053_v41 }
 0x113   :  { %1056 = vst [vmem:[#allocation2 + $0x798] sm:$0xf] %v1055_v42  ;;  %1058 = vst [vmem:[#allocation2 + $0x79c] sm:$0xff] %v1057_v43   ;;  %v1061_v44 = vld [vmem:[%s9408_s7 + $0x7b0] sm:$0xf]  ;;  %v1073_v50 = vld [vmem:[%s9408_s7 + $0x7bc] sm:$0xff]  }
 0x114   :  { %v1063_v45 = vld [vmem:[%s9408_s7 + $0x7a4] sm:$0xf]  ;;  %v1065_v46 = vld [vmem:[%s9408_s7 + $0x7b4] sm:$0xf]  ;;  %1062 = vst [vmem:[#allocation2 + $0x7a4] sm:$0xf] %v1061_v44 }
 0x115   :  { %1064 = vst [vmem:[#allocation2 + $0x7a8] sm:$0xf] %v1063_v45  ;;  %1066 = vst [vmem:[#allocation2 + $0x7ac] sm:$0xf] %v1065_v46  ;;  %v1067_v47 = vld [vmem:[%s9408_s7 + $0x7a8] sm:$0xf] }
 0x116   :  { %v1069_v48 = vld [vmem:[%s9408_s7 + $0x7b8] sm:$0xf]  ;;  %v1071_v49 = vld [vmem:[%s9408_s7 + $0x7ac] sm:$0xf]  ;;  %1068 = vst [vmem:[#allocation2 + $0x7b0] sm:$0xf] %v1067_v47 }
 0x117   :  { %1070 = vst [vmem:[#allocation2 + $0x7b4] sm:$0xf] %v1069_v48  ;;  %1072 = vst [vmem:[#allocation2 + $0x7b8] sm:$0xf] %v1071_v49  ;;  %v1077_v51 = vld [vmem:[%s9408_s7 + $0x7d0] sm:$0xf] }
 0x118   :  { %v1079_v52 = vld [vmem:[%s9408_s7 + $0x7c4] sm:$0xf]  ;;  %1074 = vst [vmem:[#allocation2 + $0x7bc] sm:$0xff] %v1073_v50   ;;  %1078 = vst [vmem:[#allocation2 + $0x7c4] sm:$0xf] %v1077_v51  ;;  %v1089_v57 = vld [vmem:[%s9408_s7 + $0x7dc] sm:$0xff]  }
 0x119   :  { %1080 = vst [vmem:[#allocation2 + $0x7c8] sm:$0xf] %v1079_v52  ;;  %v1081_v53 = vld [vmem:[%s9408_s7 + $0x7d4] sm:$0xf]  ;;  %v1083_v54 = vld [vmem:[%s9408_s7 + $0x7c8] sm:$0xf] }
 0x11a   :  { %v1085_v55 = vld [vmem:[%s9408_s7 + $0x7d8] sm:$0xf]  ;;  %1082 = vst [vmem:[#allocation2 + $0x7cc] sm:$0xf] %v1081_v53  ;;  %1084 = vst [vmem:[#allocation2 + $0x7d0] sm:$0xf] %v1083_v54 }
 0x11b   :  { %1086 = vst [vmem:[#allocation2 + $0x7d4] sm:$0xf] %v1085_v55  ;;  %v1087_v56 = vld [vmem:[%s9408_s7 + $0x7cc] sm:$0xf]  ;;  %v1093_v58 = vld [vmem:[%s9408_s7 + $0x7f0] sm:$0xf] }
 0x11c   :  { %1088 = vst [vmem:[#allocation2 + $0x7d8] sm:$0xf] %v1087_v56  ;;  %1090 = vst [vmem:[#allocation2 + $0x7dc] sm:$0xff] %v1089_v57   ;;  %v1095_v59 = vld [vmem:[%s9408_s7 + $0x7e4] sm:$0xf] }
 0x11d   :  { %1094 = vst [vmem:[#allocation2 + $0x7e4] sm:$0xf] %v1093_v58  ;;  %v1097_v60 = vld [vmem:[%s9408_s7 + $0x7f4] sm:$0xf]  ;;  %v1099_v61 = vld [vmem:[%s9408_s7 + $0x7e8] sm:$0xf] }
 0x11e   :  { %1096 = vst [vmem:[#allocation2 + $0x7e8] sm:$0xf] %v1095_v59  ;;  %1098 = vst [vmem:[#allocation2 + $0x7ec] sm:$0xf] %v1097_v60  ;;  %v1101_v62 = vld [vmem:[%s9408_s7 + $0x7f8] sm:$0xf] }
 0x11f   :  { %1100 = vst [vmem:[#allocation2 + $0x7f0] sm:$0xf] %v1099_v61  ;;  %v1103_v63 = vld [vmem:[%s9408_s7 + $0x7ec] sm:$0xf]  ;;  %v1105_v0 = vld [vmem:[%s9408_s7 + $0x7fc] sm:$0xf] }
 0x120   :  { %1102 = vst [vmem:[#allocation2 + $0x7f4] sm:$0xf] %v1101_v62  ;;  %1104 = vst [vmem:[#allocation2 + $0x7f8] sm:$0xf] %v1103_v63 }
 0x121   :  { %1106 = vst [vmem:[#allocation2 + $0x7fc] sm:$0xf] %v1105_v0 }
 0x122   :  { %4242 = vsyncadd [#allocation3], 32768  ;;  %s9432_s3 = sld [smem:[#allocation17_spill]]  ;;  %v7211_v8 = vmov 0   ;;  %s9433_s26 = sld [smem:[#allocation16_spill]]  ;;  %vm4881_vm0 = vcmask 1041408  }
 0x123   :  { %4703 = vmatprep.mubr.bf16.mxu0 %v7211_v8  ;;  %4744 = vmatprep.mubr.bf16.mxu1 %v7211_v8  ;;  %s9434_s6 = sld [smem:[#allocation18_spill]]  ;;  %s9435_s28 = sld [smem:[#allocation19_spill]] }
 0x124   :  { %s9436_s4 = sld [smem:[#allocation21_spill]]  ;;  %s9437_s7 = sld [smem:[#allocation20_spill]] }
 0x128   :  { %v4245_v1 = vld [vmem:[%s9432_s3] sm:$0xff]  ;;  %v4246_v4 = vld [vmem:[%s9432_s3 + $0x8] sm:$0xff]  ;;  %v4247_v0 = vld [vmem:[%s9432_s3 + $0x10] sm:$0xff] }
 0x129   :  { %v4249_v2 = vld [vmem:[%s9432_s3 + $0x20] sm:$0xff]  ;;  %v4250_v5 = vld [vmem:[%s9432_s3 + $0x28] sm:$0xff] }
 0x12a   :  { %v6786_v3 = vcombine.high %v4245_v1, %v4249_v2  ;;  %v6785_v6 = vcombine.low %v4245_v1, %v4249_v2  ;;  %v4253_v7 = vld [vmem:[%s9432_s3 + $0x40] sm:$0xff]  ;;  %v6788_v9 = vcombine.high %v4246_v4, %v4250_v5  ;;  %v6787_v10 = vcombine.low %v4246_v4, %v4250_v5  ;;  %v4254_v12 = vld [vmem:[%s9432_s3 + $0x48] sm:$0xff]  ;;  %v4251_v1 = vld [vmem:[%s9432_s3 + $0x30] sm:$0xff] }
 0x12b   :  { %v4257_v11 = vld [vmem:[%s9432_s3 + $0x60] sm:$0xff]  ;;  %v4258_v13 = vld [vmem:[%s9432_s3 + $0x68] sm:$0xff]  ;;  %v4248_v2 = vld [vmem:[%s9432_s3 + $0x18] sm:$0xff] }
 0x12c   :  { %4671 = vmatprep.subr.bf16.mxu0 %v6786_v3  ;;  %v6794_v14 = vcombine.high %v4253_v7, %v4257_v11  ;;  %v6796_v15 = vcombine.high %v4254_v12, %v4258_v13  ;;  %v4261_v16 = vld [vmem:[%s9432_s3 + $0x80] sm:$0xff]  ;;  %v4262_v18 = vld [vmem:[%s9432_s3 + $0x88] sm:$0xff]  ;;  %4712 = vmatprep.subr.bf16.mxu1 %v6788_v9  ;;  %v6793_v19 = vcombine.low %v4253_v7, %v4257_v11  ;;  %v4252_v3 = vld [vmem:[%s9432_s3 + $0x38] sm:$0xff] }
 0x12d   :  { %v4265_v17 = vld [vmem:[%s9432_s3 + $0xa0] sm:$0xff]  ;;  %4672 = vmatpush1.bf16.msra.mxu0 %v6785_v6  ;;  %v4266_v20 = vld [vmem:[%s9432_s3 + $0xa8] sm:$0xff]  ;;  %4713 = vmatpush1.bf16.msra.mxu1 %v6787_v10  ;;  %v6795_v21 = vcombine.low %v4254_v12, %v4258_v13  ;;  %v6790_v7 = vcombine.high %v4247_v0, %v4251_v1  ;;  %v6792_v9 = vcombine.high %v4248_v2, %v4252_v3  ;;  %v4255_v10 = vld [vmem:[%s9432_s3 + $0x50] sm:$0xff] }
 0x12e   :  { %4673 = vmatprep.subr.bf16.mxu0 %v6794_v14  ;;  %v6802_v22 = vcombine.high %v4261_v16, %v4265_v17  ;;  %4714 = vmatprep.subr.bf16.mxu1 %v6796_v15  ;;  %v6804_v23 = vcombine.high %v4262_v18, %v4266_v20  ;;  %v4269_v24 = vld [vmem:[%s9432_s3 + $0xc0] sm:$0xff]  ;;  %v4270_v26 = vld [vmem:[%s9432_s3 + $0xc8] sm:$0xff]  ;;  %v6801_v28 = vcombine.low %v4261_v16, %v4265_v17  ;;  %v4259_v11 = vld [vmem:[%s9432_s3 + $0x70] sm:$0xff] }
 0x12f   :  { %v4273_v25 = vld [vmem:[%s9432_s3 + $0xe0] sm:$0xff]  ;;  %v4274_v27 = vld [vmem:[%s9432_s3 + $0xe8] sm:$0xff]  ;;  %v6803_v29 = vcombine.low %v4262_v18, %v4266_v20  ;;  %v4256_v13 = vld [vmem:[%s9432_s3 + $0x58] sm:$0xff]  ;;  %v6789_v15 = vcombine.low %v4247_v0, %v4251_v1  ;;  %v6791_v16 = vcombine.low %v4248_v2, %v4252_v3  ;;  %v6798_v17 = vcombine.high %v4255_v10, %v4259_v11 }
 0x130   :  { %v6810_v30 = vcombine.high %v4269_v24, %v4273_v25  ;;  %v6812_v31 = vcombine.high %v4270_v26, %v4274_v27  ;;  %v4277_v32 = vld [vmem:[%s9432_s3 + $0x100] sm:$0xff]  ;;  %v4278_v34 = vld [vmem:[%s9432_s3 + $0x108] sm:$0xff]  ;;  %v6809_v36 = vcombine.low %v4269_v24, %v4273_v25  ;;  %v6811_v37 = vcombine.low %v4270_v26, %v4274_v27  ;;  %v4260_v14 = vld [vmem:[%s9432_s3 + $0x78] sm:$0xff] }
 0x131   :  { %4674 = vmatpush1.bf16.msra.mxu0 %v6793_v19  ;;  %4715 = vmatpush1.bf16.msra.mxu1 %v6795_v21  ;;  %v4281_v33 = vld [vmem:[%s9432_s3 + $0x120] sm:$0xff]  ;;  %v4282_v35 = vld [vmem:[%s9432_s3 + $0x128] sm:$0xff]  ;;  %v6800_v18 = vcombine.high %v4256_v13, %v4260_v14  ;;  %v4263_v19 = vld [vmem:[%s9432_s3 + $0x90] sm:$0xff]  ;;  %v6799_v24 = vcombine.low %v4256_v13, %v4260_v14 }
 0x132   :  { %4675 = vmatprep.subr.bf16.mxu0 %v6802_v22  ;;  %4716 = vmatprep.subr.bf16.mxu1 %v6804_v23  ;;  %v6818_v38 = vcombine.high %v4277_v32, %v4281_v33  ;;  %v6820_v39 = vcombine.high %v4278_v34, %v4282_v35  ;;  %v4285_v40 = vld [vmem:[%s9432_s3 + $0x140] sm:$0xff]  ;;  %v4286_v42 = vld [vmem:[%s9432_s3 + $0x148] sm:$0xff]  ;;  %v6817_v44 = vcombine.low %v4277_v32, %v4281_v33  ;;  %v4267_v20 = vld [vmem:[%s9432_s3 + $0xb0] sm:$0xff] }
 0x133   :  { %v4289_v41 = vld [vmem:[%s9432_s3 + $0x160] sm:$0xff]  ;;  %v4290_v43 = vld [vmem:[%s9432_s3 + $0x168] sm:$0xff]  ;;  %v6819_v45 = vcombine.low %v4278_v34, %v4282_v35  ;;  %v4264_v21 = vld [vmem:[%s9432_s3 + $0x98] sm:$0xff]  ;;  %v6797_v23 = vcombine.low %v4255_v10, %v4259_v11  ;;  %v6806_v25 = vcombine.high %v4263_v19, %v4267_v20  ;;  %v7212_v11 = vmov 1983009808  }
 0x134   :  { %v6826_v46 = vcombine.high %v4285_v40, %v4289_v41  ;;  %v6828_v47 = vcombine.high %v4286_v42, %v4290_v43  ;;  %v4293_v48 = vld [vmem:[%s9432_s3 + $0x180] sm:$0xff]  ;;  %v4294_v50 = vld [vmem:[%s9432_s3 + $0x188] sm:$0xff]  ;;  %v6825_v52 = vcombine.low %v4285_v40, %v4289_v41  ;;  %v6827_v53 = vcombine.low %v4286_v42, %v4290_v43  ;;  %v4268_v22 = vld [vmem:[%s9432_s3 + $0xb8] sm:$0xff] }
 0x135   :  { %4676 = vmatpush1.bf16.msra.mxu0 %v6801_v28  ;;  %4717 = vmatpush1.bf16.msra.mxu1 %v6803_v29  ;;  %v4297_v49 = vld [vmem:[%s9432_s3 + $0x1a0] sm:$0xff]  ;;  %v4298_v51 = vld [vmem:[%s9432_s3 + $0x1a8] sm:$0xff]  ;;  %v6808_v26 = vcombine.high %v4264_v21, %v4268_v22  ;;  %v4271_v27 = vld [vmem:[%s9432_s3 + $0xd0] sm:$0xff]  ;;  %v6807_v32 = vcombine.low %v4264_v21, %v4268_v22  ;;  %v4846_v13 = vunpack.c.l.s4 %v7212_v11 }
 0x136   :  { %4677 = vmatprep.subr.bf16.mxu0 %v6810_v30  ;;  %4718 = vmatprep.subr.bf16.mxu1 %v6812_v31  ;;  %v6834_v54 = vcombine.high %v4293_v48, %v4297_v49  ;;  %v6836_v55 = vcombine.high %v4294_v50, %v4298_v51  ;;  %v4301_v56 = vld [vmem:[%s9432_s3 + $0x1c0] sm:$0xff]  ;;  %v4302_v58 = vld [vmem:[%s9432_s3 + $0x1c8] sm:$0xff]  ;;  %v6833_v60 = vcombine.low %v4293_v48, %v4297_v49  ;;  %v4275_v28 = vld [vmem:[%s9432_s3 + $0xf0] sm:$0xff] }
 0x137   :  { %v4305_v57 = vld [vmem:[%s9432_s3 + $0x1e0] sm:$0xff]  ;;  %v4306_v59 = vld [vmem:[%s9432_s3 + $0x1e8] sm:$0xff]  ;;  %v6835_v61 = vcombine.low %v4294_v50, %v4298_v51  ;;  %v4272_v29 = vld [vmem:[%s9432_s3 + $0xd8] sm:$0xff]  ;;  %v6805_v31 = vcombine.low %v4263_v19, %v4267_v20  ;;  %v6814_v33 = vcombine.high %v4271_v27, %v4275_v28 }
 0x138   :  { %v6842_v62 = vcombine.high %v4301_v56, %v4305_v57  ;;  %v6844_v63 = vcombine.high %v4302_v58, %v4306_v59  ;;  %v6841_v4 = vcombine.low %v4301_v56, %v4305_v57  ;;  %v4243_v5 = vld [vmem:[%s9433_s26] sm:$0x3]  ;;  %v6843_v6 = vcombine.low %v4302_v58, %v4306_v59  ;;  %v4276_v30 = vld [vmem:[%s9432_s3 + $0xf8] sm:$0xff]  ;;  %v4279_v35 = vld [vmem:[%s9432_s3 + $0x110] sm:$0xff] }
 0x139   :  { %4678 = vmatpush1.bf16.msra.mxu0 %v6809_v36  ;;  %4719 = vmatpush1.bf16.msra.mxu1 %v6811_v37  ;;  %v8800_v12 = vpack.c.bf16 %v4243_v5, %v4243_v5  ;;  %v6816_v34 = vcombine.high %v4272_v29, %v4276_v30  ;;  %v4283_v36 = vld [vmem:[%s9432_s3 + $0x130] sm:$0xff]  ;;  %v4284_v37 = vld [vmem:[%s9432_s3 + $0x138] sm:$0xff] }
 0x13a   :  { %4679 = vmatprep.subr.bf16.mxu0 %v6818_v38  ;;  %4720 = vmatprep.subr.bf16.mxu1 %v6820_v39  ;;  %v6813_v38 = vcombine.low %v4271_v27, %v4275_v28  ;;  %v6815_v39 = vcombine.low %v4272_v29, %v4276_v30  ;;  %v6822_v40 = vcombine.high %v4279_v35, %v4283_v36  ;;  %v4287_v42 = vld [vmem:[%s9432_s3 + $0x150] sm:$0xff] }
 0x13b   :  { %v4291_v43 = vld [vmem:[%s9432_s3 + $0x170] sm:$0xff] }
 0x13c   :  { %v6830_v48 = vcombine.high %v4287_v42, %v4291_v43  ;;  %v4295_v50 = vld [vmem:[%s9432_s3 + $0x190] sm:$0xff] }
 0x13d   :  { %4680 = vmatpush1.bf16.msra.mxu0 %v6817_v44  ;;  %4721 = vmatpush1.bf16.msra.mxu1 %v6819_v45  ;;  %v4288_v44 = vld [vmem:[%s9432_s3 + $0x158] sm:$0xff]  ;;  %v4299_v51 = vld [vmem:[%s9432_s3 + $0x1b0] sm:$0xff] }
 0x13e   :  { %4681 = vmatprep.subr.bf16.mxu0 %v6826_v46  ;;  %4722 = vmatprep.subr.bf16.mxu1 %v6828_v47  ;;  %v4292_v45 = vld [vmem:[%s9432_s3 + $0x178] sm:$0xff]  ;;  %v6821_v46 = vcombine.low %v4279_v35, %v4283_v36  ;;  %v6838_v56 = vcombine.high %v4295_v50, %v4299_v51  ;;  %v4303_v58 = vld [vmem:[%s9432_s3 + $0x1d0] sm:$0xff] }
 0x13f   :  { %v6832_v49 = vcombine.high %v4288_v44, %v4292_v45  ;;  %v4307_v59 = vld [vmem:[%s9432_s3 + $0x1f0] sm:$0xff] }
 0x140   :  { %v6846_v0 = vcombine.high %v4303_v58, %v4307_v59  ;;  %v6845_v2 = vcombine.low %v4303_v58, %v4307_v59 }
 0x141   :  { %4682 = vmatpush1.bf16.msra.mxu0 %v6825_v52  ;;  %4723 = vmatpush1.bf16.msra.mxu1 %v6827_v53  ;;  %v4296_v52 = vld [vmem:[%s9432_s3 + $0x198] sm:$0xff] }
 0x142   :  { %4683 = vmatprep.subr.bf16.mxu0 %v6834_v54  ;;  %4724 = vmatprep.subr.bf16.mxu1 %v6836_v55  ;;  %v4300_v53 = vld [vmem:[%s9432_s3 + $0x1b8] sm:$0xff]  ;;  %v6829_v54 = vcombine.low %v4287_v42, %v4291_v43  ;;  %v6831_v55 = vcombine.low %v4288_v44, %v4292_v45 }
 0x143   :  { %v6840_v57 = vcombine.high %v4296_v52, %v4300_v53 }
 0x145   :  { %4684 = vmatpush1.bf16.msra.mxu0 %v6833_v60  ;;  %4725 = vmatpush1.bf16.msra.mxu1 %v6835_v61  ;;  %v4304_v60 = vld [vmem:[%s9432_s3 + $0x1d8] sm:$0xff] }
 0x146   :  { %4685 = vmatprep.subr.bf16.mxu0 %v6842_v62  ;;  %4726 = vmatprep.subr.bf16.mxu1 %v6844_v63  ;;  %v4308_v61 = vld [vmem:[%s9432_s3 + $0x1f8] sm:$0xff]  ;;  %v6837_v62 = vcombine.low %v4295_v50, %v4299_v51  ;;  %v6839_v63 = vcombine.low %v4296_v52, %v4300_v53 }
 0x147   :  { %v6848_v1 = vcombine.high %v4304_v60, %v4308_v61  ;;  %v6847_v3 = vcombine.low %v4304_v60, %v4308_v61 }
 0x149   :  { %4686 = vmatpush1.bf16.msra.mxu0 %v6841_v4  ;;  %4727 = vmatpush1.bf16.msra.mxu1 %v6843_v6  ;;  %v4311_v4 = vlaneseq }
 0x14a   :  { %4753 = vmatprep.subr.bf16.mxu0 %v6790_v7  ;;  %4794 = vmatprep.subr.bf16.mxu1 %v6792_v9  ;;  %v8894_v7 = vld [vmem:[%s9434_s6] sm:$0xff] }
 0x14b   :  { %v8886_v5 = vshrl.u32 %v4311_v4, 7 }
 0x14c   :  { %4704 = vmatmul.mubr.bf16.vlgmr.msra.gmra.mrb[0].mxu0 %v8800_v12  ;;  %4745 = vmatmul.mubr.bf16.vlgmr.msra.gmra.mrb[0].mxu1 %v8800_v12 }
 0x14d   :  { %4754 = vmatpush1.bf16.msra.mxu0 %v6789_v15  ;;  %4795 = vmatpush1.bf16.msra.mxu1 %v6791_v16  ;;  %v8889_v6 = vsub.s32 0, %v8886_v5  ;;  %v8897_v9 = vsub.s32 2, %v8886_v5  ;;  %v8900_v10 = vsub.s32 1, %v8886_v5 }
 0x14e   :  { %4755 = vmatprep.subr.bf16.mxu0 %v6798_v17  ;;  %4796 = vmatprep.subr.bf16.mxu1 %v6800_v18  ;;  %v4847_v17 = vunpack.c.0.s8 %v4846_v13 }
 0x14f   :  { %4785 = vmatprep.mubr.bf16.mxu0 %v7211_v8  ;;  %4826 = vmatprep.mubr.bf16.mxu1 %v7211_v8  ;;  %v4280_v8 = vld [vmem:[%s9432_s3 + $0x118] sm:$0xff]  ;;  %v4314_v14 = vrot.slane %v8894_v7, %v8889_v6  ;;  %v4322_v15 = vrot.slane %v8894_v7, %v8897_v9  ;;  %v4318_v16 = vrot.slane %v8894_v7, %v8900_v10  ;;  %s9438_s3 = sld [smem:[#allocation22_spill]] }
 0x150   :  { %v6824_v41 = vcombine.high %v4280_v8, %v4284_v37  ;;  %v6823_v47 = vcombine.low %v4280_v8, %v4284_v37 }
 0x151   :  { %4756 = vmatpush1.bf16.msra.mxu0 %v6797_v23  ;;  %4797 = vmatpush1.bf16.msra.mxu1 %v6799_v24 }
 0x152   :  { %4757 = vmatprep.subr.bf16.mxu0 %v6806_v25  ;;  %4798 = vmatprep.subr.bf16.mxu1 %v6808_v26  ;;  %v8914_v25 = vsub.s32 %v4847_v17, %v8886_v5 }
 0x155   :  { %4758 = vmatpush1.bf16.msra.mxu0 %v6805_v31  ;;  %4799 = vmatpush1.bf16.msra.mxu1 %v6807_v32 }
 0x156   :  { %4759 = vmatprep.subr.bf16.mxu0 %v6814_v33  ;;  %4800 = vmatprep.subr.bf16.mxu1 %v6816_v34 }
 0x159   :  { %4760 = vmatpush1.bf16.msra.mxu0 %v6813_v38  ;;  %4801 = vmatpush1.bf16.msra.mxu1 %v6815_v39 }
 0x15a   :  { %4761 = vmatprep.subr.bf16.mxu0 %v6822_v40  ;;  %4802 = vmatprep.subr.bf16.mxu1 %v6824_v41 }
 0x15d   :  { %4762 = vmatpush1.bf16.msra.mxu0 %v6821_v46  ;;  %4803 = vmatpush1.bf16.msra.mxu1 %v6823_v47 }
 0x15e   :  { %4763 = vmatprep.subr.bf16.mxu0 %v6830_v48  ;;  %4804 = vmatprep.subr.bf16.mxu1 %v6832_v49 }
 0x161   :  { %4764 = vmatpush1.bf16.msra.mxu0 %v6829_v54  ;;  %4805 = vmatpush1.bf16.msra.mxu1 %v6831_v55 }
 0x162   :  { %4765 = vmatprep.subr.bf16.mxu0 %v6838_v56  ;;  %4806 = vmatprep.subr.bf16.mxu1 %v6840_v57 }
 0x165   :  { %4766 = vmatpush1.bf16.msra.mxu0 %v6837_v62  ;;  %4807 = vmatpush1.bf16.msra.mxu1 %v6839_v63 }
 0x166   :  { %4767 = vmatprep.subr.bf16.mxu0 %v6846_v0  ;;  %4808 = vmatprep.subr.bf16.mxu1 %v6848_v1 }
 0x169   :  { %4768 = vmatpush1.bf16.msra.mxu0 %v6845_v2  ;;  %4809 = vmatpush1.bf16.msra.mxu1 %v6847_v3 }
 0x16c   :  { %4786 = vmatmul.mubr.bf16.vlgmr.msra.gmra.mrb[4].mxu0 %v8800_v12  ;;  %4827 = vmatmul.mubr.bf16.vlgmr.msra.gmra.mrb[4].mxu1 %v8800_v12  ;;  %v8903_v12 = vsub.s32 3, %v8886_v5 }
 0x16e   :  { %v4326_v18 = vrot.slane %v8894_v7, %v8903_v12 }
 0x21f   :  { %v4705_v19 = vpop.f32.mrb[0].mxu0  ;;  %v4746_v21 = vpop.f32.mrb[0].mxu1 }
 0x220   :  { %v4706_v20 = vadd.f32 %v4705_v19, %v4314_v14  ;;  %v4707_v22 = vpop.f32.mrb[1].mxu0  ;;  %v4747_v23 = vadd.f32 %v4746_v21, %v4322_v15  ;;  %v4748_v26 = vpop.f32.mrb[1].mxu1 }
 0x221   :  { %v4708_v24 = vadd.f32 %v4707_v22, %v4318_v16  ;;  %v4709_v27 = vpop.f32.mrb[2].mxu0  ;;  %v4749_v29 = vadd.f32 %v4748_v26, %v4326_v18  ;;  %v4750_v30 = vpop.f32.mrb[2].mxu1 }
 0x222   :  { %v4882_v28 = vsel %vm4881_vm0, %v4706_v20, 0.0  ;;  %v4710_v31 = vpop.f32.mrb[3].mxu0  ;;  %v4896_v33 = vsel %vm4881_vm0, %v4747_v23, 0.0  ;;  %v4751_v36 = vpop.f32.mrb[3].mxu1 }
 0x223   :  { %v4883_v32 = vrot.slane %v4882_v28, 4  ;;  %v4843_v34 = vcombine.low %v4706_v20, %v4708_v24  ;;  %v4889_v35 = vsel %vm4881_vm0, %v4708_v24, 0.0  ;;  %v4897_v8 = vrot.slane %v4896_v33, 4 }
 0x224   :  { %v4890_v37 = vrot.slane %v4889_v35, 4  ;;  %v4844_v38 = vcombine.low %v4747_v23, %v4749_v29  ;;  %v4903_v39 = vsel %vm4881_vm0, %v4749_v29, 0.0  ;;  %v8955_v36 = vsub.s32 7, %v8886_v5 }
 0x225   :  { %v4884_v40 = vadd.f32 %v4883_v32, %v4882_v28  ;;  %v4851_v41 = vrot.slane %v4843_v34, %v8914_v25  ;;  %v4904_v42 = vrot.slane %v4903_v39, 4  ;;  %v4898_v43 = vadd.f32 %v4897_v8, %v4896_v33 }
 0x226   :  { %v4891_v44 = vadd.f32 %v4890_v37, %v4889_v35  ;;  %v4858_v45 = vrot.slane %v4844_v38, %v8914_v25  ;;  %v8949_v32 = vsub.s32 6, %v8886_v5  ;;  %v8952_v33 = vsub.s32 5, %v8886_v5 }
 0x227   :  { %v4885_v46 = vrot.slane %v4884_v40, 2  ;;  %v4905_v47 = vadd.f32 %v4904_v42, %v4903_v39  ;;  %v4899_v48 = vrot.slane %v4898_v43, 2 }
 0x228   :  { %v4892_v49 = vrot.slane %v4891_v44, 2  ;;  %v4859_v50 = vcombine.low %v4851_v41, %v4858_v45 }
 0x229   :  { %v4886_v51 = vadd.f32 %v4885_v46, %v4884_v40  ;;  %v4906_v52 = vrot.slane %v4905_v47, 2  ;;  %v4900_v53 = vadd.f32 %v4899_v48, %v4898_v43  ;;  %v4338_v43 = vrot.slane %v8894_v7, %v8949_v32 }
 0x22a   :  { %v4893_v54 = vadd.f32 %v4892_v49, %v4891_v44  ;;  %4879 = vst [vmem:[%s9419_s18] sm:$0xff] %v4859_v50  ;;  %v4334_v44 = vrot.slane %v8894_v7, %v8952_v33 }
 0x22b   :  { %v4887_v55 = vrot.slane %v4886_v51, 1  ;;  %v4907_v56 = vadd.f32 %v4906_v52, %v4905_v47  ;;  %v4901_v57 = vrot.slane %v4900_v53, 1 }
 0x22c   :  { %v4894_v58 = vrot.slane %v4893_v54, 1 }
 0x22d   :  { %v4888_v59 = vadd.f32 %v4887_v55, %v4886_v51  ;;  %v4908_v60 = vrot.slane %v4907_v56, 1  ;;  %v4902_v61 = vadd.f32 %v4901_v57, %v4900_v53 }
 0x22e   :  { %v4895_v62 = vadd.f32 %v4894_v58, %v4893_v54 }
 0x22f   :  { %v4939_v63 = vmul.f32 0.5, %v4888_v59  ;;  %v4909_v0 = vadd.f32 %v4908_v60, %v4907_v56  ;;  %v4941_v1 = vmul.f32 0.5, %v4902_v61 }
 0x230   :  { %v4940_v2 = vmul.f32 0.5, %v4895_v62 }
 0x231   :  { %v8925_v3 = vsub.f32 %v4706_v20, %v4939_v63  ;;  %v4942_v4 = vmul.f32 0.5, %v4909_v0  ;;  %v8927_v11 = vsub.f32 %v4747_v23, %v4941_v1 }
 0x232   :  { %v8929_v13 = vsub.f32 %v4708_v24, %v4940_v2 }
 0x233   :  { %v4955_v14 = vmul.f32 %v8925_v3, %v8925_v3  ;;  %v8933_v15 = vsub.f32 %v4749_v29, %v4942_v4  ;;  %v4957_v16 = vmul.f32 %v8927_v11, %v8927_v11  ;;  %v8946_v29 = vsub.s32 4, %v8886_v5 }
 0x234   :  { %v4956_v17 = vmul.f32 %v8929_v13, %v8929_v13  ;;  %v4342_v5 = vrot.slane %v8894_v7, %v8955_v36 }
 0x235   :  { %v4963_v18 = vsel %vm4881_vm0, %v4955_v14, 0.0  ;;  %v4958_v19 = vmul.f32 %v8933_v15, %v8933_v15  ;;  %v4977_v21 = vsel %vm4881_vm0, %v4957_v16, 0.0  ;;  %v4330_v40 = vrot.slane %v8894_v7, %v8946_v29 }
 0x236   :  { %v4964_v20 = vrot.slane %v4963_v18, 4  ;;  %v4970_v22 = vsel %vm4881_vm0, %v4956_v17, 0.0  ;;  %v4978_v23 = vrot.slane %v4977_v21, 4 }
 0x237   :  { %v4971_v24 = vrot.slane %v4970_v22, 4  ;;  %v4984_v26 = vsel %vm4881_vm0, %v4958_v19, 0.0 }
 0x238   :  { %v4965_v27 = vadd.f32 %v4964_v20, %v4963_v18  ;;  %v4985_v28 = vrot.slane %v4984_v26, 4  ;;  %v4979_v30 = vadd.f32 %v4978_v23, %v4977_v21 }
 0x239   :  { %v4972_v31 = vadd.f32 %v4971_v24, %v4970_v22  ;;  %v8982_v22 = vld [vmem:[%s9435_s28] sm:$0xff] }
 0x23a   :  { %v4966_v34 = vrot.slane %v4965_v27, 2  ;;  %v4986_v35 = vadd.f32 %v4985_v28, %v4984_v26  ;;  %v4980_v8 = vrot.slane %v4979_v30, 2 }
 0x23b   :  { %v4973_v37 = vrot.slane %v4972_v31, 2 }
 0x23c   :  { %v4967_v38 = vadd.f32 %v4966_v34, %v4965_v27  ;;  %v4987_v39 = vrot.slane %v4986_v35, 2  ;;  %v4981_v41 = vadd.f32 %v4980_v8, %v4979_v30  ;;  %v8990_v34 = vld [vmem:[%s9436_s4] sm:$0xff] }
 0x23d   :  { %v4974_v42 = vadd.f32 %v4973_v37, %v4972_v31 }
 0x23e   :  { %v4968_v45 = vrot.slane %v4967_v38, 1  ;;  %v4988_v46 = vadd.f32 %v4987_v39, %v4986_v35  ;;  %v4982_v47 = vrot.slane %v4981_v41, 1 }
 0x23f   :  { %v4975_v48 = vrot.slane %v4974_v42, 1  ;;  %v4787_v49 = vpop.f32.mrb[4].mxu0  ;;  %v4828_v53 = vpop.f32.mrb[4].mxu1 }
 0x240   :  { %v4969_v50 = vadd.f32 %v4968_v45, %v4967_v38  ;;  %v4989_v51 = vrot.slane %v4988_v46, 1  ;;  %v8965_v52 = vadd.f32 %v4787_v49, %v4330_v40  ;;  %v4789_v54 = vpop.f32.mrb[5].mxu0  ;;  %v4983_v55 = vadd.f32 %v4982_v47, %v4981_v41  ;;  %v4830_v59 = vpop.f32.mrb[5].mxu1 }
 0x241   :  { %v4976_v56 = vadd.f32 %v4975_v48, %v4974_v42  ;;  %v8967_v57 = vadd.f32 %v4828_v53, %v4338_v43  ;;  %v8969_v58 = vadd.f32 %v4789_v54, %v4334_v44  ;;  %v4791_v60 = vpop.f32.mrb[6].mxu0  ;;  %v8973_v63 = vadd.f32 %v4830_v59, %v4342_v5  ;;  %v4832_v0 = vpop.f32.mrb[6].mxu1  ;;  %v9002_v44 = vld [vmem:[%s9437_s7] sm:$0xff] }
 0x242   :  { %v5019_v61 = vmul.f32 0.5, %v4969_v50  ;;  %v4990_v62 = vadd.f32 %v4989_v51, %v4988_v46  ;;  %v4910_v7 = vsel %vm4881_vm0, %v8965_v52, 0.0  ;;  %v4792_v1 = vpop.f32.mrb[7].mxu0  ;;  %v5021_v2 = vmul.f32 0.5, %v4983_v55  ;;  %v4833_v17 = vpop.f32.mrb[7].mxu1  ;;  %v9009_v46 = vld [vmem:[%s9438_s3] sm:$0xff] }
 0x243   :  { %v5020_v4 = vmul.f32 0.5, %v4976_v56  ;;  %v4911_v14 = vrot.slane %v4910_v7, 4  ;;  %v4924_v16 = vsel %vm4881_vm0, %v8967_v57, 0.0  ;;  %v4860_v21 = vcombine.low %v8965_v52, %v8969_v58 }
 0x244   :  { %v5027_v18 = vadd.f32 1e-05, %v5019_v61  ;;  %v5022_v19 = vmul.f32 0.5, %v4990_v62  ;;  %v4925_v20 = vrot.slane %v4924_v16, 4  ;;  %v5029_v23 = vadd.f32 1e-05, %v5021_v2 }
 0x245   :  { %v5028_v24 = vadd.f32 1e-05, %v5020_v4  ;;  %v4912_v26 = vadd.f32 %v4911_v14, %v4910_v7  ;;  %v4917_v27 = vsel %vm4881_vm0, %v8969_v58, 0.0  ;;  %v4868_v31 = vrot.slane %v4860_v21, %v8914_v25 }
 0x246   :  { %7039 = vrsqrt.f32 %v5027_v18  ;;  %v5030_v28 = vadd.f32 1e-05, %v5022_v19  ;;  %v4926_v30 = vadd.f32 %v4925_v20, %v4924_v16  ;;  %v4918_v8 = vrot.slane %v4917_v27, 4 }
 0x247   :  { %7041 = vrsqrt.f32 %v5029_v23  ;;  %v4913_v35 = vrot.slane %v4912_v26, 2  ;;  %v4861_v37 = vcombine.low %v8967_v57, %v8973_v63  ;;  %v5056_v38 = vrot.slane %v8982_v22, %v8889_v6 }
 0x248   :  { %7043 = vrsqrt.f32 %v5028_v24  ;;  %v4927_v39 = vrot.slane %v4926_v30, 2  ;;  %v4931_v40 = vsel %vm4881_vm0, %v8973_v63, 0.0  ;;  %v4919_v42 = vadd.f32 %v4918_v8, %v4917_v27 }
 0x249   :  { %7045 = vrsqrt.f32 %v5030_v28  ;;  %v4914_v41 = vadd.f32 %v4913_v35, %v4912_v26  ;;  %v4875_v43 = vrot.slane %v4861_v37, %v8914_v25  ;;  %v5202_v45 = vrot.slane %v8990_v34, %v8889_v6 }
 0x24a   :  { %v5064_v5 = vrot.slane %v8982_v22, %v8897_v9  ;;  %v4928_v47 = vadd.f32 %v4927_v39, %v4926_v30  ;;  %v4932_v48 = vrot.slane %v4931_v40, 4  ;;  %v5210_v49 = vrot.slane %v8990_v34, %v8897_v9 }
 0x24b   :  { %v4915_v50 = vrot.slane %v4914_v41, 1  ;;  %v4920_v51 = vrot.slane %v4919_v42, 2  ;;  %v4876_v53 = vcombine.low %v4868_v31, %v4875_v43  ;;  %v5060_v54 = vrot.slane %v8982_v22, %v8900_v10 }
 0x24c   :  { %v5206_v55 = vrot.slane %v8990_v34, %v8900_v10  ;;  %v4929_v56 = vrot.slane %v4928_v47, 1  ;;  %v4933_v59 = vadd.f32 %v4932_v48, %v4931_v40  ;;  %v5106_v60 = vrot.slane %v9002_v44, %v8889_v6 }
 0x24d   :  { %v5252_v61 = vrot.slane %v9009_v46, %v8889_v6  ;;  %v4916_v62 = vadd.f32 %v4915_v50, %v4914_v41  ;;  %v4921_v7 = vadd.f32 %v4920_v51, %v4919_v42  ;;  %4880 = vst [vmem:[%s9419_s18 + $0x8] sm:$0xff] %v4876_v53  ;;  %v5114_v0 = vrot.slane %v9002_v44, %v8897_v9 }
 0x24e   :  { %v5260_v1 = vrot.slane %v9009_v46, %v8897_v9  ;;  %v4930_v2 = vadd.f32 %v4929_v56, %v4928_v47  ;;  %v4934_v4 = vrot.slane %v4933_v59, 2  ;;  %v5110_v14 = vrot.slane %v9002_v44, %v8900_v10 }
 0x24f   :  { %v5256_v16 = vrot.slane %v9009_v46, %v8900_v10  ;;  %v4943_v17 = vmul.f32 0.5, %v4916_v62  ;;  %v4922_v18 = vrot.slane %v4921_v7, 1  ;;  %v5068_v20 = vrot.slane %v8982_v22, %v8903_v12 }
 0x250   :  { %v7040_v19 = vpop.eup %7039  ;;  %v5214_v21 = vrot.slane %v8990_v34, %v8903_v12  ;;  %v4945_v23 = vmul.f32 0.5, %v4930_v2  ;;  %v4935_v24 = vadd.f32 %v4934_v4, %v4933_v59  ;;  %v5118_v28 = vrot.slane %v9002_v44, %v8903_v12 }
 0x251   :  { %v7042_v26 = vpop.eup %7041  ;;  %v9039_v27 = vmul.f32 %v7040_v19, %v8925_v3  ;;  %v5264_v30 = vrot.slane %v9009_v46, %v8903_v12  ;;  %v9046_v31 = vsub.f32 %v8965_v52, %v4943_v17  ;;  %v4923_v39 = vadd.f32 %v4922_v18, %v4921_v7 }
 0x252   :  { %v7044_v35 = vpop.eup %7043  ;;  %v9049_v8 = vmul.f32 %v7042_v26, %v8927_v11  ;;  %v9052_v37 = vsub.f32 %v8967_v57, %v4945_v23  ;;  %v4936_v40 = vrot.slane %v4935_v24, 1 }
 0x253   :  { %v7046_v3 = vpop.eup %7045  ;;  %v5093_v41 = vmul.f32 %v5056_v38, %v9039_v27  ;;  %v5239_v42 = vmul.f32 %v5202_v45, %v9039_v27  ;;  %v9057_v43 = vmul.f32 %v7044_v35, %v8929_v13  ;;  %v4959_v52 = vmul.f32 %v9046_v31, %v9046_v31 }
 0x254   :  { %v5095_v47 = vmul.f32 %v5064_v5, %v9049_v8  ;;  %v5241_v11 = vmul.f32 %v5210_v49, %v9049_v8  ;;  %v9064_v57 = vmul.f32 %v7046_v3, %v8933_v15  ;;  %v4961_v48 = vmul.f32 %v9052_v37, %v9052_v37 }
 0x255   :  { %v5143_v50 = vadd.f32 %v5106_v60, %v5093_v41  ;;  %v5289_v38 = vadd.f32 %v5252_v61, %v5239_v42  ;;  %v5094_v45 = vmul.f32 %v5060_v54, %v9057_v43  ;;  %v5240_v13 = vmul.f32 %v5206_v55, %v9057_v43 }
 0x256   :  { %v5145_v51 = vadd.f32 %v5114_v0, %v5095_v47  ;;  %v5291_v53 = vadd.f32 %v5260_v1, %v5241_v11  ;;  %v5096_v56 = vmul.f32 %v5068_v20, %v9064_v57  ;;  %v5242_v5 = vmul.f32 %v5214_v21, %v9064_v57 }
 0x257   :  { %v5144_v59 = vadd.f32 %v5110_v14, %v5094_v45  ;;  %v5290_v49 = vadd.f32 %v5256_v16, %v5240_v13  ;;  %v4991_v15 = vsel %vm4881_vm0, %v4959_v52, 0.0  ;;  %v5005_v62 = vsel %vm4881_vm0, %v4961_v48, 0.0 }
 0x258   :  { %v5146_v7 = vadd.f32 %v5118_v28, %v5096_v56  ;;  %v5292_v2 = vadd.f32 %v5264_v30, %v5242_v5  ;;  %v4992_v60 = vrot.slane %v4991_v15, 4  ;;  %v5006_v61 = vrot.slane %v5005_v62, 4 }
 0x259   :  { %v5159_v4 = vcombine.low %v5143_v50, %v5144_v59  ;;  %v5305_v54 = vcombine.low %v5289_v38, %v5290_v49  ;;  %v4944_v17 = vmul.f32 0.5, %v4923_v39  ;;  %v4937_v55 = vadd.f32 %v4936_v40, %v4935_v24 }
 0x25a   :  { %v5160_v0 = vcombine.low %v5145_v51, %v5146_v7  ;;  %v5306_v1 = vcombine.low %v5291_v53, %v5292_v2  ;;  %v4993_v18 = vadd.f32 %v4992_v60, %v4991_v15  ;;  %v5007_v19 = vadd.f32 %v5006_v61, %v5005_v62 }
 0x25b   :  { %v5167_v20 = vrot.slane %v5159_v4, %v8914_v25  ;;  %v5313_v14 = vrot.slane %v5305_v54, %v8914_v25  ;;  %v9077_v16 = vsub.f32 %v8969_v58, %v4944_v17  ;;  %v4946_v21 = vmul.f32 0.5, %v4937_v55 }
 0x25c   :  { %v5174_v23 = vrot.slane %v5160_v0, %v8914_v25  ;;  %v5320_v26 = vrot.slane %v5306_v1, %v8914_v25  ;;  %v4994_v28 = vrot.slane %v4993_v18, 2  ;;  %v5008_v30 = vrot.slane %v5007_v19, 2 }
 0x25d   :  { %v4960_v24 = vmul.f32 %v9077_v16, %v9077_v16  ;;  %v9084_v35 = vsub.f32 %v8973_v63, %v4946_v21  ;;  %v5080_v21 = vrot.slane %v8982_v22, %v8949_v32 }
 0x25e   :  { %v5175_v39 = vcombine.low %v5167_v20, %v5174_v23  ;;  %v5321_v40 = vcombine.low %v5313_v14, %v5320_v26  ;;  %v4995_v3 = vadd.f32 %v4994_v28, %v4993_v18  ;;  %v5009_v41 = vadd.f32 %v5008_v30, %v5007_v19 }
 0x25f   :  { %v4998_v58 = vsel %vm4881_vm0, %v4960_v24, 0.0  ;;  %v4962_v42 = vmul.f32 %v9084_v35, %v9084_v35  ;;  %v5072_v19 = vrot.slane %v8982_v22, %v8946_v29  ;;  %v5218_v20 = vrot.slane %v8990_v34, %v8946_v29 }
 0x260   :  { %5195 = vst [vmem:[#allocation4] sm:$0xff] %v5175_v39  ;;  %5341 = vst [vmem:[#allocation6] sm:$0xff] %v5321_v40  ;;  %v4996_v52 = vrot.slane %v4995_v3, 1  ;;  %v5010_v47 = vrot.slane %v5009_v41, 1  ;;  %v4999_v11 = vrot.slane %v4998_v58, 4  ;;  %v5226_v23 = vrot.slane %v8990_v34, %v8949_v32 }
 0x261   :  { %v5012_v48 = vsel %vm4881_vm0, %v4962_v42, 0.0  ;;  %v5268_v28 = vrot.slane %v9009_v46, %v8946_v29  ;;  %v5076_v24 = vrot.slane %v8982_v22, %v8952_v33  ;;  %v5222_v39 = vrot.slane %v8990_v34, %v8952_v33 }
 0x262   :  { %v4997_v50 = vadd.f32 %v4996_v52, %v4995_v3  ;;  %v5011_v38 = vadd.f32 %v5010_v47, %v5009_v41  ;;  %v5000_v63 = vadd.f32 %v4999_v11, %v4998_v58  ;;  %v5013_v45 = vrot.slane %v5012_v48, 4 }
 0x263   :  { %v5276_v58 = vrot.slane %v9009_v46, %v8949_v32  ;;  %v5272_v52 = vrot.slane %v9009_v46, %v8952_v33  ;;  %v5084_v47 = vrot.slane %v8982_v22, %v8955_v36  ;;  %v5230_v11 = vrot.slane %v8990_v34, %v8955_v36 }
 0x264   :  { %v5023_v13 = vmul.f32 0.5, %v4997_v50  ;;  %v5025_v51 = vmul.f32 0.5, %v5011_v38  ;;  %v5001_v53 = vrot.slane %v5000_v63, 2  ;;  %v5014_v56 = vadd.f32 %v5013_v45, %v5012_v48 }
 0x265   :  { %v5280_v38 = vrot.slane %v9009_v46, %v8955_v36 }
 0x266   :  { %v5031_v5 = vadd.f32 1e-05, %v5023_v13  ;;  %v5033_v59 = vadd.f32 1e-05, %v5025_v51  ;;  %v5002_v49 = vadd.f32 %v5001_v53, %v5000_v63  ;;  %v5015_v15 = vrot.slane %v5014_v56, 2 }
 0x268   :  { %7047 = vrsqrt.f32 %v5031_v5  ;;  %v5003_v62 = vrot.slane %v5002_v49, 1  ;;  %v5016_v7 = vadd.f32 %v5015_v15, %v5014_v56 }
 0x269   :  { %7049 = vrsqrt.f32 %v5033_v59 }
 0x26a   :  { %v5004_v2 = vadd.f32 %v5003_v62, %v5002_v49  ;;  %v5017_v60 = vrot.slane %v5016_v7, 1 }
 0x26c   :  { %v5024_v61 = vmul.f32 0.5, %v5004_v2  ;;  %v5018_v4 = vadd.f32 %v5017_v60, %v5016_v7 }
 0x26e   :  { %v5032_v54 = vadd.f32 1e-05, %v5024_v61  ;;  %v5026_v17 = vmul.f32 0.5, %v5018_v4 }
 0x270   :  { %7051 = vrsqrt.f32 %v5032_v54  ;;  %v5034_v55 = vadd.f32 1e-05, %v5026_v17 }
 0x272   :  { %v7048_v0 = vpop.eup %7047  ;;  %7053 = vrsqrt.f32 %v5034_v55 }
 0x273   :  { %v7050_v1 = vpop.eup %7049  ;;  %v9091_v18 = vmul.f32 %v7048_v0, %v9046_v31  ;;  %v5122_v31 = vrot.slane %v9002_v44, %v8946_v29  ;;  %v5126_v29 = vrot.slane %v9002_v44, %v8952_v33 }
 0x274   :  { %v9098_v14 = vmul.f32 %v7050_v1, %v9052_v37  ;;  %v5130_v37 = vrot.slane %v9002_v44, %v8949_v32  ;;  %v5134_v32 = vrot.slane %v9002_v44, %v8955_v36 }
 0x275   :  { %v5097_v26 = vmul.f32 %v5072_v19, %v9091_v18  ;;  %v5243_v30 = vmul.f32 %v5218_v20, %v9091_v18 }
 0x276   :  { %v5099_v3 = vmul.f32 %v5080_v21, %v9098_v14  ;;  %v5245_v41 = vmul.f32 %v5226_v23, %v9098_v14 }
 0x277   :  { %v5147_v50 = vadd.f32 %v5122_v31, %v5097_v26  ;;  %v5293_v63 = vadd.f32 %v5268_v28, %v5243_v30 }
 0x278   :  { %v5149_v22 = vadd.f32 %v5130_v37, %v5099_v3  ;;  %v5295_v13 = vadd.f32 %v5276_v58, %v5245_v41 }
 0x27a   :  { %v7052_v40 = vpop.eup %7051 }
 0x27b   :  { %v9123_v42 = vmul.f32 %v7052_v40, %v9077_v16 }
 0x27c   :  { %v7054_v48 = vpop.eup %7053 }
 0x27d   :  { %v5098_v16 = vmul.f32 %v5076_v24, %v9123_v42  ;;  %v5244_v45 = vmul.f32 %v5222_v39, %v9123_v42  ;;  %v9138_v33 = vmul.f32 %v7054_v48, %v9084_v35 }
 0x27f   :  { %v5148_v51 = vadd.f32 %v5126_v29, %v5098_v16  ;;  %v5294_v34 = vadd.f32 %v5272_v52, %v5244_v45  ;;  %v5100_v53 = vmul.f32 %v5084_v47, %v9138_v33  ;;  %v5246_v56 = vmul.f32 %v5230_v11, %v9138_v33 }
 0x281   :  { %v5176_v44 = vcombine.low %v5147_v50, %v5148_v51  ;;  %v5322_v5 = vcombine.low %v5293_v63, %v5294_v34  ;;  %v5150_v59 = vadd.f32 %v5134_v32, %v5100_v53  ;;  %v5296_v36 = vadd.f32 %v5280_v38, %v5246_v56 }
 0x283   :  { %v5184_v46 = vrot.slane %v5176_v44, %v8914_v25  ;;  %v5330_v49 = vrot.slane %v5322_v5, %v8914_v25  ;;  %v5177_v15 = vcombine.low %v5149_v22, %v5150_v59  ;;  %v5323_v62 = vcombine.low %v5295_v13, %v5296_v36 }
 0x285   :  { %v5191_v35 = vrot.slane %v5177_v15, %v8914_v25  ;;  %v5337_v7 = vrot.slane %v5323_v62, %v8914_v25 }
 0x287   :  { %v5192_v2 = vcombine.low %v5184_v46, %v5191_v35  ;;  %v5338_v60 = vcombine.low %v5330_v49, %v5337_v7 }
 0x289   :  { %5196 = vst [vmem:[#allocation4 + $0x8] sm:$0xff] %v5192_v2  ;;  %5342 = vst [vmem:[#allocation6 + $0x8] sm:$0xff] %v5338_v60 }
 0x28a   :  { %7203 = dma.done.wait [#allocation3], 32768 }
 0x28b   :  { %7204 = vsyncadd [#allocation3], 4294934528  ;;  %v5348_v61 = vpack.c.bf16 %v9057_v43, %v9057_v43  ;;  %v5356_v4 = vld [vmem:[#allocation2 + $0x8] sm:$0xff]  ;;  %v5358_v54 = vld [vmem:[#allocation2 + $0x18] sm:$0xff]  ;;  %vm7214_vm1 = vmmov 0  }
 0x28c   :  { %v5355_v17 = vld [vmem:[#allocation2] sm:$0xff]  ;;  %5633 = vmatprep.subr.bf16.mxu0 %v5356_v4  ;;  %5797 = vmatprep.subr.bf16.mxu1 %v5358_v54  ;;  %v5357_v55 = vld [vmem:[#allocation2 + $0x10] sm:$0xff]  ;;  %v5360_v0 = vld [vmem:[#allocation2 + $0x28] sm:$0xff] }
 0x28d   :  { %5665 = vmatprep.mubr.bf16.mxu0 %v5348_v61  ;;  %5829 = vmatprep.mubr.bf16.mxu1 %v5348_v61  ;;  %v5362_v1 = vld [vmem:[#allocation2 + $0x38] sm:$0xff]  ;;  %v5359_v25 = vld [vmem:[#allocation2 + $0x20] sm:$0xff]  ;;  %v5361_v19 = vld [vmem:[#allocation2 + $0x30] sm:$0xff] }
 0x28e   :  { %5634 = vmatpush1.bf16.msra.mxu0 %v5355_v17  ;;  %5798 = vmatpush1.bf16.msra.mxu1 %v5357_v55  ;;  %v5364_v20 = vld [vmem:[#allocation2 + $0x48] sm:$0xff]  ;;  %v5366_v21 = vld [vmem:[#allocation2 + $0x58] sm:$0xff]  ;;  %v5363_v43 = vld [vmem:[#allocation2 + $0x40] sm:$0xff] }
 0x28f   :  { %5635 = vmatprep.subr.bf16.mxu0 %v5360_v0  ;;  %5799 = vmatprep.subr.bf16.mxu1 %v5362_v1  ;;  %v5365_v23 = vld [vmem:[#allocation2 + $0x50] sm:$0xff]  ;;  %v5368_v26 = vld [vmem:[#allocation2 + $0x68] sm:$0xff]  ;;  %v5370_v31 = vld [vmem:[#allocation2 + $0x78] sm:$0xff] }
 0x290   :  { %v5367_v28 = vld [vmem:[#allocation2 + $0x60] sm:$0xff]  ;;  %v5369_v30 = vld [vmem:[#allocation2 + $0x70] sm:$0xff]  ;;  %v5372_v37 = vld [vmem:[#allocation2 + $0x88] sm:$0xff] }
 0x291   :  { %v5374_v24 = vld [vmem:[#allocation2 + $0x98] sm:$0xff]  ;;  %v5371_v39 = vld [vmem:[#allocation2 + $0x80] sm:$0xff]  ;;  %v5373_v40 = vld [vmem:[#allocation2 + $0x90] sm:$0xff] }
 0x292   :  { %5636 = vmatpush1.bf16.msra.mxu0 %v5359_v25  ;;  %5800 = vmatpush1.bf16.msra.mxu1 %v5361_v19  ;;  %v5376_v3 = vld [vmem:[#allocation2 + $0xa8] sm:$0xff]  ;;  %v5378_v41 = vld [vmem:[#allocation2 + $0xb8] sm:$0xff]  ;;  %v5375_v58 = vld [vmem:[#allocation2 + $0xa0] sm:$0xff] }
 0x293   :  { %5637 = vmatprep.subr.bf16.mxu0 %v5364_v20  ;;  %5801 = vmatprep.subr.bf16.mxu1 %v5366_v21  ;;  %v5377_v29 = vld [vmem:[#allocation2 + $0xb0] sm:$0xff]  ;;  %v5380_v52 = vld [vmem:[#allocation2 + $0xc8] sm:$0xff]  ;;  %v5382_v47 = vld [vmem:[#allocation2 + $0xd8] sm:$0xff] }
 0x294   :  { %v5379_v11 = vld [vmem:[#allocation2 + $0xc0] sm:$0xff]  ;;  %v5381_v48 = vld [vmem:[#allocation2 + $0xd0] sm:$0xff]  ;;  %v5384_v50 = vld [vmem:[#allocation2 + $0xe8] sm:$0xff] }
 0x295   :  { %v5386_v32 = vld [vmem:[#allocation2 + $0xf8] sm:$0xff]  ;;  %v5383_v38 = vld [vmem:[#allocation2 + $0xe0] sm:$0xff]  ;;  %v5385_v63 = vld [vmem:[#allocation2 + $0xf0] sm:$0xff] }
 0x296   :  { %5638 = vmatpush1.bf16.msra.mxu0 %v5363_v43  ;;  %5802 = vmatpush1.bf16.msra.mxu1 %v5365_v23  ;;  %v5388_v16 = vld [vmem:[#allocation2 + $0x108] sm:$0xff]  ;;  %v5390_v45 = vld [vmem:[#allocation2 + $0x118] sm:$0xff]  ;;  %v5387_v22 = vld [vmem:[#allocation2 + $0x100] sm:$0xff] }
 0x297   :  { %5639 = vmatprep.subr.bf16.mxu0 %v5368_v26  ;;  %5803 = vmatprep.subr.bf16.mxu1 %v5370_v31  ;;  %v5389_v13 = vld [vmem:[#allocation2 + $0x110] sm:$0xff]  ;;  %v5392_v51 = vld [vmem:[#allocation2 + $0x128] sm:$0xff]  ;;  %v5394_v34 = vld [vmem:[#allocation2 + $0x138] sm:$0xff]  ;;  %v5347_v31 = vpack.c.bf16 %v9039_v27, %v9039_v27 }
 0x298   :  { %v5391_v53 = vld [vmem:[#allocation2 + $0x120] sm:$0xff]  ;;  %v5393_v56 = vld [vmem:[#allocation2 + $0x130] sm:$0xff]  ;;  %v5396_v44 = vld [vmem:[#allocation2 + $0x148] sm:$0xff] }
 0x299   :  { %v5398_v5 = vld [vmem:[#allocation2 + $0x158] sm:$0xff]  ;;  %v5395_v59 = vld [vmem:[#allocation2 + $0x140] sm:$0xff]  ;;  %v5397_v36 = vld [vmem:[#allocation2 + $0x150] sm:$0xff] }
 0x29a   :  { %5640 = vmatpush1.bf16.msra.mxu0 %v5367_v28  ;;  %5804 = vmatpush1.bf16.msra.mxu1 %v5369_v30  ;;  %v5400_v46 = vld [vmem:[#allocation2 + $0x168] sm:$0xff]  ;;  %v5402_v49 = vld [vmem:[#allocation2 + $0x178] sm:$0xff]  ;;  %v5399_v15 = vld [vmem:[#allocation2 + $0x160] sm:$0xff] }
 0x29b   :  { %5641 = vmatprep.subr.bf16.mxu0 %v5372_v37  ;;  %5805 = vmatprep.subr.bf16.mxu1 %v5374_v24  ;;  %v5401_v62 = vld [vmem:[#allocation2 + $0x170] sm:$0xff]  ;;  %v5404_v35 = vld [vmem:[#allocation2 + $0x188] sm:$0xff]  ;;  %v5406_v7 = vld [vmem:[#allocation2 + $0x198] sm:$0xff] }
 0x29c   :  { %v5403_v2 = vld [vmem:[#allocation2 + $0x180] sm:$0xff]  ;;  %v5405_v60 = vld [vmem:[#allocation2 + $0x190] sm:$0xff]  ;;  %v5408_v61 = vld [vmem:[#allocation2 + $0x1a8] sm:$0xff] }
 0x29d   :  { %v5410_v4 = vld [vmem:[#allocation2 + $0x1b8] sm:$0xff]  ;;  %v5407_v54 = vld [vmem:[#allocation2 + $0x1a0] sm:$0xff]  ;;  %v5409_v17 = vld [vmem:[#allocation2 + $0x1b0] sm:$0xff] }
 0x29e   :  { %5642 = vmatpush1.bf16.msra.mxu0 %v5371_v39  ;;  %5806 = vmatpush1.bf16.msra.mxu1 %v5373_v40  ;;  %v5412_v55 = vld [vmem:[#allocation2 + $0x1c8] sm:$0xff]  ;;  %v5414_v0 = vld [vmem:[#allocation2 + $0x1d8] sm:$0xff]  ;;  %v5411_v1 = vld [vmem:[#allocation2 + $0x1c0] sm:$0xff]  ;;  %v5350_v39 = vpack.c.bf16 %v9064_v57, %v9064_v57 }
 0x29f   :  { %5643 = vmatprep.subr.bf16.mxu0 %v5376_v3  ;;  %5807 = vmatprep.subr.bf16.mxu1 %v5378_v41  ;;  %v5413_v25 = vld [vmem:[#allocation2 + $0x1d0] sm:$0xff]  ;;  %v5416_v19 = vld [vmem:[#allocation2 + $0x1e8] sm:$0xff]  ;;  %v5418_v20 = vld [vmem:[#allocation2 + $0x1f8] sm:$0xff] }
 0x2a0   :  { %v5415_v21 = vld [vmem:[#allocation2 + $0x1e0] sm:$0xff]  ;;  %v5417_v43 = vld [vmem:[#allocation2 + $0x1f0] sm:$0xff]  ;;  %v5420_v23 = vld [vmem:[#allocation2 + $0x208] sm:$0xff] }
 0x2a1   :  { %v5422_v26 = vld [vmem:[#allocation2 + $0x218] sm:$0xff]  ;;  %v5419_v28 = vld [vmem:[#allocation2 + $0x200] sm:$0xff]  ;;  %v5421_v30 = vld [vmem:[#allocation2 + $0x210] sm:$0xff] }
 0x2a2   :  { %5644 = vmatpush1.bf16.msra.mxu0 %v5375_v58  ;;  %5808 = vmatpush1.bf16.msra.mxu1 %v5377_v29  ;;  %v5424_v37 = vld [vmem:[#allocation2 + $0x228] sm:$0xff]  ;;  %v5426_v24 = vld [vmem:[#allocation2 + $0x238] sm:$0xff]  ;;  %v5423_v40 = vld [vmem:[#allocation2 + $0x220] sm:$0xff] }
 0x2a3   :  { %5645 = vmatprep.subr.bf16.mxu0 %v5380_v52  ;;  %5809 = vmatprep.subr.bf16.mxu1 %v5382_v47  ;;  %v5425_v3 = vld [vmem:[#allocation2 + $0x230] sm:$0xff]  ;;  %v5428_v27 = vld [vmem:[#allocation2 + $0x248] sm:$0xff]  ;;  %v5430_v41 = vld [vmem:[#allocation2 + $0x258] sm:$0xff] }
 0x2a4   :  { %v5427_v58 = vld [vmem:[#allocation2 + $0x240] sm:$0xff]  ;;  %v5429_v29 = vld [vmem:[#allocation2 + $0x250] sm:$0xff]  ;;  %v5432_v52 = vld [vmem:[#allocation2 + $0x268] sm:$0xff] }
 0x2a5   :  { %v5434_v57 = vld [vmem:[#allocation2 + $0x278] sm:$0xff]  ;;  %v5431_v47 = vld [vmem:[#allocation2 + $0x260] sm:$0xff] }
 0x2a6   :  { %5646 = vmatpush1.bf16.msra.mxu0 %v5379_v11  ;;  %5810 = vmatpush1.bf16.msra.mxu1 %v5381_v48  ;;  %v5433_v11 = vld [vmem:[#allocation2 + $0x270] sm:$0xff]  ;;  %v5436_v48 = vld [vmem:[#allocation2 + $0x288] sm:$0xff] }
 0x2a7   :  { %5647 = vmatprep.subr.bf16.mxu0 %v5384_v50  ;;  %5811 = vmatprep.subr.bf16.mxu1 %v5386_v32  ;;  %v5438_v50 = vld [vmem:[#allocation2 + $0x298] sm:$0xff]  ;;  %v5435_v32 = vld [vmem:[#allocation2 + $0x280] sm:$0xff] }
 0x2aa   :  { %5648 = vmatpush1.bf16.msra.mxu0 %v5383_v38  ;;  %5812 = vmatpush1.bf16.msra.mxu1 %v5385_v63  ;;  %v5437_v38 = vld [vmem:[#allocation2 + $0x290] sm:$0xff]  ;;  %v5440_v63 = vld [vmem:[#allocation2 + $0x2a8] sm:$0xff] }
 0x2ab   :  { %5649 = vmatprep.subr.bf16.mxu0 %v5388_v16  ;;  %5813 = vmatprep.subr.bf16.mxu1 %v5390_v45  ;;  %v5442_v16 = vld [vmem:[#allocation2 + $0x2b8] sm:$0xff]  ;;  %v5439_v45 = vld [vmem:[#allocation2 + $0x2a0] sm:$0xff] }
 0x2ae   :  { %5650 = vmatpush1.bf16.msra.mxu0 %v5387_v22  ;;  %5814 = vmatpush1.bf16.msra.mxu1 %v5389_v13  ;;  %v5441_v22 = vld [vmem:[#allocation2 + $0x2b0] sm:$0xff]  ;;  %v5444_v13 = vld [vmem:[#allocation2 + $0x2c8] sm:$0xff] }
 0x2af   :  { %5651 = vmatprep.subr.bf16.mxu0 %v5392_v51  ;;  %5815 = vmatprep.subr.bf16.mxu1 %v5394_v34  ;;  %v5446_v51 = vld [vmem:[#allocation2 + $0x2d8] sm:$0xff]  ;;  %v5443_v34 = vld [vmem:[#allocation2 + $0x2c0] sm:$0xff] }
 0x2b2   :  { %5652 = vmatpush1.bf16.msra.mxu0 %v5391_v53  ;;  %5816 = vmatpush1.bf16.msra.mxu1 %v5393_v56  ;;  %v5445_v53 = vld [vmem:[#allocation2 + $0x2d0] sm:$0xff]  ;;  %v5448_v56 = vld [vmem:[#allocation2 + $0x2e8] sm:$0xff] }
 0x2b3   :  { %5653 = vmatprep.subr.bf16.mxu0 %v5396_v44  ;;  %5817 = vmatprep.subr.bf16.mxu1 %v5398_v5  ;;  %v5450_v44 = vld [vmem:[#allocation2 + $0x2f8] sm:$0xff]  ;;  %v5447_v5 = vld [vmem:[#allocation2 + $0x2e0] sm:$0xff] }
 0x2b6   :  { %5654 = vmatpush1.bf16.msra.mxu0 %v5395_v59  ;;  %5818 = vmatpush1.bf16.msra.mxu1 %v5397_v36  ;;  %v5449_v59 = vld [vmem:[#allocation2 + $0x2f0] sm:$0xff]  ;;  %v5452_v36 = vld [vmem:[#allocation2 + $0x308] sm:$0xff] }
 0x2b7   :  { %5655 = vmatprep.subr.bf16.mxu0 %v5400_v46  ;;  %5819 = vmatprep.subr.bf16.mxu1 %v5402_v49  ;;  %v5454_v46 = vld [vmem:[#allocation2 + $0x318] sm:$0xff]  ;;  %v5451_v49 = vld [vmem:[#allocation2 + $0x300] sm:$0xff] }
 0x2ba   :  { %5656 = vmatpush1.bf16.msra.mxu0 %v5399_v15  ;;  %5820 = vmatpush1.bf16.msra.mxu1 %v5401_v62  ;;  %v5453_v15 = vld [vmem:[#allocation2 + $0x310] sm:$0xff]  ;;  %v5456_v62 = vld [vmem:[#allocation2 + $0x328] sm:$0xff] }
 0x2bb   :  { %5657 = vmatprep.subr.bf16.mxu0 %v5404_v35  ;;  %5821 = vmatprep.subr.bf16.mxu1 %v5406_v7  ;;  %v5458_v35 = vld [vmem:[#allocation2 + $0x338] sm:$0xff]  ;;  %v5455_v7 = vld [vmem:[#allocation2 + $0x320] sm:$0xff] }
 0x2be   :  { %5658 = vmatpush1.bf16.msra.mxu0 %v5403_v2  ;;  %5822 = vmatpush1.bf16.msra.mxu1 %v5405_v60  ;;  %v5457_v2 = vld [vmem:[#allocation2 + $0x330] sm:$0xff]  ;;  %v5460_v60 = vld [vmem:[#allocation2 + $0x348] sm:$0xff] }
 0x2bf   :  { %5659 = vmatprep.subr.bf16.mxu0 %v5408_v61  ;;  %5823 = vmatprep.subr.bf16.mxu1 %v5410_v4  ;;  %v5462_v61 = vld [vmem:[#allocation2 + $0x358] sm:$0xff]  ;;  %v5459_v4 = vld [vmem:[#allocation2 + $0x340] sm:$0xff] }
 0x2c2   :  { %5660 = vmatpush1.bf16.msra.mxu0 %v5407_v54  ;;  %5824 = vmatpush1.bf16.msra.mxu1 %v5409_v17  ;;  %v5461_v54 = vld [vmem:[#allocation2 + $0x350] sm:$0xff]  ;;  %v5464_v17 = vld [vmem:[#allocation2 + $0x368] sm:$0xff] }
 0x2c3   :  { %5661 = vmatprep.subr.bf16.mxu0 %v5412_v55  ;;  %5825 = vmatprep.subr.bf16.mxu1 %v5414_v0  ;;  %v5466_v55 = vld [vmem:[#allocation2 + $0x378] sm:$0xff]  ;;  %v5463_v0 = vld [vmem:[#allocation2 + $0x360] sm:$0xff] }
 0x2c6   :  { %5662 = vmatpush1.bf16.msra.mxu0 %v5411_v1  ;;  %5826 = vmatpush1.bf16.msra.mxu1 %v5413_v25  ;;  %v5465_v1 = vld [vmem:[#allocation2 + $0x370] sm:$0xff]  ;;  %v5468_v25 = vld [vmem:[#allocation2 + $0x388] sm:$0xff] }
 0x2c7   :  { %5663 = vmatprep.subr.bf16.mxu0 %v5416_v19  ;;  %5827 = vmatprep.subr.bf16.mxu1 %v5418_v20  ;;  %v5470_v19 = vld [vmem:[#allocation2 + $0x398] sm:$0xff]  ;;  %v5467_v20 = vld [vmem:[#allocation2 + $0x380] sm:$0xff] }
 0x2ca   :  { %5664 = vmatpush1.bf16.msra.mxu0 %v5415_v21  ;;  %5828 = vmatpush1.bf16.msra.mxu1 %v5417_v43  ;;  %v5469_v21 = vld [vmem:[#allocation2 + $0x390] sm:$0xff]  ;;  %v5472_v43 = vld [vmem:[#allocation2 + $0x3a8] sm:$0xff] }
 0x2cb   :  { %5674 = vmatprep.subr.bf16.mxu0 %v5420_v23  ;;  %5838 = vmatprep.subr.bf16.mxu1 %v5422_v26  ;;  %v5474_v23 = vld [vmem:[#allocation2 + $0x3b8] sm:$0xff]  ;;  %v5471_v26 = vld [vmem:[#allocation2 + $0x3a0] sm:$0xff] }
 0x2cd   :  { %5666 = vmatmul.mubr.bf16.vlgmr.msra.gmra.mrb[8].mxu0 %v5347_v31  ;;  %5830 = vmatmul.mubr.bf16.vlgmr.msra.gmra.mrb[8].mxu1 %v5347_v31  ;;  %v5473_v31 = vld [vmem:[#allocation2 + $0x3b0] sm:$0xff] }
 0x2ce   :  { %5675 = vmatpush1.bf16.msra.mxu0 %v5419_v28  ;;  %5839 = vmatpush1.bf16.msra.mxu1 %v5421_v30  ;;  %v5476_v28 = vld [vmem:[#allocation2 + $0x3c8] sm:$0xff]  ;;  %v5478_v30 = vld [vmem:[#allocation2 + $0x3d8] sm:$0xff] }
 0x2cf   :  { %5676 = vmatprep.subr.bf16.mxu0 %v5424_v37  ;;  %5840 = vmatprep.subr.bf16.mxu1 %v5426_v24  ;;  %v5475_v37 = vld [vmem:[#allocation2 + $0x3c0] sm:$0xff]  ;;  %v5477_v24 = vld [vmem:[#allocation2 + $0x3d0] sm:$0xff] }
 0x2d0   :  { %5706 = vmatprep.mubr.bf16.mxu0 %v5350_v39  ;;  %5870 = vmatprep.mubr.bf16.mxu1 %v5350_v39  ;;  %v5480_v39 = vld [vmem:[#allocation2 + $0x3e8] sm:$0xff] }
 0x2d2   :  { %5677 = vmatpush1.bf16.msra.mxu0 %v5423_v40  ;;  %5841 = vmatpush1.bf16.msra.mxu1 %v5425_v3  ;;  %v5482_v40 = vld [vmem:[#allocation2 + $0x3f8] sm:$0xff]  ;;  %v5479_v3 = vld [vmem:[#allocation2 + $0x3e0] sm:$0xff] }
 0x2d3   :  { %5678 = vmatprep.subr.bf16.mxu0 %v5428_v27  ;;  %5842 = vmatprep.subr.bf16.mxu1 %v5430_v41  ;;  %v5481_v27 = vld [vmem:[#allocation2 + $0x3f0] sm:$0xff]  ;;  %v5484_v41 = vld [vmem:[#allocation2 + $0x408] sm:$0xff] }
 0x2d6   :  { %5679 = vmatpush1.bf16.msra.mxu0 %v5427_v58  ;;  %5843 = vmatpush1.bf16.msra.mxu1 %v5429_v29  ;;  %v5486_v58 = vld [vmem:[#allocation2 + $0x418] sm:$0xff]  ;;  %v5349_v29 = vpack.c.bf16 %v9049_v8, %v9049_v8  ;;  %v5492_v8 = vld [vmem:[#allocation2 + $0x448] sm:$0xff] }
 0x2d7   :  { %5680 = vmatprep.subr.bf16.mxu0 %v5432_v52  ;;  %5844 = vmatprep.subr.bf16.mxu1 %v5434_v57  ;;  %v5483_v52 = vld [vmem:[#allocation2 + $0x400] sm:$0xff]  ;;  %v5485_v57 = vld [vmem:[#allocation2 + $0x410] sm:$0xff] }
 0x2da   :  { %5681 = vmatpush1.bf16.msra.mxu0 %v5431_v47  ;;  %5845 = vmatpush1.bf16.msra.mxu1 %v5433_v11  ;;  %v5488_v47 = vld [vmem:[#allocation2 + $0x428] sm:$0xff]  ;;  %v5490_v11 = vld [vmem:[#allocation2 + $0x438] sm:$0xff] }
 0x2db   :  { %5682 = vmatprep.subr.bf16.mxu0 %v5436_v48  ;;  %5846 = vmatprep.subr.bf16.mxu1 %v5438_v50  ;;  %v5352_v48 = vpack.c.bf16 %v9123_v42, %v9123_v42  ;;  %v5487_v50 = vld [vmem:[#allocation2 + $0x420] sm:$0xff]  ;;  %v5498_v42 = vld [vmem:[#allocation2 + $0x478] sm:$0xff] }
 0x2de   :  { %5683 = vmatpush1.bf16.msra.mxu0 %v5435_v32  ;;  %5847 = vmatpush1.bf16.msra.mxu1 %v5437_v38  ;;  %v5489_v32 = vld [vmem:[#allocation2 + $0x430] sm:$0xff]  ;;  %v5494_v38 = vld [vmem:[#allocation2 + $0x458] sm:$0xff] }
 0x2df   :  { %5684 = vmatprep.subr.bf16.mxu0 %v5440_v63  ;;  %5848 = vmatprep.subr.bf16.mxu1 %v5442_v16  ;;  %v5491_v63 = vld [vmem:[#allocation2 + $0x440] sm:$0xff]  ;;  %v5493_v16 = vld [vmem:[#allocation2 + $0x450] sm:$0xff] }
 0x2e2   :  { %5685 = vmatpush1.bf16.msra.mxu0 %v5439_v45  ;;  %5849 = vmatpush1.bf16.msra.mxu1 %v5441_v22  ;;  %v5496_v45 = vld [vmem:[#allocation2 + $0x468] sm:$0xff]  ;;  %v5495_v22 = vld [vmem:[#allocation2 + $0x460] sm:$0xff] }
 0x2e3   :  { %5686 = vmatprep.subr.bf16.mxu0 %v5444_v13  ;;  %5850 = vmatprep.subr.bf16.mxu1 %v5446_v51  ;;  %v5497_v13 = vld [vmem:[#allocation2 + $0x470] sm:$0xff]  ;;  %v5500_v51 = vld [vmem:[#allocation2 + $0x488] sm:$0xff] }
 0x2e6   :  { %5687 = vmatpush1.bf16.msra.mxu0 %v5443_v34  ;;  %5851 = vmatpush1.bf16.msra.mxu1 %v5445_v53  ;;  %v5502_v34 = vld [vmem:[#allocation2 + $0x498] sm:$0xff]  ;;  %v5499_v53 = vld [vmem:[#allocation2 + $0x480] sm:$0xff] }
 0x2e7   :  { %5688 = vmatprep.subr.bf16.mxu0 %v5448_v56  ;;  %5852 = vmatprep.subr.bf16.mxu1 %v5450_v44  ;;  %v5501_v56 = vld [vmem:[#allocation2 + $0x490] sm:$0xff]  ;;  %v5504_v44 = vld [vmem:[#allocation2 + $0x4a8] sm:$0xff] }
 0x2ea   :  { %5689 = vmatpush1.bf16.msra.mxu0 %v5447_v5  ;;  %5853 = vmatpush1.bf16.msra.mxu1 %v5449_v59  ;;  %v5506_v5 = vld [vmem:[#allocation2 + $0x4b8] sm:$0xff]  ;;  %v5503_v59 = vld [vmem:[#allocation2 + $0x4a0] sm:$0xff] }
 0x2eb   :  { %5690 = vmatprep.subr.bf16.mxu0 %v5452_v36  ;;  %5854 = vmatprep.subr.bf16.mxu1 %v5454_v46  ;;  %v5505_v36 = vld [vmem:[#allocation2 + $0x4b0] sm:$0xff]  ;;  %v5508_v46 = vld [vmem:[#allocation2 + $0x4c8] sm:$0xff] }
 0x2ee   :  { %5691 = vmatpush1.bf16.msra.mxu0 %v5451_v49  ;;  %5855 = vmatpush1.bf16.msra.mxu1 %v5453_v15  ;;  %v5510_v49 = vld [vmem:[#allocation2 + $0x4d8] sm:$0xff]  ;;  %v5507_v15 = vld [vmem:[#allocation2 + $0x4c0] sm:$0xff] }
 0x2ef   :  { %5692 = vmatprep.subr.bf16.mxu0 %v5456_v62  ;;  %5856 = vmatprep.subr.bf16.mxu1 %v5458_v35  ;;  %v5509_v62 = vld [vmem:[#allocation2 + $0x4d0] sm:$0xff]  ;;  %v5512_v35 = vld [vmem:[#allocation2 + $0x4e8] sm:$0xff] }
 0x2f2   :  { %5693 = vmatpush1.bf16.msra.mxu0 %v5455_v7  ;;  %5857 = vmatpush1.bf16.msra.mxu1 %v5457_v2  ;;  %v5514_v7 = vld [vmem:[#allocation2 + $0x4f8] sm:$0xff]  ;;  %v5511_v2 = vld [vmem:[#allocation2 + $0x4e0] sm:$0xff] }
 0x2f3   :  { %5694 = vmatprep.subr.bf16.mxu0 %v5460_v60  ;;  %5858 = vmatprep.subr.bf16.mxu1 %v5462_v61  ;;  %v5513_v60 = vld [vmem:[#allocation2 + $0x4f0] sm:$0xff]  ;;  %v5516_v61 = vld [vmem:[#allocation2 + $0x508] sm:$0xff] }
 0x2f6   :  { %5695 = vmatpush1.bf16.msra.mxu0 %v5459_v4  ;;  %5859 = vmatpush1.bf16.msra.mxu1 %v5461_v54  ;;  %v5518_v4 = vld [vmem:[#allocation2 + $0x518] sm:$0xff]  ;;  %v5515_v54 = vld [vmem:[#allocation2 + $0x500] sm:$0xff] }
 0x2f7   :  { %5696 = vmatprep.subr.bf16.mxu0 %v5464_v17  ;;  %5860 = vmatprep.subr.bf16.mxu1 %v5466_v55  ;;  %v5517_v17 = vld [vmem:[#allocation2 + $0x510] sm:$0xff]  ;;  %v5520_v55 = vld [vmem:[#allocation2 + $0x528] sm:$0xff] }
 0x2fa   :  { %5697 = vmatpush1.bf16.msra.mxu0 %v5463_v0  ;;  %5861 = vmatpush1.bf16.msra.mxu1 %v5465_v1  ;;  %v5522_v0 = vld [vmem:[#allocation2 + $0x538] sm:$0xff]  ;;  %v5519_v1 = vld [vmem:[#allocation2 + $0x520] sm:$0xff] }
 0x2fb   :  { %5698 = vmatprep.subr.bf16.mxu0 %v5468_v25  ;;  %5862 = vmatprep.subr.bf16.mxu1 %v5470_v19  ;;  %v5521_v25 = vld [vmem:[#allocation2 + $0x530] sm:$0xff]  ;;  %v5524_v19 = vld [vmem:[#allocation2 + $0x548] sm:$0xff] }
 0x2fe   :  { %5699 = vmatpush1.bf16.msra.mxu0 %v5467_v20  ;;  %5863 = vmatpush1.bf16.msra.mxu1 %v5469_v21  ;;  %v5526_v20 = vld [vmem:[#allocation2 + $0x558] sm:$0xff]  ;;  %v5523_v21 = vld [vmem:[#allocation2 + $0x540] sm:$0xff] }
 0x2ff   :  { %5700 = vmatprep.subr.bf16.mxu0 %v5472_v43  ;;  %5864 = vmatprep.subr.bf16.mxu1 %v5474_v23  ;;  %v5525_v43 = vld [vmem:[#allocation2 + $0x550] sm:$0xff]  ;;  %v5528_v23 = vld [vmem:[#allocation2 + $0x568] sm:$0xff] }
 0x302   :  { %5701 = vmatpush1.bf16.msra.mxu0 %v5471_v26  ;;  %5865 = vmatpush1.bf16.msra.mxu1 %v5473_v31  ;;  %v5530_v26 = vld [vmem:[#allocation2 + $0x578] sm:$0xff]  ;;  %v5527_v31 = vld [vmem:[#allocation2 + $0x560] sm:$0xff] }
 0x303   :  { %5702 = vmatprep.subr.bf16.mxu0 %v5476_v28  ;;  %5866 = vmatprep.subr.bf16.mxu1 %v5478_v30  ;;  %v5529_v28 = vld [vmem:[#allocation2 + $0x570] sm:$0xff]  ;;  %v5532_v30 = vld [vmem:[#allocation2 + $0x588] sm:$0xff] }
 0x306   :  { %5703 = vmatpush1.bf16.msra.mxu0 %v5475_v37  ;;  %5867 = vmatpush1.bf16.msra.mxu1 %v5477_v24  ;;  %v5534_v37 = vld [vmem:[#allocation2 + $0x598] sm:$0xff]  ;;  %v5531_v24 = vld [vmem:[#allocation2 + $0x580] sm:$0xff] }
 0x307   :  { %5704 = vmatprep.subr.bf16.mxu0 %v5480_v39  ;;  %5868 = vmatprep.subr.bf16.mxu1 %v5482_v40  ;;  %v5533_v39 = vld [vmem:[#allocation2 + $0x590] sm:$0xff]  ;;  %v5536_v40 = vld [vmem:[#allocation2 + $0x5a8] sm:$0xff] }
 0x30a   :  { %5705 = vmatpush1.bf16.msra.mxu0 %v5479_v3  ;;  %5869 = vmatpush1.bf16.msra.mxu1 %v5481_v27  ;;  %v5538_v3 = vld [vmem:[#allocation2 + $0x5b8] sm:$0xff]  ;;  %v5535_v27 = vld [vmem:[#allocation2 + $0x5a0] sm:$0xff] }
 0x30b   :  { %5715 = vmatprep.subr.bf16.mxu0 %v5484_v41  ;;  %5879 = vmatprep.subr.bf16.mxu1 %v5486_v58  ;;  %v5537_v41 = vld [vmem:[#allocation2 + $0x5b0] sm:$0xff]  ;;  %v5540_v58 = vld [vmem:[#allocation2 + $0x5c8] sm:$0xff] }
 0x30d   :  { %5707 = vmatmul.mubr.bf16.vlgmr.msra.gmra.mrb[8].mxu0 %v5349_v29  ;;  %5871 = vmatmul.mubr.bf16.vlgmr.msra.gmra.mrb[8].mxu1 %v5349_v29  ;;  %v5542_v29 = vld [vmem:[#allocation2 + $0x5d8] sm:$0xff] }
 0x30e   :  { %5716 = vmatpush1.bf16.msra.mxu0 %v5483_v52  ;;  %5880 = vmatpush1.bf16.msra.mxu1 %v5485_v57  ;;  %v5539_v52 = vld [vmem:[#allocation2 + $0x5c0] sm:$0xff]  ;;  %v5541_v57 = vld [vmem:[#allocation2 + $0x5d0] sm:$0xff] }
 0x30f   :  { %5717 = vmatprep.subr.bf16.mxu0 %v5488_v47  ;;  %5881 = vmatprep.subr.bf16.mxu1 %v5490_v11  ;;  %v5544_v47 = vld [vmem:[#allocation2 + $0x5e8] sm:$0xff]  ;;  %v5546_v11 = vld [vmem:[#allocation2 + $0x5f8] sm:$0xff] }
 0x310   :  { %5747 = vmatprep.mubr.bf16.mxu0 %v5352_v48  ;;  %5911 = vmatprep.mubr.bf16.mxu1 %v5352_v48  ;;  %v5543_v48 = vld [vmem:[#allocation2 + $0x5e0] sm:$0xff] }
 0x312   :  { %5718 = vmatpush1.bf16.msra.mxu0 %v5487_v50  ;;  %5882 = vmatpush1.bf16.msra.mxu1 %v5489_v32  ;;  %v5545_v50 = vld [vmem:[#allocation2 + $0x5f0] sm:$0xff]  ;;  %v5548_v32 = vld [vmem:[#allocation2 + $0x608] sm:$0xff] }
 0x313   :  { %5719 = vmatprep.subr.bf16.mxu0 %v5492_v8  ;;  %5883 = vmatprep.subr.bf16.mxu1 %v5494_v38  ;;  %v5550_v8 = vld [vmem:[#allocation2 + $0x618] sm:$0xff]  ;;  %v5351_v38 = vpack.c.bf16 %v9091_v18, %v9091_v18  ;;  %v5556_v18 = vld [vmem:[#allocation2 + $0x648] sm:$0xff] }
 0x316   :  { %5720 = vmatpush1.bf16.msra.mxu0 %v5491_v63  ;;  %5884 = vmatpush1.bf16.msra.mxu1 %v5493_v16  ;;  %v5547_v63 = vld [vmem:[#allocation2 + $0x600] sm:$0xff]  ;;  %v5549_v16 = vld [vmem:[#allocation2 + $0x610] sm:$0xff] }
 0x317   :  { %5721 = vmatprep.subr.bf16.mxu0 %v5496_v45  ;;  %5885 = vmatprep.subr.bf16.mxu1 %v5498_v42  ;;  %v5552_v45 = vld [vmem:[#allocation2 + $0x628] sm:$0xff]  ;;  %v5554_v42 = vld [vmem:[#allocation2 + $0x638] sm:$0xff] }
 0x31a   :  { %5722 = vmatpush1.bf16.msra.mxu0 %v5495_v22  ;;  %5886 = vmatpush1.bf16.msra.mxu1 %v5497_v13  ;;  %v5354_v22 = vpack.c.bf16 %v9138_v33, %v9138_v33  ;;  %v5551_v13 = vld [vmem:[#allocation2 + $0x620] sm:$0xff]  ;;  %v5562_v33 = vld [vmem:[#allocation2 + $0x678] sm:$0xff] }
 0x31b   :  { %5723 = vmatprep.subr.bf16.mxu0 %v5500_v51  ;;  %5887 = vmatprep.subr.bf16.mxu1 %v5502_v34  ;;  %v5553_v51 = vld [vmem:[#allocation2 + $0x630] sm:$0xff]  ;;  %v5558_v34 = vld [vmem:[#allocation2 + $0x658] sm:$0xff] }
 0x31e   :  { %5724 = vmatpush1.bf16.msra.mxu0 %v5499_v53  ;;  %5888 = vmatpush1.bf16.msra.mxu1 %v5501_v56  ;;  %v5555_v53 = vld [vmem:[#allocation2 + $0x640] sm:$0xff]  ;;  %v5557_v56 = vld [vmem:[#allocation2 + $0x650] sm:$0xff] }
 0x31f   :  { %5725 = vmatprep.subr.bf16.mxu0 %v5504_v44  ;;  %5889 = vmatprep.subr.bf16.mxu1 %v5506_v5  ;;  %v5560_v44 = vld [vmem:[#allocation2 + $0x668] sm:$0xff]  ;;  %v5559_v5 = vld [vmem:[#allocation2 + $0x660] sm:$0xff] }
 0x322   :  { %5726 = vmatpush1.bf16.msra.mxu0 %v5503_v59  ;;  %5890 = vmatpush1.bf16.msra.mxu1 %v5505_v36  ;;  %v5561_v59 = vld [vmem:[#allocation2 + $0x670] sm:$0xff]  ;;  %v5564_v36 = vld [vmem:[#allocation2 + $0x688] sm:$0xff] }
 0x323   :  { %5727 = vmatprep.subr.bf16.mxu0 %v5508_v46  ;;  %5891 = vmatprep.subr.bf16.mxu1 %v5510_v49  ;;  %v5566_v46 = vld [vmem:[#allocation2 + $0x698] sm:$0xff]  ;;  %v5563_v49 = vld [vmem:[#allocation2 + $0x680] sm:$0xff] }
 0x326   :  { %5728 = vmatpush1.bf16.msra.mxu0 %v5507_v15  ;;  %5892 = vmatpush1.bf16.msra.mxu1 %v5509_v62  ;;  %v5565_v15 = vld [vmem:[#allocation2 + $0x690] sm:$0xff]  ;;  %v5568_v62 = vld [vmem:[#allocation2 + $0x6a8] sm:$0xff] }
 0x327   :  { %5729 = vmatprep.subr.bf16.mxu0 %v5512_v35  ;;  %5893 = vmatprep.subr.bf16.mxu1 %v5514_v7  ;;  %v5570_v35 = vld [vmem:[#allocation2 + $0x6b8] sm:$0xff]  ;;  %v5567_v7 = vld [vmem:[#allocation2 + $0x6a0] sm:$0xff] }
 0x32a   :  { %5730 = vmatpush1.bf16.msra.mxu0 %v5511_v2  ;;  %5894 = vmatpush1.bf16.msra.mxu1 %v5513_v60  ;;  %v5569_v2 = vld [vmem:[#allocation2 + $0x6b0] sm:$0xff]  ;;  %v5572_v60 = vld [vmem:[#allocation2 + $0x6c8] sm:$0xff] }
 0x32b   :  { %5731 = vmatprep.subr.bf16.mxu0 %v5516_v61  ;;  %5895 = vmatprep.subr.bf16.mxu1 %v5518_v4  ;;  %v5574_v61 = vld [vmem:[#allocation2 + $0x6d8] sm:$0xff]  ;;  %v5571_v4 = vld [vmem:[#allocation2 + $0x6c0] sm:$0xff] }
 0x32e   :  { %5732 = vmatpush1.bf16.msra.mxu0 %v5515_v54  ;;  %5896 = vmatpush1.bf16.msra.mxu1 %v5517_v17  ;;  %v5573_v54 = vld [vmem:[#allocation2 + $0x6d0] sm:$0xff]  ;;  %v5576_v17 = vld [vmem:[#allocation2 + $0x6e8] sm:$0xff] }
 0x32f   :  { %5733 = vmatprep.subr.bf16.mxu0 %v5520_v55  ;;  %5897 = vmatprep.subr.bf16.mxu1 %v5522_v0  ;;  %v5578_v55 = vld [vmem:[#allocation2 + $0x6f8] sm:$0xff]  ;;  %v5575_v0 = vld [vmem:[#allocation2 + $0x6e0] sm:$0xff] }
 0x332   :  { %5734 = vmatpush1.bf16.msra.mxu0 %v5519_v1  ;;  %5898 = vmatpush1.bf16.msra.mxu1 %v5521_v25  ;;  %v5577_v1 = vld [vmem:[#allocation2 + $0x6f0] sm:$0xff]  ;;  %v5580_v25 = vld [vmem:[#allocation2 + $0x708] sm:$0xff] }
 0x333   :  { %5735 = vmatprep.subr.bf16.mxu0 %v5524_v19  ;;  %5899 = vmatprep.subr.bf16.mxu1 %v5526_v20  ;;  %v5582_v19 = vld [vmem:[#allocation2 + $0x718] sm:$0xff]  ;;  %v5579_v20 = vld [vmem:[#allocation2 + $0x700] sm:$0xff] }
 0x336   :  { %5736 = vmatpush1.bf16.msra.mxu0 %v5523_v21  ;;  %5900 = vmatpush1.bf16.msra.mxu1 %v5525_v43  ;;  %v5581_v21 = vld [vmem:[#allocation2 + $0x710] sm:$0xff]  ;;  %v5584_v43 = vld [vmem:[#allocation2 + $0x728] sm:$0xff] }
 0x337   :  { %5737 = vmatprep.subr.bf16.mxu0 %v5528_v23  ;;  %5901 = vmatprep.subr.bf16.mxu1 %v5530_v26  ;;  %v5586_v23 = vld [vmem:[#allocation2 + $0x738] sm:$0xff]  ;;  %v5583_v26 = vld [vmem:[#allocation2 + $0x720] sm:$0xff] }
 0x33a   :  { %5738 = vmatpush1.bf16.msra.mxu0 %v5527_v31  ;;  %5902 = vmatpush1.bf16.msra.mxu1 %v5529_v28  ;;  %v5585_v31 = vld [vmem:[#allocation2 + $0x730] sm:$0xff]  ;;  %v5588_v28 = vld [vmem:[#allocation2 + $0x748] sm:$0xff] }
 0x33b   :  { %5739 = vmatprep.subr.bf16.mxu0 %v5532_v30  ;;  %5903 = vmatprep.subr.bf16.mxu1 %v5534_v37  ;;  %v5590_v30 = vld [vmem:[#allocation2 + $0x758] sm:$0xff]  ;;  %v5587_v37 = vld [vmem:[#allocation2 + $0x740] sm:$0xff] }
 0x33e   :  { %5740 = vmatpush1.bf16.msra.mxu0 %v5531_v24  ;;  %5904 = vmatpush1.bf16.msra.mxu1 %v5533_v39  ;;  %v5589_v24 = vld [vmem:[#allocation2 + $0x750] sm:$0xff]  ;;  %v5592_v39 = vld [vmem:[#allocation2 + $0x768] sm:$0xff] }
 0x33f   :  { %5741 = vmatprep.subr.bf16.mxu0 %v5536_v40  ;;  %5905 = vmatprep.subr.bf16.mxu1 %v5538_v3  ;;  %v5594_v40 = vld [vmem:[#allocation2 + $0x778] sm:$0xff]  ;;  %v5591_v3 = vld [vmem:[#allocation2 + $0x760] sm:$0xff] }
 0x342   :  { %5742 = vmatpush1.bf16.msra.mxu0 %v5535_v27  ;;  %5906 = vmatpush1.bf16.msra.mxu1 %v5537_v41  ;;  %v5593_v27 = vld [vmem:[#allocation2 + $0x770] sm:$0xff]  ;;  %v5596_v41 = vld [vmem:[#allocation2 + $0x788] sm:$0xff] }
 0x343   :  { %5743 = vmatprep.subr.bf16.mxu0 %v5540_v58  ;;  %5907 = vmatprep.subr.bf16.mxu1 %v5542_v29  ;;  %v5598_v58 = vld [vmem:[#allocation2 + $0x798] sm:$0xff]  ;;  %v5595_v29 = vld [vmem:[#allocation2 + $0x780] sm:$0xff] }
 0x346   :  { %5744 = vmatpush1.bf16.msra.mxu0 %v5539_v52  ;;  %5908 = vmatpush1.bf16.msra.mxu1 %v5541_v57  ;;  %v5597_v52 = vld [vmem:[#allocation2 + $0x790] sm:$0xff]  ;;  %v5600_v57 = vld [vmem:[#allocation2 + $0x7a8] sm:$0xff] }
 0x347   :  { %5745 = vmatprep.subr.bf16.mxu0 %v5544_v47  ;;  %5909 = vmatprep.subr.bf16.mxu1 %v5546_v11  ;;  %v5602_v47 = vld [vmem:[#allocation2 + $0x7b8] sm:$0xff]  ;;  %v5599_v11 = vld [vmem:[#allocation2 + $0x7a0] sm:$0xff] }
 0x34a   :  { %5746 = vmatpush1.bf16.msra.mxu0 %v5543_v48  ;;  %5910 = vmatpush1.bf16.msra.mxu1 %v5545_v50  ;;  %v5601_v48 = vld [vmem:[#allocation2 + $0x7b0] sm:$0xff]  ;;  %v5604_v50 = vld [vmem:[#allocation2 + $0x7c8] sm:$0xff] }
 0x34b   :  { %5756 = vmatprep.subr.bf16.mxu0 %v5548_v32  ;;  %5920 = vmatprep.subr.bf16.mxu1 %v5550_v8  ;;  %v5606_v32 = vld [vmem:[#allocation2 + $0x7d8] sm:$0xff]  ;;  %v5603_v8 = vld [vmem:[#allocation2 + $0x7c0] sm:$0xff] }
 0x34d   :  { %5748 = vmatmul.mubr.bf16.vlgmr.msra.gmra.mrb[8].mxu0 %v5351_v38  ;;  %5912 = vmatmul.mubr.bf16.vlgmr.msra.gmra.mrb[8].mxu1 %v5351_v38  ;;  %v5605_v38 = vld [vmem:[#allocation2 + $0x7d0] sm:$0xff] }
 0x34e   :  { %5757 = vmatpush1.bf16.msra.mxu0 %v5547_v63  ;;  %5921 = vmatpush1.bf16.msra.mxu1 %v5549_v16  ;;  %v5608_v63 = vld [vmem:[#allocation2 + $0x7e8] sm:$0xff]  ;;  %v5610_v16 = vld [vmem:[#allocation2 + $0x7f8] sm:$0xff] }
 0x34f   :  { %5758 = vmatprep.subr.bf16.mxu0 %v5552_v45  ;;  %5922 = vmatprep.subr.bf16.mxu1 %v5554_v42  ;;  %v5607_v45 = vld [vmem:[#allocation2 + $0x7e0] sm:$0xff]  ;;  %v5609_v42 = vld [vmem:[#allocation2 + $0x7f0] sm:$0xff] }
 0x350   :  { %5788 = vmatprep.mubr.bf16.mxu0 %v5354_v22  ;;  %5952 = vmatprep.mubr.bf16.mxu1 %v5354_v22  ;;  %v5353_v22 = vpack.c.bf16 %v9098_v14, %v9098_v14  ;;  %v7057_v14 = vld [vmem:[%s9412_s11] sm:$0xff]  }
 0x352   :  { %5759 = vmatpush1.bf16.msra.mxu0 %v5551_v13  ;;  %5923 = vmatpush1.bf16.msra.mxu1 %v5553_v51  ;;  %v7055_v13 = vld [vmem:[%s9412_s11 + $0x80] sm:$0xff]   ;;  %v7213_v51 = vmov 0.0  }
 0x353   :  { %5760 = vmatprep.subr.bf16.mxu0 %v5556_v18  ;;  %5924 = vmatprep.subr.bf16.mxu1 %v5558_v34  ;;  %v7056_v18 = vld [vmem:[%s9412_s11 + $0x40] sm:$0xff]   ;;  %v7058_v34 = vld [vmem:[%s9412_s11 + $0x88] sm:$0xff]  }
 0x356   :  { %5761 = vmatpush1.bf16.msra.mxu0 %v5555_v53  ;;  %5925 = vmatpush1.bf16.msra.mxu1 %v5557_v56  ;;  %v7059_v53 = vld [vmem:[%s9412_s11 + $0x48] sm:$0xff]  }
 0x357   :  { %5762 = vmatprep.subr.bf16.mxu0 %v5560_v44  ;;  %5926 = vmatprep.subr.bf16.mxu1 %v5562_v33  ;;  %v7060_v56 = vld [vmem:[%s9412_s11 + $0x8] sm:$0xff]   ;;  %v7061_v44 = vld [vmem:[%s9412_s11 + $0x90] sm:$0xff]  }
 0x358   :  { %v7062_v33 = vld [vmem:[%s9412_s11 + $0x50] sm:$0xff]  }
 0x35a   :  { %5763 = vmatpush1.bf16.msra.mxu0 %v5559_v5  ;;  %5927 = vmatpush1.bf16.msra.mxu1 %v5561_v59  ;;  %v7063_v5 = vld [vmem:[%s9412_s11 + $0x10] sm:$0xff]   ;;  %v7065_v59 = vld [vmem:[%s9412_s11 + $0x58] sm:$0xff]  }
 0x35b   :  { %5764 = vmatprep.subr.bf16.mxu0 %v5564_v36  ;;  %5928 = vmatprep.subr.bf16.mxu1 %v5566_v46  ;;  %v7064_v36 = vld [vmem:[%s9412_s11 + $0x98] sm:$0xff]  }
 0x35c   :  { %v7066_v46 = vld [vmem:[%s9412_s11 + $0x18] sm:$0xff]  }
 0x35e   :  { %5765 = vmatpush1.bf16.msra.mxu0 %v5563_v49  ;;  %5929 = vmatpush1.bf16.msra.mxu1 %v5565_v15  ;;  %v7068_v49 = vld [vmem:[%s9412_s11 + $0x60] sm:$0xff]  }
 0x35f   :  { %5766 = vmatprep.subr.bf16.mxu0 %v5568_v62  ;;  %5930 = vmatprep.subr.bf16.mxu1 %v5570_v35  ;;  %v7067_v15 = vld [vmem:[%s9412_s11 + $0xa0] sm:$0xff]   ;;  %v7071_v35 = vld [vmem:[%s9412_s11 + $0x68] sm:$0xff]  }
 0x360   :  { %v7069_v62 = vld [vmem:[%s9412_s11 + $0x20] sm:$0xff]  }
 0x362   :  { %5767 = vmatpush1.bf16.msra.mxu0 %v5567_v7  ;;  %5931 = vmatpush1.bf16.msra.mxu1 %v5569_v2  ;;  %v7070_v7 = vld [vmem:[%s9412_s11 + $0xa8] sm:$0xff]  }
 0x363   :  { %5768 = vmatprep.subr.bf16.mxu0 %v5572_v60  ;;  %5932 = vmatprep.subr.bf16.mxu1 %v5574_v61  ;;  %v7072_v2 = vld [vmem:[%s9412_s11 + $0x28] sm:$0xff]   ;;  %v7074_v60 = vld [vmem:[%s9412_s11 + $0x70] sm:$0xff]  }
 0x364   :  { %v7073_v61 = vld [vmem:[%s9412_s11 + $0xb0] sm:$0xff]  }
 0x366   :  { %5769 = vmatpush1.bf16.msra.mxu0 %v5571_v4  ;;  %5933 = vmatpush1.bf16.msra.mxu1 %v5573_v54  ;;  %v7075_v4 = vld [vmem:[%s9412_s11 + $0x30] sm:$0xff]   ;;  %v7077_v54 = vld [vmem:[%s9412_s11 + $0x78] sm:$0xff]  }
 0x367   :  { %5770 = vmatprep.subr.bf16.mxu0 %v5576_v17  ;;  %5934 = vmatprep.subr.bf16.mxu1 %v5578_v55  ;;  %v7076_v17 = vld [vmem:[%s9412_s11 + $0xb8] sm:$0xff]  }
 0x368   :  { %v7078_v55 = vld [vmem:[%s9412_s11 + $0x38] sm:$0xff]  }
 0x36a   :  { %5771 = vmatpush1.bf16.msra.mxu0 %v5575_v0  ;;  %5935 = vmatpush1.bf16.msra.mxu1 %v5577_v1  ;;  %v5611_v0 = vld [vmem:[%s9409_s8] sm:$0xf] }
 0x36b   :  { %5772 = vmatprep.subr.bf16.mxu0 %v5580_v25  ;;  %5936 = vmatprep.subr.bf16.mxu1 %v5582_v19  ;;  %v5616_v1 = vrot.slane %v5611_v0, %v8889_v6  ;;  %v5624_v25 = vrot.slane %v5611_v0, %v8897_v9  ;;  %v5620_v19 = vrot.slane %v5611_v0, %v8900_v10 }
 0x36e   :  { %5773 = vmatpush1.bf16.msra.mxu0 %v5579_v20  ;;  %5937 = vmatpush1.bf16.msra.mxu1 %v5581_v21  ;;  %v5628_v20 = vrot.slane %v5611_v0, %v8903_v12 }
 0x36f   :  { %5774 = vmatprep.subr.bf16.mxu0 %v5584_v43  ;;  %5938 = vmatprep.subr.bf16.mxu1 %v5586_v23 }
 0x372   :  { %5775 = vmatpush1.bf16.msra.mxu0 %v5583_v26  ;;  %5939 = vmatpush1.bf16.msra.mxu1 %v5585_v31 }
 0x373   :  { %5776 = vmatprep.subr.bf16.mxu0 %v5588_v28  ;;  %5940 = vmatprep.subr.bf16.mxu1 %v5590_v30 }
 0x376   :  { %5777 = vmatpush1.bf16.msra.mxu0 %v5587_v37  ;;  %5941 = vmatpush1.bf16.msra.mxu1 %v5589_v24 }
 0x377   :  { %5778 = vmatprep.subr.bf16.mxu0 %v5592_v39  ;;  %5942 = vmatprep.subr.bf16.mxu1 %v5594_v40 }
 0x37a   :  { %5779 = vmatpush1.bf16.msra.mxu0 %v5591_v3  ;;  %5943 = vmatpush1.bf16.msra.mxu1 %v5593_v27 }
 0x37b   :  { %5780 = vmatprep.subr.bf16.mxu0 %v5596_v41  ;;  %5944 = vmatprep.subr.bf16.mxu1 %v5598_v58 }
 0x37e   :  { %5781 = vmatpush1.bf16.msra.mxu0 %v5595_v29  ;;  %5945 = vmatpush1.bf16.msra.mxu1 %v5597_v52 }
 0x37f   :  { %5782 = vmatprep.subr.bf16.mxu0 %v5600_v57  ;;  %5946 = vmatprep.subr.bf16.mxu1 %v5602_v47 }
 0x382   :  { %5783 = vmatpush1.bf16.msra.mxu0 %v5599_v11  ;;  %5947 = vmatpush1.bf16.msra.mxu1 %v5601_v48 }
 0x383   :  { %5784 = vmatprep.subr.bf16.mxu0 %v5604_v50  ;;  %5948 = vmatprep.subr.bf16.mxu1 %v5606_v32 }
 0x386   :  { %5785 = vmatpush1.bf16.msra.mxu0 %v5603_v8  ;;  %5949 = vmatpush1.bf16.msra.mxu1 %v5605_v38 }
 0x387   :  { %5786 = vmatprep.subr.bf16.mxu0 %v5608_v63  ;;  %5950 = vmatprep.subr.bf16.mxu1 %v5610_v16 }
 0x38a   :  { %5787 = vmatpush1.bf16.msra.mxu0 %v5607_v45  ;;  %5951 = vmatpush1.bf16.msra.mxu1 %v5609_v42 }
 0x38b   :  { %6943 = vmatprep.subr.bf16.mxu1 %v7213_v51  ;;  %6894 = vmatprep.subr.bf16.mxu0 %v7056_v18 }
 0x38d   :  { %5789 = vmatmul.mubr.bf16.vlgmr.msra.gmra.mrb[8].mxu0 %v5353_v22  ;;  %5953 = vmatmul.mubr.bf16.vlgmr.msra.gmra.mrb[8].mxu1 %v5353_v22 }
 0x38e   :  { %6944 = vmatpush3.bf16.msra.mxu1 %v7055_v13  ;;  %6895 = vmatpush3.bf16.msra.mxu0 %v7057_v14 }
 0x38f   :  { %6945 = vmatprep.subr.bf16.mxu1 %v7213_v51  ;;  %6959 = vmatprep.mubr.msk.bf16.mxu1 %vm7214_vm1, %v7213_v51 }
 0x390   :  { %6896 = vmatprep.subr.bf16.mxu0 %v7059_v53 }
 0x392   :  { %6946 = vmatpush3.bf16.msra.mxu1 %v7058_v34  ;;  %6897 = vmatpush3.bf16.msra.mxu0 %v7060_v56 }
 0x393   :  { %6947 = vmatprep.subr.bf16.mxu1 %v7213_v51  ;;  %6898 = vmatprep.subr.bf16.mxu0 %v7062_v33 }
 0x396   :  { %6948 = vmatpush3.bf16.msra.mxu1 %v7061_v44  ;;  %6899 = vmatpush3.bf16.msra.mxu0 %v7063_v5 }
 0x397   :  { %6949 = vmatprep.subr.bf16.mxu1 %v7213_v51  ;;  %6900 = vmatprep.subr.bf16.mxu0 %v7065_v59 }
 0x39a   :  { %6950 = vmatpush3.bf16.msra.mxu1 %v7064_v36  ;;  %6901 = vmatpush3.bf16.msra.mxu0 %v7066_v46 }
 0x39b   :  { %6951 = vmatprep.subr.bf16.mxu1 %v7213_v51  ;;  %6902 = vmatprep.subr.bf16.mxu0 %v7068_v49 }
 0x39e   :  { %6952 = vmatpush3.bf16.msra.mxu1 %v7067_v15  ;;  %6903 = vmatpush3.bf16.msra.mxu0 %v7069_v62 }
 0x39f   :  { %6953 = vmatprep.subr.bf16.mxu1 %v7213_v51  ;;  %6904 = vmatprep.subr.bf16.mxu0 %v7071_v35 }
 0x3a2   :  { %6954 = vmatpush3.bf16.msra.mxu1 %v7070_v7  ;;  %6905 = vmatpush3.bf16.msra.mxu0 %v7072_v2 }
 0x3a3   :  { %6955 = vmatprep.subr.bf16.mxu1 %v7213_v51  ;;  %6906 = vmatprep.subr.bf16.mxu0 %v7074_v60 }
 0x3a6   :  { %6956 = vmatpush3.bf16.msra.mxu1 %v7073_v61  ;;  %6907 = vmatpush3.bf16.msra.mxu0 %v7075_v4 }
 0x3a7   :  { %6957 = vmatprep.subr.bf16.mxu1 %v7213_v51  ;;  %6908 = vmatprep.subr.bf16.mxu0 %v7077_v54 }
 0x3aa   :  { %6958 = vmatpush3.bf16.msra.mxu1 %v7076_v17  ;;  %6909 = vmatpush3.bf16.msra.mxu0 %v7078_v55 }
 0x3ab   :  { %6983 = vmatprep.subr.bf16.mxu1 %v7213_v51  ;;  %6963 = vmatprep.subr.bf16.mxu0 %v7213_v51 }
 0x460   :  { %v5790_v21 = vpop.f32.mrb[8].mxu0  ;;  %v5954_v43 = vpop.f32.mrb[8].mxu1 }
 0x461   :  { %v7003_v23 = vadd.f32 %v5790_v21, %v5616_v1  ;;  %v7005_v26 = vadd.f32 %v5954_v43, %v5624_v25  ;;  %v5792_v31 = vpop.f32.mrb[9].mxu0  ;;  %v5956_v28 = vpop.f32.mrb[9].mxu1 }
 0x462   :  { %v7004_v30 = vadd.f32 %v5792_v31, %v5620_v19  ;;  %v7006_v37 = vadd.f32 %v5956_v28, %v5628_v20  ;;  %v5794_v24 = vpop.f32.mrb[10].mxu0  ;;  %v5958_v39 = vpop.f32.mrb[10].mxu1 }
 0x463   :  { %v5964_v40 = vsel %vm4881_vm0, %v7003_v23, 0.0  ;;  %v5978_v3 = vsel %vm4881_vm0, %v7005_v26, 0.0  ;;  %v5795_v27 = vpop.f32.mrb[11].mxu0  ;;  %v5959_v41 = vpop.f32.mrb[11].mxu1  ;;  %v5962_v39 = vld [vmem:[%s9410_s9] sm:$0x7] }
 0x464   :  { %v5965_v58 = vrot.slane %v5964_v40, 4  ;;  %v5979_v29 = vrot.slane %v5978_v3, 4  ;;  %v5971_v12 = vsel %vm4881_vm0, %v7004_v30, 0.0  ;;  %5961 = vst [vmem:[#allocation8] sm:$0x3] %v7006_v37  ;;  %v6039_v41 = vrot.slane %v5962_v39, %v8897_v9 }
 0x465   :  { %v5972_v52 = vrot.slane %v5971_v12, 4 }
 0x466   :  { %v5966_v57 = vadd.f32 %v5965_v58, %v5964_v40  ;;  %v5980_v47 = vadd.f32 %v5979_v29, %v5978_v3  ;;  %v5963_v40 = vld [vmem:[%s9411_s10] sm:$0x7]  ;;  %v6031_v3 = vrot.slane %v5962_v39, %v8889_v6 }
 0x467   :  { %v5973_v11 = vadd.f32 %v5972_v52, %v5971_v12  ;;  %v6050_v12 = vrot.slane %v5963_v40, %v8889_v6  ;;  %v6035_v52 = vrot.slane %v5962_v39, %v8900_v10 }
 0x468   :  { %v5967_v48 = vrot.slane %v5966_v57, 2  ;;  %v5981_v50 = vrot.slane %v5980_v47, 2 }
 0x469   :  { %v5974_v32 = vrot.slane %v5973_v11, 2 }
 0x46a   :  { %v5968_v8 = vadd.f32 %v5967_v48, %v5966_v57  ;;  %v5982_v38 = vadd.f32 %v5981_v50, %v5980_v47 }
 0x46b   :  { %v5975_v63 = vadd.f32 %v5974_v32, %v5973_v11  ;;  %v6058_v11 = vrot.slane %v5963_v40, %v8897_v9  ;;  %v6054_v32 = vrot.slane %v5963_v40, %v8900_v10 }
 0x46c   :  { %v5969_v16 = vrot.slane %v5968_v8, 1  ;;  %v5983_v45 = vrot.slane %v5982_v38, 1 }
 0x46d   :  { %v5976_v42 = vrot.slane %v5975_v63, 1 }
 0x46e   :  { %v5970_v22 = vadd.f32 %v5969_v16, %v5968_v8  ;;  %v5984_v13 = vadd.f32 %v5983_v45, %v5982_v38 }
 0x46f   :  { %v5977_v18 = vadd.f32 %v5976_v42, %v5975_v63 }
 0x470   :  { %v5985_v14 = vmul.f32 0.5, %v5970_v22  ;;  %v5987_v34 = vmul.f32 0.5, %v5984_v13 }
 0x471   :  { %v5986_v53 = vmul.f32 0.5, %v5977_v18 }
 0x472   :  { %v5988_v56 = vsub.f32 %v7003_v23, %v5985_v14  ;;  %v5990_v44 = vsub.f32 %v7005_v26, %v5987_v34 }
 0x473   :  { %v5989_v33 = vsub.f32 %v7004_v30, %v5986_v53 }
 0x474   :  { %v5991_v5 = vmul.f32 %v5988_v56, %v5988_v56  ;;  %v5993_v59 = vmul.f32 %v5990_v44, %v5990_v44 }
 0x475   :  { %v5992_v36 = vmul.f32 %v5989_v33, %v5989_v33 }
 0x476   :  { %v5994_v46 = vsel %vm4881_vm0, %v5991_v5, 0.0  ;;  %v6008_v49 = vsel %vm4881_vm0, %v5993_v59, 0.0 }
 0x477   :  { %v5995_v15 = vrot.slane %v5994_v46, 4  ;;  %v6009_v62 = vrot.slane %v6008_v49, 4  ;;  %v6001_v35 = vsel %vm4881_vm0, %v5992_v36, 0.0 }
 0x478   :  { %v6002_v7 = vrot.slane %v6001_v35, 4 }
 0x479   :  { %v5996_v2 = vadd.f32 %v5995_v15, %v5994_v46  ;;  %v6010_v60 = vadd.f32 %v6009_v62, %v6008_v49 }
 0x47a   :  { %v6003_v61 = vadd.f32 %v6002_v7, %v6001_v35 }
 0x47b   :  { %v5997_v4 = vrot.slane %v5996_v2, 2  ;;  %v6011_v54 = vrot.slane %v6010_v60, 2 }
 0x47c   :  { %v6004_v17 = vrot.slane %v6003_v61, 2 }
 0x47d   :  { %v5998_v55 = vadd.f32 %v5997_v4, %v5996_v2  ;;  %v6012_v0 = vadd.f32 %v6011_v54, %v6010_v60 }
 0x47e   :  { %v6005_v1 = vadd.f32 %v6004_v17, %v6003_v61 }
 0x47f   :  { %v5999_v25 = vrot.slane %v5998_v55, 1  ;;  %v6013_v19 = vrot.slane %v6012_v0, 1 }
 0x480   :  { %v6006_v20 = vrot.slane %v6005_v1, 1 }
 0x481   :  { %v6000_v21 = vadd.f32 %v5999_v25, %v5998_v55  ;;  %v6014_v43 = vadd.f32 %v6013_v19, %v6012_v0  ;;  %v7080_v25 = vld [vmem:[%s9415_s14 + $0x8] sm:$0xff]   ;;  %v7081_v19 = vld [vmem:[%s9415_s14 + $0x10] sm:$0xff]  }
 0x482   :  { %v6007_v23 = vadd.f32 %v6006_v20, %v6005_v1  ;;  %v7079_v1 = vld [vmem:[%s9415_s14] sm:$0xff]   ;;  %v7082_v20 = vld [vmem:[%s9415_s14 + $0x18] sm:$0xff]  }
 0x483   :  { %v6015_v26 = vmul.f32 0.5, %v6000_v21  ;;  %v6017_v31 = vmul.f32 0.5, %v6014_v43  ;;  %v7083_v21 = vld [vmem:[%s9415_s14 + $0x20] sm:$0xff]   ;;  %v7084_v43 = vld [vmem:[%s9415_s14 + $0x28] sm:$0xff]  }
 0x484   :  { %v6016_v28 = vmul.f32 0.5, %v6007_v23  ;;  %v7085_v23 = vld [vmem:[%s9415_s14 + $0x30] sm:$0xff]  }
 0x485   :  { %v6018_v30 = vadd.f32 1e-05, %v6015_v26  ;;  %v6020_v37 = vadd.f32 1e-05, %v6017_v31  ;;  %v7086_v26 = vld [vmem:[%s9415_s14 + $0x38] sm:$0xff]   ;;  %s7216_s14 = smov [#allocation4]  }
 0x486   :  { %v6019_v24 = vadd.f32 1e-05, %v6016_v28  ;;  %s6678_s24 = sshll.u32 %s7216_s14, 4  ;;  %s6679_s24 = int_to_ptr.vmem [resolvable:$true] %s6678_s24 }
 0x487   :  { %7095 = vrsqrt.f32 %v6018_v30 }
 0x488   :  { %7097 = vrsqrt.f32 %v6020_v37 }
 0x489   :  { %7099 = vrsqrt.f32 %v6019_v24 }
 0x491   :  { %v7096_v27 = vpop.eup %7095 }
 0x492   :  { %v7098_v58 = vpop.eup %7097  ;;  %v6024_v29 = vmul.f32 %v7096_v27, %v5988_v56 }
 0x493   :  { %v7100_v57 = vpop.eup %7099  ;;  %v6026_v47 = vmul.f32 %v7098_v58, %v5990_v44 }
 0x494   :  { %v6043_v48 = vmul.f32 %v6031_v3, %v6024_v29  ;;  %v6025_v50 = vmul.f32 %v7100_v57, %v5989_v33 }
 0x495   :  { %v6045_v8 = vmul.f32 %v6039_v41, %v6026_v47 }
 0x496   :  { %v6062_v38 = vadd.f32 %v6050_v12, %v6043_v48  ;;  %v6044_v63 = vmul.f32 %v6035_v52, %v6025_v50 }
 0x497   :  { %v6064_v16 = vadd.f32 %v6058_v11, %v6045_v8 }
 0x498   :  { %v6063_v45 = vadd.f32 %v6054_v32, %v6044_v63  ;;  %v6068_v42 = vmul.f32 0.044715, %v6062_v38  ;;  %v6065_v7 = vmul.f32 0.5, %v6062_v38 }
 0x499   :  { %v6070_v22 = vmul.f32 0.044715, %v6064_v16  ;;  %v6067_v62 = vmul.f32 0.5, %v6064_v16 }
 0x49a   :  { %v6069_v13 = vmul.f32 0.044715, %v6063_v45  ;;  %v6071_v18 = vmul.f32 %v6068_v42, %v6062_v38  ;;  %v6066_v2 = vmul.f32 0.5, %v6063_v45 }
 0x49b   :  { %v6073_v6 = vmul.f32 %v6070_v22, %v6064_v16 }
 0x49c   :  { %v6072_v14 = vmul.f32 %v6069_v13, %v6063_v45  ;;  %v6074_v34 = vmul.f32 %v6071_v18, %v6062_v38 }
 0x49d   :  { %v6076_v53 = vmul.f32 %v6073_v6, %v6064_v16 }
 0x49e   :  { %v6075_v56 = vmul.f32 %v6072_v14, %v6063_v45  ;;  %v6077_v44 = vadd.f32 %v6074_v34, %v6062_v38  ;;  %v6873_v14 = vld [vmem:[%s9413_s12] ss:$0 sm:$0xff] }
 0x49f   :  { %v6079_v9 = vadd.f32 %v6076_v53, %v6064_v16  ;;  %v6874_v53 = vld [vmem:[%s9414_s13] ss:$0 sm:$0xff] }
 0x4a0   :  { %v6078_v5 = vadd.f32 %v6075_v56, %v6063_v45  ;;  %v6080_v33 = vmul.f32 0.7978846, %v6077_v44 }
 0x4a1   :  { %v6082_v59 = vmul.f32 0.7978846, %v6079_v9 }
 0x4a2   :  { %v6081_v10 = vmul.f32 0.7978846, %v6078_v5  ;;  %7101 = vtanh.f32 %v6080_v33 }
 0x4a3   :  { %7103 = vtanh.f32 %v6082_v59 }
 0x4a4   :  { %7105 = vtanh.f32 %v6081_v10 }
 0x4ac   :  { %v7102_v36 = vpop.eup %7101 }
 0x4ad   :  { %v7104_v46 = vpop.eup %7103  ;;  %v6086_v49 = vadd.f32 1.0, %v7102_v36 }
 0x4ae   :  { %v7106_v15 = vpop.eup %7105  ;;  %v6088_v35 = vadd.f32 1.0, %v7104_v46 }
 0x4af   :  { %v6087_v60 = vadd.f32 1.0, %v7106_v15  ;;  %v6089_v4 = vmul.f32 %v6086_v49, %v6065_v7  ;;  %v7088_v7 = vld [vmem:[%s9418_s17 + $0x8] sm:$0xff]  }
 0x4b0   :  { %v6091_v61 = vmul.f32 %v6088_v35, %v6067_v62  ;;  %v7087_v35 = vld [vmem:[%s9418_s17] sm:$0xff]  }
 0x4b1   :  { %v6090_v54 = vmul.f32 %v6087_v60, %v6066_v2  ;;  %v6092_v0 = vpack.c.bf16 %v6089_v4, %v6089_v4  ;;  %v7089_v2 = vld [vmem:[%s9418_s17 + $0x10] sm:$0xff]   ;;  %v7090_v60 = vld [vmem:[%s9418_s17 + $0x18] sm:$0xff]   ;;  %v7092_v4 = vld [vmem:[%s9418_s17 + $0x28] sm:$0xff]  }
 0x4b2   :  { %v6094_v17 = vpack.c.bf16 %v6091_v61, %v6091_v61  ;;  %v7091_v61 = vld [vmem:[%s9418_s17 + $0x20] sm:$0xff]  }
 0x4b3   :  { %v6093_v55 = vpack.c.bf16 %v6090_v54, %v6090_v54  ;;  %v7093_v54 = vld [vmem:[%s9418_s17 + $0x30] sm:$0xff]  }
 0x4b4   :  { %6960 = vmatmul.mubr.bf16.vlgmr.msra.gmra.mrb[12].mxu1 %v6094_v17  ;;  %v7094_v17 = vld [vmem:[%s9418_s17 + $0x38] sm:$0xff]  }
 0x4b5   :  { %6319 = vmatprep.mubr.bf16.mxu0 %v6093_v55  ;;  %6999 = vmatprep.mubr.msk.bf16.mxu1 %vm7214_vm1, %v7213_v51 }
 0x4b6   :  { %6320 = vmatmul.mubr.bf16.vlgmr.msra.gmra.mrb[12].mxu0 %v6092_v0  ;;  %6984 = vmatpush3.bf16.msra.mxu1 %v7087_v35 }
 0x4b7   :  { %6979 = vmatprep.mubr.msk.bf16.mxu0 %vm7214_vm1, %v7213_v51  ;;  %6964 = vmatpush3.bf16.msra.mxu0 %v7079_v1 }
 0x4b8   :  { %6965 = vmatprep.subr.bf16.mxu0 %v7213_v51  ;;  %6985 = vmatprep.subr.bf16.mxu1 %v7213_v51 }
 0x4ba   :  { %6986 = vmatpush3.bf16.msra.mxu1 %v7088_v7 }
 0x4bb   :  { %6966 = vmatpush3.bf16.msra.mxu0 %v7080_v25  ;;  %6987 = vmatprep.subr.bf16.mxu1 %v7213_v51 }
 0x4bc   :  { %6967 = vmatprep.subr.bf16.mxu0 %v7213_v51 }
 0x4be   :  { %6988 = vmatpush3.bf16.msra.mxu1 %v7089_v2 }
 0x4bf   :  { %6968 = vmatpush3.bf16.msra.mxu0 %v7081_v19  ;;  %6989 = vmatprep.subr.bf16.mxu1 %v7213_v51 }
 0x4c0   :  { %6969 = vmatprep.subr.bf16.mxu0 %v7213_v51 }
 0x4c2   :  { %6990 = vmatpush3.bf16.msra.mxu1 %v7090_v60 }
 0x4c3   :  { %6970 = vmatpush3.bf16.msra.mxu0 %v7082_v20  ;;  %6991 = vmatprep.subr.bf16.mxu1 %v7213_v51 }
 0x4c4   :  { %6971 = vmatprep.subr.bf16.mxu0 %v7213_v51 }
 0x4c6   :  { %6992 = vmatpush3.bf16.msra.mxu1 %v7091_v61 }
 0x4c7   :  { %6972 = vmatpush3.bf16.msra.mxu0 %v7083_v21  ;;  %6993 = vmatprep.subr.bf16.mxu1 %v7213_v51 }
 0x4c8   :  { %6973 = vmatprep.subr.bf16.mxu0 %v7213_v51 }
 0x4ca   :  { %6994 = vmatpush3.bf16.msra.mxu1 %v7092_v4 }
 0x4cb   :  { %6974 = vmatpush3.bf16.msra.mxu0 %v7084_v43  ;;  %6995 = vmatprep.subr.bf16.mxu1 %v7213_v51 }
 0x4cc   :  { %6975 = vmatprep.subr.bf16.mxu0 %v7213_v51 }
 0x4ce   :  { %6996 = vmatpush3.bf16.msra.mxu1 %v7093_v54 }
 0x4cf   :  { %6976 = vmatpush3.bf16.msra.mxu0 %v7085_v23  ;;  %6997 = vmatprep.subr.bf16.mxu1 %v7213_v51 }
 0x4d0   :  { %6977 = vmatprep.subr.bf16.mxu0 %v7213_v51 }
 0x4d2   :  { %6998 = vmatpush3.bf16.msra.mxu1 %v7094_v17 }
 0x4d3   :  { %6978 = vmatpush3.bf16.msra.mxu0 %v7086_v26 }
 0x587   :  { %v6361_v31 = vpop.f32.mrb[12].mxu1 }
 0x588   :  { %v6961_v28 = vpop.f32.mrb[13].mxu1 }
 0x589   :  { %v6910_v30 = vpop.f32.mrb[12].mxu0  ;;  %v6364_v37 = vpop.f32.mrb[14].mxu1 }
 0x58a   :  { %v6911_v24 = vpop.f32.mrb[13].mxu0  ;;  %v6962_v39 = vpop.f32.mrb[15].mxu1 }
 0x58b   :  { %v6912_v40 = vadd.f32 %v6911_v24, %v6910_v30  ;;  %v6913_v3 = vpop.f32.mrb[14].mxu0 }
 0x58c   :  { %v6914_v27 = vpop.f32.mrb[15].mxu0 }
 0x58d   :  { %v6362_v41 = vadd.f32 %v6912_v40, %v6361_v31 }
 0x58f   :  { %v6369_v58 = vsel %vm4881_vm0, %v6362_v41, 0.0 }
 0x590   :  { %v6370_v29 = vrot.slane %v6369_v58, 4 }
 0x592   :  { %v6371_v12 = vadd.f32 %v6370_v29, %v6369_v58 }
 0x594   :  { %v6372_v52 = vrot.slane %v6371_v12, 2 }
 0x596   :  { %v6373_v57 = vadd.f32 %v6372_v52, %v6371_v12  ;;  %v6883_v52 = vld [vmem:[%s9416_s15] ss:$0 sm:$0xff]  ;;  %s7215_s15 = smov [#allocation6]  }
 0x597   :  { %s6688_s3 = sshll.u32 %s7215_s15, 4  ;;  %s6689_s3 = int_to_ptr.vmem [resolvable:$true] %s6688_s3 }
 0x598   :  { %v6374_v47 = vrot.slane %v6373_v57, 1  ;;  %p7120_p1 = scmp.lt.s32.totalorder %s6689_s3, %s6689_s3 }
 0x59a   :  { %v6375_v11 = vadd.f32 %v6374_v47, %v6373_v57  ;;  %v6884_v47 = vld [vmem:[%s9417_s16] ss:$0 sm:$0xff]  ;;  %s7115_s16 = scalar_lea.vmem %s6689_s3, 256 }
 0x59b   :  { %p7116_p0 = scmp.ne.s32.totalorder %s6689_s3, %s7115_s16  ;;  %p7121_p2 = scmp.lt.s32.totalorder %s7115_s16, %s7115_s16 }
 0x59c   :  { %v6376_v48 = vmul.f32 0.5, %v6375_v11 }
 0x59d   :  { %p7122_p3 = por %p7121_p2, %p7120_p1 }
 0x59e   :  { %v6377_v50 = vsub.f32 %v6362_v41, %v6376_v48 }
 0x59f   :  { %p7123_p4 = pnand %p7122_p3, %p7116_p0 }
 0x5a0   :  { %v6378_v32 = vmul.f32 %v6377_v50, %v6377_v50 }
 0x5a2   :  { %v6379_v8 = vsel %vm4881_vm0, %v6378_v32, 0.0 }
 0x5a3   :  { %v6380_v38 = vrot.slane %v6379_v8, 4 }
 0x5a5   :  { %v6381_v63 = vadd.f32 %v6380_v38, %v6379_v8 }
 0x5a7   :  { %v6382_v16 = vrot.slane %v6381_v63, 2 }
 0x5a9   :  { %v6383_v45 = vadd.f32 %v6382_v16, %v6381_v63 }
 0x5ab   :  { %v6384_v42 = vrot.slane %v6383_v45, 1 }
 0x5ad   :  { %v6385_v22 = vadd.f32 %v6384_v42, %v6383_v45 }
 0x5af   :  { %v6386_v13 = vmul.f32 0.5, %v6385_v22 }
 0x5b1   :  { %v6387_v18 = vadd.f32 1e-05, %v6386_v13 }
 0x5b3   :  { %7107 = vrsqrt.f32 %v6387_v18 }
 0x5bd   :  { %v7108_v6 = vpop.eup %7107 }
 0x5be   :  { %v6389_v34 = vmul.f32 %v7108_v6, %v6377_v50 }
 0x5c0   :  { %v6396_v56 = vmul.f32 %v6873_v14, %v6389_v34 }
 0x5c2   :  { %v6403_v44 = vadd.f32 %v6874_v53, %v6396_v56 }
 0x5c4   :  { %v6405_v9 = vmul.f32 0.044715, %v6403_v44  ;;  %v6404_v46 = vmul.f32 0.5, %v6403_v44 }
 0x5c6   :  { %v6406_v5 = vmul.f32 %v6405_v9, %v6403_v44 }
 0x5c8   :  { %v6407_v33 = vmul.f32 %v6406_v5, %v6403_v44 }
 0x5ca   :  { %v6408_v59 = vadd.f32 %v6407_v33, %v6403_v44 }
 0x5cc   :  { %v6409_v10 = vmul.f32 0.7978846, %v6408_v59 }
 0x5ce   :  { %7109 = vtanh.f32 %v6409_v10 }
 0x5d8   :  { %v7110_v36 = vpop.eup %7109 }
 0x5d9   :  { %v6411_v49 = vadd.f32 1.0, %v7110_v36 }
 0x5db   :  { %v6412_v15 = vmul.f32 %v6411_v49, %v6404_v46 }
 0x5dd   :  { %v6413_v62 = vpack.c.bf16 %v6412_v15, %v6412_v15 }
 0x5df   :  { %6980 = vmatmul.mubr.bf16.vlgmr.msra.gmra.mrb[16].mxu0 %v6413_v62 }
 0x6b2   :  { %v6512_v55 = vpop.f32.mrb[16].mxu0 }
 0x6b3   :  { %v6520_v0 = vsel %vm4881_vm0, %v6512_v55, 0.0  ;;  %v6981_v1 = vpop.f32.mrb[17].mxu0 }
 0x6b4   :  { %v6521_v25 = vrot.slane %v6520_v0, 4  ;;  %v6515_v19 = vpop.f32.mrb[18].mxu0 }
 0x6b5   :  { %v6982_v20 = vpop.f32.mrb[19].mxu0 }
 0x6b6   :  { %v6522_v21 = vadd.f32 %v6521_v25, %v6520_v0 }
 0x6b8   :  { %v6523_v43 = vrot.slane %v6522_v21, 2 }
 0x6ba   :  { %v6524_v23 = vadd.f32 %v6523_v43, %v6522_v21 }
 0x6bc   :  { %v6525_v26 = vrot.slane %v6524_v23, 1 }
 0x6be   :  { %v6526_v31 = vadd.f32 %v6525_v26, %v6524_v23 }
 0x6c0   :  { %v6527_v28 = vmul.f32 0.5, %v6526_v31 }
 0x6c2   :  { %v6528_v30 = vsub.f32 %v6512_v55, %v6527_v28 }
 0x6c4   :  { %v6529_v37 = vmul.f32 %v6528_v30, %v6528_v30 }
 0x6c6   :  { %v6530_v24 = vsel %vm4881_vm0, %v6529_v37, 0.0 }
 0x6c7   :  { %v6531_v39 = vrot.slane %v6530_v24, 4 }
 0x6c9   :  { %v6532_v51 = vadd.f32 %v6531_v39, %v6530_v24 }
 0x6cb   :  { %v6533_v40 = vrot.slane %v6532_v51, 2 }
 0x6cd   :  { %v6534_v3 = vadd.f32 %v6533_v40, %v6532_v51 }
 0x6cf   :  { %v6535_v27 = vrot.slane %v6534_v3, 1 }
 0x6d1   :  { %v6536_v41 = vadd.f32 %v6535_v27, %v6534_v3 }
 0x6d3   :  { %v6537_v58 = vmul.f32 0.5, %v6536_v41 }
 0x6d5   :  { %v6538_v29 = vadd.f32 1e-05, %v6537_v58 }
 0x6d7   :  { %7111 = vrsqrt.f32 %v6538_v29 }
 0x6e1   :  { %v7112_v12 = vpop.eup %7111 }
 0x6e2   :  { %v6540_v57 = vmul.f32 %v7112_v12, %v6528_v30 }
 0x6e4   :  { %v6547_v11 = vmul.f32 %v6883_v52, %v6540_v57 }
 0x6e6   :  { %v6554_v48 = vadd.f32 %v6884_v47, %v6547_v11 }
 0x6e8   :  { %v6556_v50 = vmul.f32 0.044715, %v6554_v48  ;;  %v6555_v45 = vmul.f32 0.5, %v6554_v48 }
 0x6ea   :  { %v6557_v32 = vmul.f32 %v6556_v50, %v6554_v48 }
 0x6ec   :  { %v6558_v8 = vmul.f32 %v6557_v32, %v6554_v48 }
 0x6ee   :  { %v6559_v38 = vadd.f32 %v6558_v8, %v6554_v48 }
 0x6f0   :  { %v6560_v63 = vmul.f32 0.7978846, %v6559_v38 }
 0x6f2   :  { %7113 = vtanh.f32 %v6560_v63 }
 0x6fc   :  { %v7114_v16 = vpop.eup %7113 }
 0x6fd   :  { %v6562_v42 = vadd.f32 1.0, %v7114_v16 }
 0x6ff   :  { %v6563_v22 = vmul.f32 %v6562_v42, %v6555_v45 }
 0x701   :  { %v6564_v13 = vpack.c.bf16 %v6563_v22, %v6563_v22 }
 0x703   :  { %7000 = vmatmul.mubr.bf16.vlgmr.msra.gmra.mrb[16].mxu1 %v6564_v13 }
 0x704   :  { %7126 = shalt.err (!%p7123_p4)
}
 0x705   :  { %s7127_s12 = scalar_lea.hbm %s9421_s20, 256 }
 0x706   :  { %p7128_p5 = scmp.ne.s32.totalorder %s9421_s20, %s7127_s12  ;;  %p7131_p6 = scmp.lt.u32.totalorder %s7127_s12, %s9421_s20 }
 0x708   :  { %p7133_p7 = pnand %p7131_p6, %p7128_p5 }
 0x70a   :  { %7136 = shalt.err (!%p7133_p7)
}
 0x70b   :  { %6691 = dma.vmem_to_hbm [thread:$0]  %s6689_s3, 256, %s9421_s20, [#allocation7]  }
 0x70c   :  { %s7137_s26 = scalar_lea.vmem %s6679_s24, 256  ;;  %p7142_p9 = scmp.lt.s32.totalorder %s6679_s24, %s6679_s24 }
 0x70d   :  { %p7138_p8 = scmp.ne.s32.totalorder %s6679_s24, %s7137_s26  ;;  %p7143_p10 = scmp.lt.s32.totalorder %s7137_s26, %s7137_s26 }
 0x70f   :  { %p7144_p11 = por %p7143_p10, %p7142_p9 }
 0x711   :  { %p7145_p12 = pnand %p7144_p11, %p7138_p8 }
 0x713   :  { %7148 = shalt.err (!%p7145_p12)
}
 0x714   :  { %s7149_s28 = scalar_lea.hbm %s9420_s19, 256 }
 0x715   :  { %p7150_p13 = scmp.ne.s32.totalorder %s9420_s19, %s7149_s28  ;;  %p7153_p0 = scmp.lt.u32.totalorder %s7149_s28, %s9420_s19 }
 0x717   :  { %p7155_p1 = pnand %p7153_p0, %p7150_p13 }
 0x719   :  { %7158 = shalt.err (!%p7155_p1)
}
 0x71a   :  { %6681 = dma.vmem_to_hbm [thread:$0]  %s6679_s24, 256, %s9420_s19, [#allocation5]  }
 0x71b   :  { %s7217_s17 = smov [#allocation8]  }
 0x71c   :  { %s6698_s7 = sshll.u32 %s7217_s17, 4  ;;  %s6699_s7 = int_to_ptr.vmem [resolvable:$true] %s6698_s7 }
 0x71d   :  { %s7159_s1 = scalar_lea.vmem %s6699_s7, 32  ;;  %p7164_p3 = scmp.lt.s32.totalorder %s6699_s7, %s6699_s7 }
 0x71e   :  { %p7160_p2 = scmp.ne.s32.totalorder %s6699_s7, %s7159_s1  ;;  %p7165_p4 = scmp.lt.s32.totalorder %s7159_s1, %s7159_s1 }
 0x720   :  { %p7166_p5 = por %p7165_p4, %p7164_p3 }
 0x722   :  { %p7167_p6 = pnand %p7166_p5, %p7160_p2 }
 0x724   :  { %7170 = shalt.err (!%p7167_p6)
}
 0x725   :  { %s7171_s3 = scalar_lea.hbm %s9422_s21, 32 }
 0x726   :  { %p7172_p7 = scmp.ne.s32.totalorder %s9422_s21, %s7171_s3  ;;  %p7175_p8 = scmp.lt.u32.totalorder %s7171_s3, %s9422_s21 }
 0x728   :  { %p7177_p9 = pnand %p7175_p8, %p7172_p7 }
 0x72a   :  { %7180 = shalt.err (!%p7177_p9)
}
 0x72b   :  { %6701 = dma.vmem_to_hbm [thread:$0]  %s6699_s7, 32, %s9422_s21, [#allocation7]  }
 0x72c   :  { %s7218_s12 = smov [#allocation9]  }
 0x72d   :  { %s6708_s6 = sshll.u32 %s7218_s12, 4  ;;  %s6709_s6 = int_to_ptr.vmem [resolvable:$true] %s6708_s6 }
 0x72e   :  { %s7181_s13 = scalar_lea.vmem %s6709_s6, 32  ;;  %p7186_p11 = scmp.lt.s32.totalorder %s6709_s6, %s6709_s6 }
 0x72f   :  { %p7182_p10 = scmp.ne.s32.totalorder %s6709_s6, %s7181_s13  ;;  %p7187_p12 = scmp.lt.s32.totalorder %s7181_s13, %s7181_s13 }
 0x731   :  { %p7188_p13 = por %p7187_p12, %p7186_p11 }
 0x733   :  { %p7189_p0 = pnand %p7188_p13, %p7182_p10 }
 0x7d6   :  { %v6663_v18 = vpop.f32.mrb[16].mxu1 }
 0x7d7   :  { %6669 = vst [vmem:[#allocation9] sm:$0x3] %v6663_v18  ;;  %v7001_v6 = vpop.f32.mrb[17].mxu1 }
 0x7d8   :  { %v6666_v14 = vpop.f32.mrb[18].mxu1 }
 0x7d9   :  { %7192 = shalt.err (!%p7189_p0)
}
 0x7da   :  { %s7193_s10 = scalar_lea.hbm %s9423_s22, 32 }
 0x7db   :  { %p7194_p1 = scmp.ne.s32.totalorder %s9423_s22, %s7193_s10  ;;  %p7197_p2 = scmp.lt.u32.totalorder %s7193_s10, %s9423_s22 }
 0x7dd   :  { %p7199_p3 = pnand %p7197_p2, %p7194_p1 }
 0x7df   :  { %7202 = shalt.err (!%p7199_p3)
}
 0x7e0   :  { %6711 = dma.vmem_to_hbm [thread:$0]  %s6709_s6, 32, %s9423_s22, [#allocation10]   ;;  %v7002_v34 = vpop.f32.mrb[19].mxu1 }
 0x7e1   :  { %7205 = dma.done.wait [#allocation5], 256  }
 0x7e2   :  { %7206 = vsyncadd [#allocation5], 4294967040 }
 0x7e3   :  { %7207 = dma.done.wait [#allocation7], 288  }
 0x7e4   :  { %7208 = vsyncadd [#allocation7], 4294967008 }
 0x7e5   :  { %7209 = dma.done.wait [#allocation10], 32  }
 0x7e6   :  { %7210 = vsyncadd [#allocation10], 4294967264 }
 0x7e7   :  { %6726 = vsyncpa [#allocation5], 1 }
 0x7e8   :  { %6727 = vsyncpa [#allocation7], 1 }
 0x7e9   :  { %6728 = vsyncpa [#allocation10], 1 }
 0x7ea   :  { %6729 = vsyncmov [#allocation3] }
 0x7ed   :  { %s6730_s29 = vpop.sfrf %6729 }
 0x7ee   :  { %p6893_p4 = scmp.ne.s32.totalorder %s6730_s29, 0 }
 0x7f0   :  { %6734 = shalt.err (%p6893_p4)  }

</bundles_post_ra>
